<compile_context>
chip_gen: v7x
topology: tpu7x:2x2x1
jax: 0.10.0
libtpu: 0.0.40
codegen_flags: <defaults>
</compile_context>

<pallas_src>
import math

import jax
import jax.numpy as jnp
from jax.experimental import pallas as pl
from jax.experimental.pallas import tpu as pltpu


def _spatial_attention_kernel(x_ref, w_ref, o_ref, pad_ref):
    """Fused: channel mean/max -> zero-pad -> KxK conv (2ch -> 1ch) -> sigmoid."""
    B, C, H, W = x_ref.shape
    _, _, Hp, Wp = pad_ref.shape
    KH = Hp - H + 1
    KW = Wp - W + 1
    P_h = (KH - 1) // 2
    P_w = (KW - 1) // 2

    x = x_ref[...]                                 # (B, C, H, W), read once
    avg = jnp.mean(x, axis=1)                      # (B, H, W)
    mx = jnp.max(x, axis=1)                        # (B, H, W)

    # Zero-padded 2-channel map lives entirely in VMEM scratch.
    pad_ref[...] = jnp.zeros_like(pad_ref)
    pad_ref[0, :, P_h:P_h + H, P_w:P_w + W] = avg
    pad_ref[1, :, P_h:P_h + H, P_w:P_w + W] = mx

    # KxK conv on the VPU: 2*KH*KW scalar-weight FMAs over (B, H, W) tiles.
    acc = jnp.zeros((B, H, W), jnp.float32)
    for c in range(2):
        for kh in range(KH):
            for kw in range(KW):
                wgt = w_ref[c * KH * KW + kh * KW + kw]   # scalar from SMEM
                acc = acc + wgt * pad_ref[c, :, kh:kh + H, kw:kw + W]

    o_ref[...] = jax.nn.sigmoid(acc)               # EUP, written once


def spatial_attention(x, w):
    """x: (B, C, H, W) float32 NCHW.  w: (1, 2, K, K) PyTorch conv weight (no bias)."""
    B, C, H, W = x.shape
    KH, KW = int(w.shape[2]), int(w.shape[3])
    P_h, P_w = (KH - 1) // 2, (KW - 1) // 2
    Hp, Wp = H + 2 * P_h, W + 2 * P_w
    w_flat = w.astype(jnp.float32).reshape(2 * KH * KW)   # (c, kh, kw) order

    out = pl.pallas_call(
        _spatial_attention_kernel,
        out_shape=jax.ShapeDtypeStruct((B, H, W), jnp.float32),
        grid=(1,),
        in_specs=[
            pl.BlockSpec((B, C, H, W), lambda i: (0, 0, 0, 0)),
            pl.BlockSpec((2 * KH * KW,), lambda i: (0,),
                         memory_space=pltpu.MemorySpace.SMEM),
        ],
        out_specs=pl.BlockSpec((B, H, W), lambda i: (0, 0, 0)),
        scratch_shapes=[pltpu.VMEM((2, B, Hp, Wp), jnp.float32)],
        compiler_params=pltpu.CompilerParams(
            dimension_semantics=("arbitrary",)),
    )(x.astype(jnp.float32), w_flat)
    return out.reshape(B, 1, H, W)                 # match torch output (B,1,H,W)


def _reference(x, w):
    avg = jnp.mean(x, axis=1, keepdims=True)
    mx = jnp.max(x, axis=1, keepdims=True)
    m = jnp.concatenate([avg, mx], axis=1)
    ph = (w.shape[2] - 1) // 2
    pw = (w.shape[3] - 1) // 2
    y = jax.lax.conv_general_dilated(
        m, w, window_strides=(1, 1), padding=((ph, ph), (pw, pw)),
        dimension_numbers=("NCHW", "OIHW", "NCHW"))
    return jax.nn.sigmoid(y)


if __name__ == "__main__":
    key = jax.random.PRNGKey(0)
    xkey, wkey = jax.random.split(key)
    B, C, H, W = 2, 4, 16, 16
    x = jax.random.normal(xkey, (B, C, H, W), jnp.float32)
    # conv1 weight in PyTorch layout (out=1, in=2, 7, 7), bias=False
    w = jax.random.normal(wkey, (1, 2, 7, 7), jnp.float32) / math.sqrt(2 * 49)

    fn = jax.jit(spatial_attention)
    out = jax.block_until_ready(fn(x, w))

    assert out.shape == (B, 1, H, W), out.shape
    assert out.dtype == jnp.float32
    assert bool(jnp.all(jnp.isfinite(out)))

    ref = jax.block_until_ready(_reference(x, w))
    err = float(jnp.max(jnp.abs(out - ref)))
    assert err < 1e-4, f"max abs err {err}"
    print("KERNEL_OK")
</pallas_src>

<mosaic_0001>
module attributes {stable_mosaic.version = 11 : i64} {
  func.func @_spatial_attention_kernel(%arg0: i32, %arg1: memref<2x4x16x16xf32, #tpu.memory_space<vmem>>, %arg2: memref<98xf32, #tpu.memory_space<smem>>, %arg3: memref<2x16x16xf32, #tpu.memory_space<vmem>>, %arg4: memref<2x2x22x22xf32, #tpu.memory_space<vmem>>) attributes {dimension_semantics = [#tpu.dimension_semantics<arbitrary>], iteration_bounds = array<i64: 1>, scalar_prefetch = 0 : i64, scratch_operands = 1 : i64, tpu.core_type = #tpu.core_type<tc>, window_params = [{pipeline_mode = #tpu.pipeline_mode<synchronous>, transform_indices = @transform_0, window_bounds = array<i64: 2, 4, 16, 16>}, {transform_indices = @transform_1, window_bounds = array<i64: 98>}, {pipeline_mode = #tpu.pipeline_mode<synchronous>, transform_indices = @transform_2, window_bounds = array<i64: 2, 16, 16>}]} {
    %c0 = arith.constant 0 : index
    %c0_0 = arith.constant 0 : index
    %c0_1 = arith.constant 0 : index
    %c0_2 = arith.constant 0 : index
    %0 = vector.load %arg1[%c0, %c0_0, %c0_1, %c0_2] : memref<2x4x16x16xf32, #tpu.memory_space<vmem>>, vector<2x4x16x16xf32>
    %cst = arith.constant dense<0.000000e+00> : vector<2x16x16xf32>
    %1 = vector.multi_reduction <add>, %0, %cst [1] : vector<2x4x16x16xf32> to vector<2x16x16xf32>
    %cst_3 = arith.constant 4.000000e+00 : f32
    %2 = vector.broadcast %cst_3 : f32 to vector<2x16x16xf32>
    %3 = arith.divf %1, %2 : vector<2x16x16xf32>
    %cst_4 = arith.constant dense<0xFF800000> : vector<2x16x16xf32>
    %4 = vector.multi_reduction <maximumf>, %0, %cst_4 [1] : vector<2x4x16x16xf32> to vector<2x16x16xf32>
    %cst_5 = arith.constant 0.000000e+00 : f32
    %5 = vector.broadcast %cst_5 : f32 to vector<2x2x22x22xf32>
    %c0_6 = arith.constant 0 : index
    %c0_7 = arith.constant 0 : index
    %c0_8 = arith.constant 0 : index
    %c0_9 = arith.constant 0 : index
    %6 = vector.load %arg4[%c0_6, %c0_7, %c0_8, %c0_9] : memref<2x2x22x22xf32, #tpu.memory_space<vmem>>, vector<2x2x22x22xf32>
    tpu.vector_store %arg4[%c0_6, %c0_7, %c0_8, %c0_9], %5 {strides = array<i32>} : memref<2x2x22x22xf32, #tpu.memory_space<vmem>>, vector<2x2x22x22xf32>,
    %c0_10 = arith.constant 0 : index
    %c0_11 = arith.constant 0 : index
    %c3 = arith.constant 3 : index
    %c3_12 = arith.constant 3 : index
    %7 = vector.load %arg4[%c0_10, %c0_11, %c3, %c3_12] : memref<2x2x22x22xf32, #tpu.memory_space<vmem>>, vector<1x2x16x16xf32>
    %8 = vector.shape_cast %7 : vector<1x2x16x16xf32> to vector<2x16x16xf32>
    %9 = vector.shape_cast %3 : vector<2x16x16xf32> to vector<1x2x16x16xf32>
    tpu.vector_store %arg4[%c0_10, %c0_11, %c3, %c3_12], %9 {strides = array<i32>} : memref<2x2x22x22xf32, #tpu.memory_space<vmem>>, vector<1x2x16x16xf32>,
    %c1 = arith.constant 1 : index
    %c0_13 = arith.constant 0 : index
    %c3_14 = arith.constant 3 : index
    %c3_15 = arith.constant 3 : index
    %10 = vector.load %arg4[%c1, %c0_13, %c3_14, %c3_15] : memref<2x2x22x22xf32, #tpu.memory_space<vmem>>, vector<1x2x16x16xf32>
    %11 = vector.shape_cast %10 : vector<1x2x16x16xf32> to vector<2x16x16xf32>
    %12 = vector.shape_cast %4 : vector<2x16x16xf32> to vector<1x2x16x16xf32>
    tpu.vector_store %arg4[%c1, %c0_13, %c3_14, %c3_15], %12 {strides = array<i32>} : memref<2x2x22x22xf32, #tpu.memory_space<vmem>>, vector<1x2x16x16xf32>,
    %cst_16 = arith.constant 0.000000e+00 : f32
    %13 = vector.broadcast %cst_16 : f32 to vector<2x16x16xf32>
    %c0_17 = arith.constant 0 : index
    %14 = memref.load %arg2[%c0_17] : memref<98xf32, #tpu.memory_space<smem>>
    %c0_18 = arith.constant 0 : index
    %c0_19 = arith.constant 0 : index
    %c0_20 = arith.constant 0 : index
    %c0_21 = arith.constant 0 : index
    %15 = vector.load %arg4[%c0_18, %c0_19, %c0_20, %c0_21] : memref<2x2x22x22xf32, #tpu.memory_space<vmem>>, vector<1x2x16x16xf32>
    %16 = vector.shape_cast %15 : vector<1x2x16x16xf32> to vector<2x16x16xf32>
    %17 = vector.broadcast %14 : f32 to vector<2x16x16xf32>
    %18 = arith.mulf %17, %16 : vector<2x16x16xf32>
    %19 = arith.addf %13, %18 : vector<2x16x16xf32>
    %c1_22 = arith.constant 1 : index
    %20 = memref.load %arg2[%c1_22] : memref<98xf32, #tpu.memory_space<smem>>
    %c0_23 = arith.constant 0 : index
    %c0_24 = arith.constant 0 : index
    %c0_25 = arith.constant 0 : index
    %c1_26 = arith.constant 1 : index
    %21 = vector.load %arg4[%c0_23, %c0_24, %c0_25, %c1_26] : memref<2x2x22x22xf32, #tpu.memory_space<vmem>>, vector<1x2x16x16xf32>
    %22 = vector.shape_cast %21 : vector<1x2x16x16xf32> to vector<2x16x16xf32>
    %23 = vector.broadcast %20 : f32 to vector<2x16x16xf32>
    %24 = arith.mulf %23, %22 : vector<2x16x16xf32>
    %25 = arith.addf %19, %24 : vector<2x16x16xf32>
    %c2 = arith.constant 2 : index
    %26 = memref.load %arg2[%c2] : memref<98xf32, #tpu.memory_space<smem>>
    %c0_27 = arith.constant 0 : index
    %c0_28 = arith.constant 0 : index
    %c0_29 = arith.constant 0 : index
    %c2_30 = arith.constant 2 : index
    %27 = vector.load %arg4[%c0_27, %c0_28, %c0_29, %c2_30] : memref<2x2x22x22xf32, #tpu.memory_space<vmem>>, vector<1x2x16x16xf32>
    %28 = vector.shape_cast %27 : vector<1x2x16x16xf32> to vector<2x16x16xf32>
    %29 = vector.broadcast %26 : f32 to vector<2x16x16xf32>
    %30 = arith.mulf %29, %28 : vector<2x16x16xf32>
    %31 = arith.addf %25, %30 : vector<2x16x16xf32>
    %c3_31 = arith.constant 3 : index
    %32 = memref.load %arg2[%c3_31] : memref<98xf32, #tpu.memory_space<smem>>
    %c0_32 = arith.constant 0 : index
    %c0_33 = arith.constant 0 : index
    %c0_34 = arith.constant 0 : index
    %c3_35 = arith.constant 3 : index
    %33 = vector.load %arg4[%c0_32, %c0_33, %c0_34, %c3_35] : memref<2x2x22x22xf32, #tpu.memory_space<vmem>>, vector<1x2x16x16xf32>
    %34 = vector.shape_cast %33 : vector<1x2x16x16xf32> to vector<2x16x16xf32>
    %35 = vector.broadcast %32 : f32 to vector<2x16x16xf32>
    %36 = arith.mulf %35, %34 : vector<2x16x16xf32>
    %37 = arith.addf %31, %36 : vector<2x16x16xf32>
    %c4 = arith.constant 4 : index
    %38 = memref.load %arg2[%c4] : memref<98xf32, #tpu.memory_space<smem>>
    %c0_36 = arith.constant 0 : index
    %c0_37 = arith.constant 0 : index
    %c0_38 = arith.constant 0 : index
    %c4_39 = arith.constant 4 : index
    %39 = vector.load %arg4[%c0_36, %c0_37, %c0_38, %c4_39] : memref<2x2x22x22xf32, #tpu.memory_space<vmem>>, vector<1x2x16x16xf32>
    %40 = vector.shape_cast %39 : vector<1x2x16x16xf32> to vector<2x16x16xf32>
    %41 = vector.broadcast %38 : f32 to vector<2x16x16xf32>
    %42 = arith.mulf %41, %40 : vector<2x16x16xf32>
    %43 = arith.addf %37, %42 : vector<2x16x16xf32>
    %c5 = arith.constant 5 : index
    %44 = memref.load %arg2[%c5] : memref<98xf32, #tpu.memory_space<smem>>
    %c0_40 = arith.constant 0 : index
    %c0_41 = arith.constant 0 : index
    %c0_42 = arith.constant 0 : index
    %c5_43 = arith.constant 5 : index
    %45 = vector.load %arg4[%c0_40, %c0_41, %c0_42, %c5_43] : memref<2x2x22x22xf32, #tpu.memory_space<vmem>>, vector<1x2x16x16xf32>
    %46 = vector.shape_cast %45 : vector<1x2x16x16xf32> to vector<2x16x16xf32>
    %47 = vector.broadcast %44 : f32 to vector<2x16x16xf32>
    %48 = arith.mulf %47, %46 : vector<2x16x16xf32>
    %49 = arith.addf %43, %48 : vector<2x16x16xf32>
    %c6 = arith.constant 6 : index
    %50 = memref.load %arg2[%c6] : memref<98xf32, #tpu.memory_space<smem>>
    %c0_44 = arith.constant 0 : index
    %c0_45 = arith.constant 0 : index
    %c0_46 = arith.constant 0 : index
    %c6_47 = arith.constant 6 : index
    %51 = vector.load %arg4[%c0_44, %c0_45, %c0_46, %c6_47] : memref<2x2x22x22xf32, #tpu.memory_space<vmem>>, vector<1x2x16x16xf32>
    %52 = vector.shape_cast %51 : vector<1x2x16x16xf32> to vector<2x16x16xf32>
    %53 = vector.broadcast %50 : f32 to vector<2x16x16xf32>
    %54 = arith.mulf %53, %52 : vector<2x16x16xf32>
    %55 = arith.addf %49, %54 : vector<2x16x16xf32>
    %c7 = arith.constant 7 : index
    %56 = memref.load %arg2[%c7] : memref<98xf32, #tpu.memory_space<smem>>
    %c0_48 = arith.constant 0 : index
    %c0_49 = arith.constant 0 : index
    %c1_50 = arith.constant 1 : index
    %c0_51 = arith.constant 0 : index
    %57 = vector.load %arg4[%c0_48, %c0_49, %c1_50, %c0_51] : memref<2x2x22x22xf32, #tpu.memory_space<vmem>>, vector<1x2x16x16xf32>
    %58 = vector.shape_cast %57 : vector<1x2x16x16xf32> to vector<2x16x16xf32>
    %59 = vector.broadcast %56 : f32 to vector<2x16x16xf32>
    %60 = arith.mulf %59, %58 : vector<2x16x16xf32>
    %61 = arith.addf %55, %60 : vector<2x16x16xf32>
    %c8 = arith.constant 8 : index
    %62 = memref.load %arg2[%c8] : memref<98xf32, #tpu.memory_space<smem>>
    %c0_52 = arith.constant 0 : index
    %c0_53 = arith.constant 0 : index
    %c1_54 = arith.constant 1 : index
    %c1_55 = arith.constant 1 : index
    %63 = vector.load %arg4[%c0_52, %c0_53, %c1_54, %c1_55] : memref<2x2x22x22xf32, #tpu.memory_space<vmem>>, vector<1x2x16x16xf32>
    %64 = vector.shape_cast %63 : vector<1x2x16x16xf32> to vector<2x16x16xf32>
    %65 = vector.broadcast %62 : f32 to vector<2x16x16xf32>
    %66 = arith.mulf %65, %64 : vector<2x16x16xf32>
    %67 = arith.addf %61, %66 : vector<2x16x16xf32>
    %c9 = arith.constant 9 : index
    %68 = memref.load %arg2[%c9] : memref<98xf32, #tpu.memory_space<smem>>
    %c0_56 = arith.constant 0 : index
    %c0_57 = arith.constant 0 : index
    %c1_58 = arith.constant 1 : index
    %c2_59 = arith.constant 2 : index
    %69 = vector.load %arg4[%c0_56, %c0_57, %c1_58, %c2_59] : memref<2x2x22x22xf32, #tpu.memory_space<vmem>>, vector<1x2x16x16xf32>
    %70 = vector.shape_cast %69 : vector<1x2x16x16xf32> to vector<2x16x16xf32>
    %71 = vector.broadcast %68 : f32 to vector<2x16x16xf32>
    %72 = arith.mulf %71, %70 : vector<2x16x16xf32>
    %73 = arith.addf %67, %72 : vector<2x16x16xf32>
    %c10 = arith.constant 10 : index
    %74 = memref.load %arg2[%c10] : memref<98xf32, #tpu.memory_space<smem>>
    %c0_60 = arith.constant 0 : index
    %c0_61 = arith.constant 0 : index
    %c1_62 = arith.constant 1 : index
    %c3_63 = arith.constant 3 : index
    %75 = vector.load %arg4[%c0_60, %c0_61, %c1_62, %c3_63] : memref<2x2x22x22xf32, #tpu.memory_space<vmem>>, vector<1x2x16x16xf32>
    %76 = vector.shape_cast %75 : vector<1x2x16x16xf32> to vector<2x16x16xf32>
    %77 = vector.broadcast %74 : f32 to vector<2x16x16xf32>
    %78 = arith.mulf %77, %76 : vector<2x16x16xf32>
    %79 = arith.addf %73, %78 : vector<2x16x16xf32>
    %c11 = arith.constant 11 : index
    %80 = memref.load %arg2[%c11] : memref<98xf32, #tpu.memory_space<smem>>
    %c0_64 = arith.constant 0 : index
    %c0_65 = arith.constant 0 : index
    %c1_66 = arith.constant 1 : index
    %c4_67 = arith.constant 4 : index
    %81 = vector.load %arg4[%c0_64, %c0_65, %c1_66, %c4_67] : memref<2x2x22x22xf32, #tpu.memory_space<vmem>>, vector<1x2x16x16xf32>
    %82 = vector.shape_cast %81 : vector<1x2x16x16xf32> to vector<2x16x16xf32>
    %83 = vector.broadcast %80 : f32 to vector<2x16x16xf32>
    %84 = arith.mulf %83, %82 : vector<2x16x16xf32>
    %85 = arith.addf %79, %84 : vector<2x16x16xf32>
    %c12 = arith.constant 12 : index
    %86 = memref.load %arg2[%c12] : memref<98xf32, #tpu.memory_space<smem>>
    %c0_68 = arith.constant 0 : index
    %c0_69 = arith.constant 0 : index
    %c1_70 = arith.constant 1 : index
    %c5_71 = arith.constant 5 : index
    %87 = vector.load %arg4[%c0_68, %c0_69, %c1_70, %c5_71] : memref<2x2x22x22xf32, #tpu.memory_space<vmem>>, vector<1x2x16x16xf32>
    %88 = vector.shape_cast %87 : vector<1x2x16x16xf32> to vector<2x16x16xf32>
    %89 = vector.broadcast %86 : f32 to vector<2x16x16xf32>
    %90 = arith.mulf %89, %88 : vector<2x16x16xf32>
    %91 = arith.addf %85, %90 : vector<2x16x16xf32>
    %c13 = arith.constant 13 : index
    %92 = memref.load %arg2[%c13] : memref<98xf32, #tpu.memory_space<smem>>
    %c0_72 = arith.constant 0 : index
    %c0_73 = arith.constant 0 : index
    %c1_74 = arith.constant 1 : index
    %c6_75 = arith.constant 6 : index
    %93 = vector.load %arg4[%c0_72, %c0_73, %c1_74, %c6_75] : memref<2x2x22x22xf32, #tpu.memory_space<vmem>>, vector<1x2x16x16xf32>
    %94 = vector.shape_cast %93 : vector<1x2x16x16xf32> to vector<2x16x16xf32>
    %95 = vector.broadcast %92 : f32 to vector<2x16x16xf32>
    %96 = arith.mulf %95, %94 : vector<2x16x16xf32>
    %97 = arith.addf %91, %96 : vector<2x16x16xf32>
    %c14 = arith.constant 14 : index
    %98 = memref.load %arg2[%c14] : memref<98xf32, #tpu.memory_space<smem>>
    %c0_76 = arith.constant 0 : index
    %c0_77 = arith.constant 0 : index
    %c2_78 = arith.constant 2 : index
    %c0_79 = arith.constant 0 : index
    %99 = vector.load %arg4[%c0_76, %c0_77, %c2_78, %c0_79] : memref<2x2x22x22xf32, #tpu.memory_space<vmem>>, vector<1x2x16x16xf32>
    %100 = vector.shape_cast %99 : vector<1x2x16x16xf32> to vector<2x16x16xf32>
    %101 = vector.broadcast %98 : f32 to vector<2x16x16xf32>
    %102 = arith.mulf %101, %100 : vector<2x16x16xf32>
    %103 = arith.addf %97, %102 : vector<2x16x16xf32>
    %c15 = arith.constant 15 : index
    %104 = memref.load %arg2[%c15] : memref<98xf32, #tpu.memory_space<smem>>
    %c0_80 = arith.constant 0 : index
    %c0_81 = arith.constant 0 : index
    %c2_82 = arith.constant 2 : index
    %c1_83 = arith.constant 1 : index
    %105 = vector.load %arg4[%c0_80, %c0_81, %c2_82, %c1_83] : memref<2x2x22x22xf32, #tpu.memory_space<vmem>>, vector<1x2x16x16xf32>
    %106 = vector.shape_cast %105 : vector<1x2x16x16xf32> to vector<2x16x16xf32>
    %107 = vector.broadcast %104 : f32 to vector<2x16x16xf32>
    %108 = arith.mulf %107, %106 : vector<2x16x16xf32>
    %109 = arith.addf %103, %108 : vector<2x16x16xf32>
    %c16 = arith.constant 16 : index
    %110 = memref.load %arg2[%c16] : memref<98xf32, #tpu.memory_space<smem>>
    %c0_84 = arith.constant 0 : index
    %c0_85 = arith.constant 0 : index
    %c2_86 = arith.constant 2 : index
    %c2_87 = arith.constant 2 : index
    %111 = vector.load %arg4[%c0_84, %c0_85, %c2_86, %c2_87] : memref<2x2x22x22xf32, #tpu.memory_space<vmem>>, vector<1x2x16x16xf32>
    %112 = vector.shape_cast %111 : vector<1x2x16x16xf32> to vector<2x16x16xf32>
    %113 = vector.broadcast %110 : f32 to vector<2x16x16xf32>
    %114 = arith.mulf %113, %112 : vector<2x16x16xf32>
    %115 = arith.addf %109, %114 : vector<2x16x16xf32>
    %c17 = arith.constant 17 : index
    %116 = memref.load %arg2[%c17] : memref<98xf32, #tpu.memory_space<smem>>
    %c0_88 = arith.constant 0 : index
    %c0_89 = arith.constant 0 : index
    %c2_90 = arith.constant 2 : index
    %c3_91 = arith.constant 3 : index
    %117 = vector.load %arg4[%c0_88, %c0_89, %c2_90, %c3_91] : memref<2x2x22x22xf32, #tpu.memory_space<vmem>>, vector<1x2x16x16xf32>
    %118 = vector.shape_cast %117 : vector<1x2x16x16xf32> to vector<2x16x16xf32>
    %119 = vector.broadcast %116 : f32 to vector<2x16x16xf32>
    %120 = arith.mulf %119, %118 : vector<2x16x16xf32>
    %121 = arith.addf %115, %120 : vector<2x16x16xf32>
    %c18 = arith.constant 18 : index
    %122 = memref.load %arg2[%c18] : memref<98xf32, #tpu.memory_space<smem>>
    %c0_92 = arith.constant 0 : index
    %c0_93 = arith.constant 0 : index
    %c2_94 = arith.constant 2 : index
    %c4_95 = arith.constant 4 : index
    %123 = vector.load %arg4[%c0_92, %c0_93, %c2_94, %c4_95] : memref<2x2x22x22xf32, #tpu.memory_space<vmem>>, vector<1x2x16x16xf32>
    %124 = vector.shape_cast %123 : vector<1x2x16x16xf32> to vector<2x16x16xf32>
    %125 = vector.broadcast %122 : f32 to vector<2x16x16xf32>
    %126 = arith.mulf %125, %124 : vector<2x16x16xf32>
    %127 = arith.addf %121, %126 : vector<2x16x16xf32>
    %c19 = arith.constant 19 : index
    %128 = memref.load %arg2[%c19] : memref<98xf32, #tpu.memory_space<smem>>
    %c0_96 = arith.constant 0 : index
    %c0_97 = arith.constant 0 : index
    %c2_98 = arith.constant 2 : index
    %c5_99 = arith.constant 5 : index
    %129 = vector.load %arg4[%c0_96, %c0_97, %c2_98, %c5_99] : memref<2x2x22x22xf32, #tpu.memory_space<vmem>>, vector<1x2x16x16xf32>
    %130 = vector.shape_cast %129 : vector<1x2x16x16xf32> to vector<2x16x16xf32>
    %131 = vector.broadcast %128 : f32 to vector<2x16x16xf32>
    %132 = arith.mulf %131, %130 : vector<2x16x16xf32>
    %133 = arith.addf %127, %132 : vector<2x16x16xf32>
    %c20 = arith.constant 20 : index
    %134 = memref.load %arg2[%c20] : memref<98xf32, #tpu.memory_space<smem>>
    %c0_100 = arith.constant 0 : index
    %c0_101 = arith.constant 0 : index
    %c2_102 = arith.constant 2 : index
    %c6_103 = arith.constant 6 : index
    %135 = vector.load %arg4[%c0_100, %c0_101, %c2_102, %c6_103] : memref<2x2x22x22xf32, #tpu.memory_space<vmem>>, vector<1x2x16x16xf32>
    %136 = vector.shape_cast %135 : vector<1x2x16x16xf32> to vector<2x16x16xf32>
    %137 = vector.broadcast %134 : f32 to vector<2x16x16xf32>
    %138 = arith.mulf %137, %136 : vector<2x16x16xf32>
    %139 = arith.addf %133, %138 : vector<2x16x16xf32>
    %c21 = arith.constant 21 : index
    %140 = memref.load %arg2[%c21] : memref<98xf32, #tpu.memory_space<smem>>
    %c0_104 = arith.constant 0 : index
    %c0_105 = arith.constant 0 : index
    %c3_106 = arith.constant 3 : index
    %c0_107 = arith.constant 0 : index
    %141 = vector.load %arg4[%c0_104, %c0_105, %c3_106, %c0_107] : memref<2x2x22x22xf32, #tpu.memory_space<vmem>>, vector<1x2x16x16xf32>
    %142 = vector.shape_cast %141 : vector<1x2x16x16xf32> to vector<2x16x16xf32>
    %143 = vector.broadcast %140 : f32 to vector<2x16x16xf32>
    %144 = arith.mulf %143, %142 : vector<2x16x16xf32>
    %145 = arith.addf %139, %144 : vector<2x16x16xf32>
    %c22 = arith.constant 22 : index
    %146 = memref.load %arg2[%c22] : memref<98xf32, #tpu.memory_space<smem>>
    %c0_108 = arith.constant 0 : index
    %c0_109 = arith.constant 0 : index
    %c3_110 = arith.constant 3 : index
    %c1_111 = arith.constant 1 : index
    %147 = vector.load %arg4[%c0_108, %c0_109, %c3_110, %c1_111] : memref<2x2x22x22xf32, #tpu.memory_space<vmem>>, vector<1x2x16x16xf32>
    %148 = vector.shape_cast %147 : vector<1x2x16x16xf32> to vector<2x16x16xf32>
    %149 = vector.broadcast %146 : f32 to vector<2x16x16xf32>
    %150 = arith.mulf %149, %148 : vector<2x16x16xf32>
    %151 = arith.addf %145, %150 : vector<2x16x16xf32>
    %c23 = arith.constant 23 : index
    %152 = memref.load %arg2[%c23] : memref<98xf32, #tpu.memory_space<smem>>
    %c0_112 = arith.constant 0 : index
    %c0_113 = arith.constant 0 : index
    %c3_114 = arith.constant 3 : index
    %c2_115 = arith.constant 2 : index
    %153 = vector.load %arg4[%c0_112, %c0_113, %c3_114, %c2_115] : memref<2x2x22x22xf32, #tpu.memory_space<vmem>>, vector<1x2x16x16xf32>
    %154 = vector.shape_cast %153 : vector<1x2x16x16xf32> to vector<2x16x16xf32>
    %155 = vector.broadcast %152 : f32 to vector<2x16x16xf32>
    %156 = arith.mulf %155, %154 : vector<2x16x16xf32>
    %157 = arith.addf %151, %156 : vector<2x16x16xf32>
    %c24 = arith.constant 24 : index
    %158 = memref.load %arg2[%c24] : memref<98xf32, #tpu.memory_space<smem>>
    %c0_116 = arith.constant 0 : index
    %c0_117 = arith.constant 0 : index
    %c3_118 = arith.constant 3 : index
    %c3_119 = arith.constant 3 : index
    %159 = vector.load %arg4[%c0_116, %c0_117, %c3_118, %c3_119] : memref<2x2x22x22xf32, #tpu.memory_space<vmem>>, vector<1x2x16x16xf32>
    %160 = vector.shape_cast %159 : vector<1x2x16x16xf32> to vector<2x16x16xf32>
    %161 = vector.broadcast %158 : f32 to vector<2x16x16xf32>
    %162 = arith.mulf %161, %160 : vector<2x16x16xf32>
    %163 = arith.addf %157, %162 : vector<2x16x16xf32>
    %c25 = arith.constant 25 : index
    %164 = memref.load %arg2[%c25] : memref<98xf32, #tpu.memory_space<smem>>
    %c0_120 = arith.constant 0 : index
    %c0_121 = arith.constant 0 : index
    %c3_122 = arith.constant 3 : index
    %c4_123 = arith.constant 4 : index
    %165 = vector.load %arg4[%c0_120, %c0_121, %c3_122, %c4_123] : memref<2x2x22x22xf32, #tpu.memory_space<vmem>>, vector<1x2x16x16xf32>
    %166 = vector.shape_cast %165 : vector<1x2x16x16xf32> to vector<2x16x16xf32>
    %167 = vector.broadcast %164 : f32 to vector<2x16x16xf32>
    %168 = arith.mulf %167, %166 : vector<2x16x16xf32>
    %169 = arith.addf %163, %168 : vector<2x16x16xf32>
    %c26 = arith.constant 26 : index
    %170 = memref.load %arg2[%c26] : memref<98xf32, #tpu.memory_space<smem>>
    %c0_124 = arith.constant 0 : index
    %c0_125 = arith.constant 0 : index
    %c3_126 = arith.constant 3 : index
    %c5_127 = arith.constant 5 : index
    %171 = vector.load %arg4[%c0_124, %c0_125, %c3_126, %c5_127] : memref<2x2x22x22xf32, #tpu.memory_space<vmem>>, vector<1x2x16x16xf32>
    %172 = vector.shape_cast %171 : vector<1x2x16x16xf32> to vector<2x16x16xf32>
    %173 = vector.broadcast %170 : f32 to vector<2x16x16xf32>
    %174 = arith.mulf %173, %172 : vector<2x16x16xf32>
    %175 = arith.addf %169, %174 : vector<2x16x16xf32>
    %c27 = arith.constant 27 : index
    %176 = memref.load %arg2[%c27] : memref<98xf32, #tpu.memory_space<smem>>
    %c0_128 = arith.constant 0 : index
    %c0_129 = arith.constant 0 : index
    %c3_130 = arith.constant 3 : index
    %c6_131 = arith.constant 6 : index
    %177 = vector.load %arg4[%c0_128, %c0_129, %c3_130, %c6_131] : memref<2x2x22x22xf32, #tpu.memory_space<vmem>>, vector<1x2x16x16xf32>
    %178 = vector.shape_cast %177 : vector<1x2x16x16xf32> to vector<2x16x16xf32>
    %179 = vector.broadcast %176 : f32 to vector<2x16x16xf32>
    %180 = arith.mulf %179, %178 : vector<2x16x16xf32>
    %181 = arith.addf %175, %180 : vector<2x16x16xf32>
    %c28 = arith.constant 28 : index
    %182 = memref.load %arg2[%c28] : memref<98xf32, #tpu.memory_space<smem>>
    %c0_132 = arith.constant 0 : index
    %c0_133 = arith.constant 0 : index
    %c4_134 = arith.constant 4 : index
    %c0_135 = arith.constant 0 : index
    %183 = vector.load %arg4[%c0_132, %c0_133, %c4_134, %c0_135] : memref<2x2x22x22xf32, #tpu.memory_space<vmem>>, vector<1x2x16x16xf32>
    %184 = vector.shape_cast %183 : vector<1x2x16x16xf32> to vector<2x16x16xf32>
    %185 = vector.broadcast %182 : f32 to vector<2x16x16xf32>
    %186 = arith.mulf %185, %184 : vector<2x16x16xf32>
    %187 = arith.addf %181, %186 : vector<2x16x16xf32>
    %c29 = arith.constant 29 : index
    %188 = memref.load %arg2[%c29] : memref<98xf32, #tpu.memory_space<smem>>
    %c0_136 = arith.constant 0 : index
    %c0_137 = arith.constant 0 : index
    %c4_138 = arith.constant 4 : index
    %c1_139 = arith.constant 1 : index
    %189 = vector.load %arg4[%c0_136, %c0_137, %c4_138, %c1_139] : memref<2x2x22x22xf32, #tpu.memory_space<vmem>>, vector<1x2x16x16xf32>
    %190 = vector.shape_cast %189 : vector<1x2x16x16xf32> to vector<2x16x16xf32>
    %191 = vector.broadcast %188 : f32 to vector<2x16x16xf32>
    %192 = arith.mulf %191, %190 : vector<2x16x16xf32>
    %193 = arith.addf %187, %192 : vector<2x16x16xf32>
    %c30 = arith.constant 30 : index
    %194 = memref.load %arg2[%c30] : memref<98xf32, #tpu.memory_space<smem>>
    %c0_140 = arith.constant 0 : index
    %c0_141 = arith.constant 0 : index
    %c4_142 = arith.constant 4 : index
    %c2_143 = arith.constant 2 : index
    %195 = vector.load %arg4[%c0_140, %c0_141, %c4_142, %c2_143] : memref<2x2x22x22xf32, #tpu.memory_space<vmem>>, vector<1x2x16x16xf32>
    %196 = vector.shape_cast %195 : vector<1x2x16x16xf32> to vector<2x16x16xf32>
    %197 = vector.broadcast %194 : f32 to vector<2x16x16xf32>
    %198 = arith.mulf %197, %196 : vector<2x16x16xf32>
    %199 = arith.addf %193, %198 : vector<2x16x16xf32>
    %c31 = arith.constant 31 : index
    %200 = memref.load %arg2[%c31] : memref<98xf32, #tpu.memory_space<smem>>
    %c0_144 = arith.constant 0 : index
    %c0_145 = arith.constant 0 : index
    %c4_146 = arith.constant 4 : index
    %c3_147 = arith.constant 3 : index
    %201 = vector.load %arg4[%c0_144, %c0_145, %c4_146, %c3_147] : memref<2x2x22x22xf32, #tpu.memory_space<vmem>>, vector<1x2x16x16xf32>
    %202 = vector.shape_cast %201 : vector<1x2x16x16xf32> to vector<2x16x16xf32>
    %203 = vector.broadcast %200 : f32 to vector<2x16x16xf32>
    %204 = arith.mulf %203, %202 : vector<2x16x16xf32>
    %205 = arith.addf %199, %204 : vector<2x16x16xf32>
    %c32 = arith.constant 32 : index
    %206 = memref.load %arg2[%c32] : memref<98xf32, #tpu.memory_space<smem>>
    %c0_148 = arith.constant 0 : index
    %c0_149 = arith.constant 0 : index
    %c4_150 = arith.constant 4 : index
    %c4_151 = arith.constant 4 : index
    %207 = vector.load %arg4[%c0_148, %c0_149, %c4_150, %c4_151] : memref<2x2x22x22xf32, #tpu.memory_space<vmem>>, vector<1x2x16x16xf32>
    %208 = vector.shape_cast %207 : vector<1x2x16x16xf32> to vector<2x16x16xf32>
    %209 = vector.broadcast %206 : f32 to vector<2x16x16xf32>
    %210 = arith.mulf %209, %208 : vector<2x16x16xf32>
    %211 = arith.addf %205, %210 : vector<2x16x16xf32>
    %c33 = arith.constant 33 : index
    %212 = memref.load %arg2[%c33] : memref<98xf32, #tpu.memory_space<smem>>
    %c0_152 = arith.constant 0 : index
    %c0_153 = arith.constant 0 : index
    %c4_154 = arith.constant 4 : index
    %c5_155 = arith.constant 5 : index
    %213 = vector.load %arg4[%c0_152, %c0_153, %c4_154, %c5_155] : memref<2x2x22x22xf32, #tpu.memory_space<vmem>>, vector<1x2x16x16xf32>
    %214 = vector.shape_cast %213 : vector<1x2x16x16xf32> to vector<2x16x16xf32>
    %215 = vector.broadcast %212 : f32 to vector<2x16x16xf32>
    %216 = arith.mulf %215, %214 : vector<2x16x16xf32>
    %217 = arith.addf %211, %216 : vector<2x16x16xf32>
    %c34 = arith.constant 34 : index
    %218 = memref.load %arg2[%c34] : memref<98xf32, #tpu.memory_space<smem>>
    %c0_156 = arith.constant 0 : index
    %c0_157 = arith.constant 0 : index
    %c4_158 = arith.constant 4 : index
    %c6_159 = arith.constant 6 : index
    %219 = vector.load %arg4[%c0_156, %c0_157, %c4_158, %c6_159] : memref<2x2x22x22xf32, #tpu.memory_space<vmem>>, vector<1x2x16x16xf32>
    %220 = vector.shape_cast %219 : vector<1x2x16x16xf32> to vector<2x16x16xf32>
    %221 = vector.broadcast %218 : f32 to vector<2x16x16xf32>
    %222 = arith.mulf %221, %220 : vector<2x16x16xf32>
    %223 = arith.addf %217, %222 : vector<2x16x16xf32>
    %c35 = arith.constant 35 : index
    %224 = memref.load %arg2[%c35] : memref<98xf32, #tpu.memory_space<smem>>
    %c0_160 = arith.constant 0 : index
    %c0_161 = arith.constant 0 : index
    %c5_162 = arith.constant 5 : index
    %c0_163 = arith.constant 0 : index
    %225 = vector.load %arg4[%c0_160, %c0_161, %c5_162, %c0_163] : memref<2x2x22x22xf32, #tpu.memory_space<vmem>>, vector<1x2x16x16xf32>
    %226 = vector.shape_cast %225 : vector<1x2x16x16xf32> to vector<2x16x16xf32>
    %227 = vector.broadcast %224 : f32 to vector<2x16x16xf32>
    %228 = arith.mulf %227, %226 : vector<2x16x16xf32>
    %229 = arith.addf %223, %228 : vector<2x16x16xf32>
    %c36 = arith.constant 36 : index
    %230 = memref.load %arg2[%c36] : memref<98xf32, #tpu.memory_space<smem>>
    %c0_164 = arith.constant 0 : index
    %c0_165 = arith.constant 0 : index
    %c5_166 = arith.constant 5 : index
    %c1_167 = arith.constant 1 : index
    %231 = vector.load %arg4[%c0_164, %c0_165, %c5_166, %c1_167] : memref<2x2x22x22xf32, #tpu.memory_space<vmem>>, vector<1x2x16x16xf32>
    %232 = vector.shape_cast %231 : vector<1x2x16x16xf32> to vector<2x16x16xf32>
    %233 = vector.broadcast %230 : f32 to vector<2x16x16xf32>
    %234 = arith.mulf %233, %232 : vector<2x16x16xf32>
    %235 = arith.addf %229, %234 : vector<2x16x16xf32>
    %c37 = arith.constant 37 : index
    %236 = memref.load %arg2[%c37] : memref<98xf32, #tpu.memory_space<smem>>
    %c0_168 = arith.constant 0 : index
    %c0_169 = arith.constant 0 : index
    %c5_170 = arith.constant 5 : index
    %c2_171 = arith.constant 2 : index
    %237 = vector.load %arg4[%c0_168, %c0_169, %c5_170, %c2_171] : memref<2x2x22x22xf32, #tpu.memory_space<vmem>>, vector<1x2x16x16xf32>
    %238 = vector.shape_cast %237 : vector<1x2x16x16xf32> to vector<2x16x16xf32>
    %239 = vector.broadcast %236 : f32 to vector<2x16x16xf32>
    %240 = arith.mulf %239, %238 : vector<2x16x16xf32>
    %241 = arith.addf %235, %240 : vector<2x16x16xf32>
    %c38 = arith.constant 38 : index
    %242 = memref.load %arg2[%c38] : memref<98xf32, #tpu.memory_space<smem>>
    %c0_172 = arith.constant 0 : index
    %c0_173 = arith.constant 0 : index
    %c5_174 = arith.constant 5 : index
    %c3_175 = arith.constant 3 : index
    %243 = vector.load %arg4[%c0_172, %c0_173, %c5_174, %c3_175] : memref<2x2x22x22xf32, #tpu.memory_space<vmem>>, vector<1x2x16x16xf32>
    %244 = vector.shape_cast %243 : vector<1x2x16x16xf32> to vector<2x16x16xf32>
    %245 = vector.broadcast %242 : f32 to vector<2x16x16xf32>
    %246 = arith.mulf %245, %244 : vector<2x16x16xf32>
    %247 = arith.addf %241, %246 : vector<2x16x16xf32>
    %c39 = arith.constant 39 : index
    %248 = memref.load %arg2[%c39] : memref<98xf32, #tpu.memory_space<smem>>
    %c0_176 = arith.constant 0 : index
    %c0_177 = arith.constant 0 : index
    %c5_178 = arith.constant 5 : index
    %c4_179 = arith.constant 4 : index
    %249 = vector.load %arg4[%c0_176, %c0_177, %c5_178, %c4_179] : memref<2x2x22x22xf32, #tpu.memory_space<vmem>>, vector<1x2x16x16xf32>
    %250 = vector.shape_cast %249 : vector<1x2x16x16xf32> to vector<2x16x16xf32>
    %251 = vector.broadcast %248 : f32 to vector<2x16x16xf32>
    %252 = arith.mulf %251, %250 : vector<2x16x16xf32>
    %253 = arith.addf %247, %252 : vector<2x16x16xf32>
    %c40 = arith.constant 40 : index
    %254 = memref.load %arg2[%c40] : memref<98xf32, #tpu.memory_space<smem>>
    %c0_180 = arith.constant 0 : index
    %c0_181 = arith.constant 0 : index
    %c5_182 = arith.constant 5 : index
    %c5_183 = arith.constant 5 : index
    %255 = vector.load %arg4[%c0_180, %c0_181, %c5_182, %c5_183] : memref<2x2x22x22xf32, #tpu.memory_space<vmem>>, vector<1x2x16x16xf32>
    %256 = vector.shape_cast %255 : vector<1x2x16x16xf32> to vector<2x16x16xf32>
    %257 = vector.broadcast %254 : f32 to vector<2x16x16xf32>
    %258 = arith.mulf %257, %256 : vector<2x16x16xf32>
    %259 = arith.addf %253, %258 : vector<2x16x16xf32>
    %c41 = arith.constant 41 : index
    %260 = memref.load %arg2[%c41] : memref<98xf32, #tpu.memory_space<smem>>
    %c0_184 = arith.constant 0 : index
    %c0_185 = arith.constant 0 : index
    %c5_186 = arith.constant 5 : index
    %c6_187 = arith.constant 6 : index
    %261 = vector.load %arg4[%c0_184, %c0_185, %c5_186, %c6_187] : memref<2x2x22x22xf32, #tpu.memory_space<vmem>>, vector<1x2x16x16xf32>
    %262 = vector.shape_cast %261 : vector<1x2x16x16xf32> to vector<2x16x16xf32>
    %263 = vector.broadcast %260 : f32 to vector<2x16x16xf32>
    %264 = arith.mulf %263, %262 : vector<2x16x16xf32>
    %265 = arith.addf %259, %264 : vector<2x16x16xf32>
    %c42 = arith.constant 42 : index
    %266 = memref.load %arg2[%c42] : memref<98xf32, #tpu.memory_space<smem>>
    %c0_188 = arith.constant 0 : index
    %c0_189 = arith.constant 0 : index
    %c6_190 = arith.constant 6 : index
    %c0_191 = arith.constant 0 : index
    %267 = vector.load %arg4[%c0_188, %c0_189, %c6_190, %c0_191] : memref<2x2x22x22xf32, #tpu.memory_space<vmem>>, vector<1x2x16x16xf32>
    %268 = vector.shape_cast %267 : vector<1x2x16x16xf32> to vector<2x16x16xf32>
    %269 = vector.broadcast %266 : f32 to vector<2x16x16xf32>
    %270 = arith.mulf %269, %268 : vector<2x16x16xf32>
    %271 = arith.addf %265, %270 : vector<2x16x16xf32>
    %c43 = arith.constant 43 : index
    %272 = memref.load %arg2[%c43] : memref<98xf32, #tpu.memory_space<smem>>
    %c0_192 = arith.constant 0 : index
    %c0_193 = arith.constant 0 : index
    %c6_194 = arith.constant 6 : index
    %c1_195 = arith.constant 1 : index
    %273 = vector.load %arg4[%c0_192, %c0_193, %c6_194, %c1_195] : memref<2x2x22x22xf32, #tpu.memory_space<vmem>>, vector<1x2x16x16xf32>
    %274 = vector.shape_cast %273 : vector<1x2x16x16xf32> to vector<2x16x16xf32>
    %275 = vector.broadcast %272 : f32 to vector<2x16x16xf32>
    %276 = arith.mulf %275, %274 : vector<2x16x16xf32>
    %277 = arith.addf %271, %276 : vector<2x16x16xf32>
    %c44 = arith.constant 44 : index
    %278 = memref.load %arg2[%c44] : memref<98xf32, #tpu.memory_space<smem>>
    %c0_196 = arith.constant 0 : index
    %c0_197 = arith.constant 0 : index
    %c6_198 = arith.constant 6 : index
    %c2_199 = arith.constant 2 : index
    %279 = vector.load %arg4[%c0_196, %c0_197, %c6_198, %c2_199] : memref<2x2x22x22xf32, #tpu.memory_space<vmem>>, vector<1x2x16x16xf32>
    %280 = vector.shape_cast %279 : vector<1x2x16x16xf32> to vector<2x16x16xf32>
    %281 = vector.broadcast %278 : f32 to vector<2x16x16xf32>
    %282 = arith.mulf %281, %280 : vector<2x16x16xf32>
    %283 = arith.addf %277, %282 : vector<2x16x16xf32>
    %c45 = arith.constant 45 : index
    %284 = memref.load %arg2[%c45] : memref<98xf32, #tpu.memory_space<smem>>
    %c0_200 = arith.constant 0 : index
    %c0_201 = arith.constant 0 : index
    %c6_202 = arith.constant 6 : index
    %c3_203 = arith.constant 3 : index
    %285 = vector.load %arg4[%c0_200, %c0_201, %c6_202, %c3_203] : memref<2x2x22x22xf32, #tpu.memory_space<vmem>>, vector<1x2x16x16xf32>
    %286 = vector.shape_cast %285 : vector<1x2x16x16xf32> to vector<2x16x16xf32>
    %287 = vector.broadcast %284 : f32 to vector<2x16x16xf32>
    %288 = arith.mulf %287, %286 : vector<2x16x16xf32>
    %289 = arith.addf %283, %288 : vector<2x16x16xf32>
    %c46 = arith.constant 46 : index
    %290 = memref.load %arg2[%c46] : memref<98xf32, #tpu.memory_space<smem>>
    %c0_204 = arith.constant 0 : index
    %c0_205 = arith.constant 0 : index
    %c6_206 = arith.constant 6 : index
    %c4_207 = arith.constant 4 : index
    %291 = vector.load %arg4[%c0_204, %c0_205, %c6_206, %c4_207] : memref<2x2x22x22xf32, #tpu.memory_space<vmem>>, vector<1x2x16x16xf32>
    %292 = vector.shape_cast %291 : vector<1x2x16x16xf32> to vector<2x16x16xf32>
    %293 = vector.broadcast %290 : f32 to vector<2x16x16xf32>
    %294 = arith.mulf %293, %292 : vector<2x16x16xf32>
    %295 = arith.addf %289, %294 : vector<2x16x16xf32>
    %c47 = arith.constant 47 : index
    %296 = memref.load %arg2[%c47] : memref<98xf32, #tpu.memory_space<smem>>
    %c0_208 = arith.constant 0 : index
    %c0_209 = arith.constant 0 : index
    %c6_210 = arith.constant 6 : index
    %c5_211 = arith.constant 5 : index
    %297 = vector.load %arg4[%c0_208, %c0_209, %c6_210, %c5_211] : memref<2x2x22x22xf32, #tpu.memory_space<vmem>>, vector<1x2x16x16xf32>
    %298 = vector.shape_cast %297 : vector<1x2x16x16xf32> to vector<2x16x16xf32>
    %299 = vector.broadcast %296 : f32 to vector<2x16x16xf32>
    %300 = arith.mulf %299, %298 : vector<2x16x16xf32>
    %301 = arith.addf %295, %300 : vector<2x16x16xf32>
    %c48 = arith.constant 48 : index
    %302 = memref.load %arg2[%c48] : memref<98xf32, #tpu.memory_space<smem>>
    %c0_212 = arith.constant 0 : index
    %c0_213 = arith.constant 0 : index
    %c6_214 = arith.constant 6 : index
    %c6_215 = arith.constant 6 : index
    %303 = vector.load %arg4[%c0_212, %c0_213, %c6_214, %c6_215] : memref<2x2x22x22xf32, #tpu.memory_space<vmem>>, vector<1x2x16x16xf32>
    %304 = vector.shape_cast %303 : vector<1x2x16x16xf32> to vector<2x16x16xf32>
    %305 = vector.broadcast %302 : f32 to vector<2x16x16xf32>
    %306 = arith.mulf %305, %304 : vector<2x16x16xf32>
    %307 = arith.addf %301, %306 : vector<2x16x16xf32>
    %c49 = arith.constant 49 : index
    %308 = memref.load %arg2[%c49] : memref<98xf32, #tpu.memory_space<smem>>
    %c1_216 = arith.constant 1 : index
    %c0_217 = arith.constant 0 : index
    %c0_218 = arith.constant 0 : index
    %c0_219 = arith.constant 0 : index
    %309 = vector.load %arg4[%c1_216, %c0_217, %c0_218, %c0_219] : memref<2x2x22x22xf32, #tpu.memory_space<vmem>>, vector<1x2x16x16xf32>
    %310 = vector.shape_cast %309 : vector<1x2x16x16xf32> to vector<2x16x16xf32>
    %311 = vector.broadcast %308 : f32 to vector<2x16x16xf32>
    %312 = arith.mulf %311, %310 : vector<2x16x16xf32>
    %313 = arith.addf %307, %312 : vector<2x16x16xf32>
    %c50 = arith.constant 50 : index
    %314 = memref.load %arg2[%c50] : memref<98xf32, #tpu.memory_space<smem>>
    %c1_220 = arith.constant 1 : index
    %c0_221 = arith.constant 0 : index
    %c0_222 = arith.constant 0 : index
    %c1_223 = arith.constant 1 : index
    %315 = vector.load %arg4[%c1_220, %c0_221, %c0_222, %c1_223] : memref<2x2x22x22xf32, #tpu.memory_space<vmem>>, vector<1x2x16x16xf32>
    %316 = vector.shape_cast %315 : vector<1x2x16x16xf32> to vector<2x16x16xf32>
    %317 = vector.broadcast %314 : f32 to vector<2x16x16xf32>
    %318 = arith.mulf %317, %316 : vector<2x16x16xf32>
    %319 = arith.addf %313, %318 : vector<2x16x16xf32>
    %c51 = arith.constant 51 : index
    %320 = memref.load %arg2[%c51] : memref<98xf32, #tpu.memory_space<smem>>
    %c1_224 = arith.constant 1 : index
    %c0_225 = arith.constant 0 : index
    %c0_226 = arith.constant 0 : index
    %c2_227 = arith.constant 2 : index
    %321 = vector.load %arg4[%c1_224, %c0_225, %c0_226, %c2_227] : memref<2x2x22x22xf32, #tpu.memory_space<vmem>>, vector<1x2x16x16xf32>
    %322 = vector.shape_cast %321 : vector<1x2x16x16xf32> to vector<2x16x16xf32>
    %323 = vector.broadcast %320 : f32 to vector<2x16x16xf32>
    %324 = arith.mulf %323, %322 : vector<2x16x16xf32>
    %325 = arith.addf %319, %324 : vector<2x16x16xf32>
    %c52 = arith.constant 52 : index
    %326 = memref.load %arg2[%c52] : memref<98xf32, #tpu.memory_space<smem>>
    %c1_228 = arith.constant 1 : index
    %c0_229 = arith.constant 0 : index
    %c0_230 = arith.constant 0 : index
    %c3_231 = arith.constant 3 : index
    %327 = vector.load %arg4[%c1_228, %c0_229, %c0_230, %c3_231] : memref<2x2x22x22xf32, #tpu.memory_space<vmem>>, vector<1x2x16x16xf32>
    %328 = vector.shape_cast %327 : vector<1x2x16x16xf32> to vector<2x16x16xf32>
    %329 = vector.broadcast %326 : f32 to vector<2x16x16xf32>
    %330 = arith.mulf %329, %328 : vector<2x16x16xf32>
    %331 = arith.addf %325, %330 : vector<2x16x16xf32>
    %c53 = arith.constant 53 : index
    %332 = memref.load %arg2[%c53] : memref<98xf32, #tpu.memory_space<smem>>
    %c1_232 = arith.constant 1 : index
    %c0_233 = arith.constant 0 : index
    %c0_234 = arith.constant 0 : index
    %c4_235 = arith.constant 4 : index
    %333 = vector.load %arg4[%c1_232, %c0_233, %c0_234, %c4_235] : memref<2x2x22x22xf32, #tpu.memory_space<vmem>>, vector<1x2x16x16xf32>
    %334 = vector.shape_cast %333 : vector<1x2x16x16xf32> to vector<2x16x16xf32>
    %335 = vector.broadcast %332 : f32 to vector<2x16x16xf32>
    %336 = arith.mulf %335, %334 : vector<2x16x16xf32>
    %337 = arith.addf %331, %336 : vector<2x16x16xf32>
    %c54 = arith.constant 54 : index
    %338 = memref.load %arg2[%c54] : memref<98xf32, #tpu.memory_space<smem>>
    %c1_236 = arith.constant 1 : index
    %c0_237 = arith.constant 0 : index
    %c0_238 = arith.constant 0 : index
    %c5_239 = arith.constant 5 : index
    %339 = vector.load %arg4[%c1_236, %c0_237, %c0_238, %c5_239] : memref<2x2x22x22xf32, #tpu.memory_space<vmem>>, vector<1x2x16x16xf32>
    %340 = vector.shape_cast %339 : vector<1x2x16x16xf32> to vector<2x16x16xf32>
    %341 = vector.broadcast %338 : f32 to vector<2x16x16xf32>
    %342 = arith.mulf %341, %340 : vector<2x16x16xf32>
    %343 = arith.addf %337, %342 : vector<2x16x16xf32>
    %c55 = arith.constant 55 : index
    %344 = memref.load %arg2[%c55] : memref<98xf32, #tpu.memory_space<smem>>
    %c1_240 = arith.constant 1 : index
    %c0_241 = arith.constant 0 : index
    %c0_242 = arith.constant 0 : index
    %c6_243 = arith.constant 6 : index
    %345 = vector.load %arg4[%c1_240, %c0_241, %c0_242, %c6_243] : memref<2x2x22x22xf32, #tpu.memory_space<vmem>>, vector<1x2x16x16xf32>
    %346 = vector.shape_cast %345 : vector<1x2x16x16xf32> to vector<2x16x16xf32>
    %347 = vector.broadcast %344 : f32 to vector<2x16x16xf32>
    %348 = arith.mulf %347, %346 : vector<2x16x16xf32>
    %349 = arith.addf %343, %348 : vector<2x16x16xf32>
    %c56 = arith.constant 56 : index
    %350 = memref.load %arg2[%c56] : memref<98xf32, #tpu.memory_space<smem>>
    %c1_244 = arith.constant 1 : index
    %c0_245 = arith.constant 0 : index
    %c1_246 = arith.constant 1 : index
    %c0_247 = arith.constant 0 : index
    %351 = vector.load %arg4[%c1_244, %c0_245, %c1_246, %c0_247] : memref<2x2x22x22xf32, #tpu.memory_space<vmem>>, vector<1x2x16x16xf32>
    %352 = vector.shape_cast %351 : vector<1x2x16x16xf32> to vector<2x16x16xf32>
    %353 = vector.broadcast %350 : f32 to vector<2x16x16xf32>
    %354 = arith.mulf %353, %352 : vector<2x16x16xf32>
    %355 = arith.addf %349, %354 : vector<2x16x16xf32>
    %c57 = arith.constant 57 : index
    %356 = memref.load %arg2[%c57] : memref<98xf32, #tpu.memory_space<smem>>
    %c1_248 = arith.constant 1 : index
    %c0_249 = arith.constant 0 : index
    %c1_250 = arith.constant 1 : index
    %c1_251 = arith.constant 1 : index
    %357 = vector.load %arg4[%c1_248, %c0_249, %c1_250, %c1_251] : memref<2x2x22x22xf32, #tpu.memory_space<vmem>>, vector<1x2x16x16xf32>
    %358 = vector.shape_cast %357 : vector<1x2x16x16xf32> to vector<2x16x16xf32>
    %359 = vector.broadcast %356 : f32 to vector<2x16x16xf32>
    %360 = arith.mulf %359, %358 : vector<2x16x16xf32>
    %361 = arith.addf %355, %360 : vector<2x16x16xf32>
    %c58 = arith.constant 58 : index
    %362 = memref.load %arg2[%c58] : memref<98xf32, #tpu.memory_space<smem>>
    %c1_252 = arith.constant 1 : index
    %c0_253 = arith.constant 0 : index
    %c1_254 = arith.constant 1 : index
    %c2_255 = arith.constant 2 : index
    %363 = vector.load %arg4[%c1_252, %c0_253, %c1_254, %c2_255] : memref<2x2x22x22xf32, #tpu.memory_space<vmem>>, vector<1x2x16x16xf32>
    %364 = vector.shape_cast %363 : vector<1x2x16x16xf32> to vector<2x16x16xf32>
    %365 = vector.broadcast %362 : f32 to vector<2x16x16xf32>
    %366 = arith.mulf %365, %364 : vector<2x16x16xf32>
    %367 = arith.addf %361, %366 : vector<2x16x16xf32>
    %c59 = arith.constant 59 : index
    %368 = memref.load %arg2[%c59] : memref<98xf32, #tpu.memory_space<smem>>
    %c1_256 = arith.constant 1 : index
    %c0_257 = arith.constant 0 : index
    %c1_258 = arith.constant 1 : index
    %c3_259 = arith.constant 3 : index
    %369 = vector.load %arg4[%c1_256, %c0_257, %c1_258, %c3_259] : memref<2x2x22x22xf32, #tpu.memory_space<vmem>>, vector<1x2x16x16xf32>
    %370 = vector.shape_cast %369 : vector<1x2x16x16xf32> to vector<2x16x16xf32>
    %371 = vector.broadcast %368 : f32 to vector<2x16x16xf32>
    %372 = arith.mulf %371, %370 : vector<2x16x16xf32>
    %373 = arith.addf %367, %372 : vector<2x16x16xf32>
    %c60 = arith.constant 60 : index
    %374 = memref.load %arg2[%c60] : memref<98xf32, #tpu.memory_space<smem>>
    %c1_260 = arith.constant 1 : index
    %c0_261 = arith.constant 0 : index
    %c1_262 = arith.constant 1 : index
    %c4_263 = arith.constant 4 : index
    %375 = vector.load %arg4[%c1_260, %c0_261, %c1_262, %c4_263] : memref<2x2x22x22xf32, #tpu.memory_space<vmem>>, vector<1x2x16x16xf32>
    %376 = vector.shape_cast %375 : vector<1x2x16x16xf32> to vector<2x16x16xf32>
    %377 = vector.broadcast %374 : f32 to vector<2x16x16xf32>
    %378 = arith.mulf %377, %376 : vector<2x16x16xf32>
    %379 = arith.addf %373, %378 : vector<2x16x16xf32>
    %c61 = arith.constant 61 : index
    %380 = memref.load %arg2[%c61] : memref<98xf32, #tpu.memory_space<smem>>
    %c1_264 = arith.constant 1 : index
    %c0_265 = arith.constant 0 : index
    %c1_266 = arith.constant 1 : index
    %c5_267 = arith.constant 5 : index
    %381 = vector.load %arg4[%c1_264, %c0_265, %c1_266, %c5_267] : memref<2x2x22x22xf32, #tpu.memory_space<vmem>>, vector<1x2x16x16xf32>
    %382 = vector.shape_cast %381 : vector<1x2x16x16xf32> to vector<2x16x16xf32>
    %383 = vector.broadcast %380 : f32 to vector<2x16x16xf32>
    %384 = arith.mulf %383, %382 : vector<2x16x16xf32>
    %385 = arith.addf %379, %384 : vector<2x16x16xf32>
    %c62 = arith.constant 62 : index
    %386 = memref.load %arg2[%c62] : memref<98xf32, #tpu.memory_space<smem>>
    %c1_268 = arith.constant 1 : index
    %c0_269 = arith.constant 0 : index
    %c1_270 = arith.constant 1 : index
    %c6_271 = arith.constant 6 : index
    %387 = vector.load %arg4[%c1_268, %c0_269, %c1_270, %c6_271] : memref<2x2x22x22xf32, #tpu.memory_space<vmem>>, vector<1x2x16x16xf32>
    %388 = vector.shape_cast %387 : vector<1x2x16x16xf32> to vector<2x16x16xf32>
    %389 = vector.broadcast %386 : f32 to vector<2x16x16xf32>
    %390 = arith.mulf %389, %388 : vector<2x16x16xf32>
    %391 = arith.addf %385, %390 : vector<2x16x16xf32>
    %c63 = arith.constant 63 : index
    %392 = memref.load %arg2[%c63] : memref<98xf32, #tpu.memory_space<smem>>
    %c1_272 = arith.constant 1 : index
    %c0_273 = arith.constant 0 : index
    %c2_274 = arith.constant 2 : index
    %c0_275 = arith.constant 0 : index
    %393 = vector.load %arg4[%c1_272, %c0_273, %c2_274, %c0_275] : memref<2x2x22x22xf32, #tpu.memory_space<vmem>>, vector<1x2x16x16xf32>
    %394 = vector.shape_cast %393 : vector<1x2x16x16xf32> to vector<2x16x16xf32>
    %395 = vector.broadcast %392 : f32 to vector<2x16x16xf32>
    %396 = arith.mulf %395, %394 : vector<2x16x16xf32>
    %397 = arith.addf %391, %396 : vector<2x16x16xf32>
    %c64 = arith.constant 64 : index
    %398 = memref.load %arg2[%c64] : memref<98xf32, #tpu.memory_space<smem>>
    %c1_276 = arith.constant 1 : index
    %c0_277 = arith.constant 0 : index
    %c2_278 = arith.constant 2 : index
    %c1_279 = arith.constant 1 : index
    %399 = vector.load %arg4[%c1_276, %c0_277, %c2_278, %c1_279] : memref<2x2x22x22xf32, #tpu.memory_space<vmem>>, vector<1x2x16x16xf32>
    %400 = vector.shape_cast %399 : vector<1x2x16x16xf32> to vector<2x16x16xf32>
    %401 = vector.broadcast %398 : f32 to vector<2x16x16xf32>
    %402 = arith.mulf %401, %400 : vector<2x16x16xf32>
    %403 = arith.addf %397, %402 : vector<2x16x16xf32>
    %c65 = arith.constant 65 : index
    %404 = memref.load %arg2[%c65] : memref<98xf32, #tpu.memory_space<smem>>
    %c1_280 = arith.constant 1 : index
    %c0_281 = arith.constant 0 : index
    %c2_282 = arith.constant 2 : index
    %c2_283 = arith.constant 2 : index
    %405 = vector.load %arg4[%c1_280, %c0_281, %c2_282, %c2_283] : memref<2x2x22x22xf32, #tpu.memory_space<vmem>>, vector<1x2x16x16xf32>
    %406 = vector.shape_cast %405 : vector<1x2x16x16xf32> to vector<2x16x16xf32>
    %407 = vector.broadcast %404 : f32 to vector<2x16x16xf32>
    %408 = arith.mulf %407, %406 : vector<2x16x16xf32>
    %409 = arith.addf %403, %408 : vector<2x16x16xf32>
    %c66 = arith.constant 66 : index
    %410 = memref.load %arg2[%c66] : memref<98xf32, #tpu.memory_space<smem>>
    %c1_284 = arith.constant 1 : index
    %c0_285 = arith.constant 0 : index
    %c2_286 = arith.constant 2 : index
    %c3_287 = arith.constant 3 : index
    %411 = vector.load %arg4[%c1_284, %c0_285, %c2_286, %c3_287] : memref<2x2x22x22xf32, #tpu.memory_space<vmem>>, vector<1x2x16x16xf32>
    %412 = vector.shape_cast %411 : vector<1x2x16x16xf32> to vector<2x16x16xf32>
    %413 = vector.broadcast %410 : f32 to vector<2x16x16xf32>
    %414 = arith.mulf %413, %412 : vector<2x16x16xf32>
    %415 = arith.addf %409, %414 : vector<2x16x16xf32>
    %c67 = arith.constant 67 : index
    %416 = memref.load %arg2[%c67] : memref<98xf32, #tpu.memory_space<smem>>
    %c1_288 = arith.constant 1 : index
    %c0_289 = arith.constant 0 : index
    %c2_290 = arith.constant 2 : index
    %c4_291 = arith.constant 4 : index
    %417 = vector.load %arg4[%c1_288, %c0_289, %c2_290, %c4_291] : memref<2x2x22x22xf32, #tpu.memory_space<vmem>>, vector<1x2x16x16xf32>
    %418 = vector.shape_cast %417 : vector<1x2x16x16xf32> to vector<2x16x16xf32>
    %419 = vector.broadcast %416 : f32 to vector<2x16x16xf32>
    %420 = arith.mulf %419, %418 : vector<2x16x16xf32>
    %421 = arith.addf %415, %420 : vector<2x16x16xf32>
    %c68 = arith.constant 68 : index
    %422 = memref.load %arg2[%c68] : memref<98xf32, #tpu.memory_space<smem>>
    %c1_292 = arith.constant 1 : index
    %c0_293 = arith.constant 0 : index
    %c2_294 = arith.constant 2 : index
    %c5_295 = arith.constant 5 : index
    %423 = vector.load %arg4[%c1_292, %c0_293, %c2_294, %c5_295] : memref<2x2x22x22xf32, #tpu.memory_space<vmem>>, vector<1x2x16x16xf32>
    %424 = vector.shape_cast %423 : vector<1x2x16x16xf32> to vector<2x16x16xf32>
    %425 = vector.broadcast %422 : f32 to vector<2x16x16xf32>
    %426 = arith.mulf %425, %424 : vector<2x16x16xf32>
    %427 = arith.addf %421, %426 : vector<2x16x16xf32>
    %c69 = arith.constant 69 : index
    %428 = memref.load %arg2[%c69] : memref<98xf32, #tpu.memory_space<smem>>
    %c1_296 = arith.constant 1 : index
    %c0_297 = arith.constant 0 : index
    %c2_298 = arith.constant 2 : index
    %c6_299 = arith.constant 6 : index
    %429 = vector.load %arg4[%c1_296, %c0_297, %c2_298, %c6_299] : memref<2x2x22x22xf32, #tpu.memory_space<vmem>>, vector<1x2x16x16xf32>
    %430 = vector.shape_cast %429 : vector<1x2x16x16xf32> to vector<2x16x16xf32>
    %431 = vector.broadcast %428 : f32 to vector<2x16x16xf32>
    %432 = arith.mulf %431, %430 : vector<2x16x16xf32>
    %433 = arith.addf %427, %432 : vector<2x16x16xf32>
    %c70 = arith.constant 70 : index
    %434 = memref.load %arg2[%c70] : memref<98xf32, #tpu.memory_space<smem>>
    %c1_300 = arith.constant 1 : index
    %c0_301 = arith.constant 0 : index
    %c3_302 = arith.constant 3 : index
    %c0_303 = arith.constant 0 : index
    %435 = vector.load %arg4[%c1_300, %c0_301, %c3_302, %c0_303] : memref<2x2x22x22xf32, #tpu.memory_space<vmem>>, vector<1x2x16x16xf32>
    %436 = vector.shape_cast %435 : vector<1x2x16x16xf32> to vector<2x16x16xf32>
    %437 = vector.broadcast %434 : f32 to vector<2x16x16xf32>
    %438 = arith.mulf %437, %436 : vector<2x16x16xf32>
    %439 = arith.addf %433, %438 : vector<2x16x16xf32>
    %c71 = arith.constant 71 : index
    %440 = memref.load %arg2[%c71] : memref<98xf32, #tpu.memory_space<smem>>
    %c1_304 = arith.constant 1 : index
    %c0_305 = arith.constant 0 : index
    %c3_306 = arith.constant 3 : index
    %c1_307 = arith.constant 1 : index
    %441 = vector.load %arg4[%c1_304, %c0_305, %c3_306, %c1_307] : memref<2x2x22x22xf32, #tpu.memory_space<vmem>>, vector<1x2x16x16xf32>
    %442 = vector.shape_cast %441 : vector<1x2x16x16xf32> to vector<2x16x16xf32>
    %443 = vector.broadcast %440 : f32 to vector<2x16x16xf32>
    %444 = arith.mulf %443, %442 : vector<2x16x16xf32>
    %445 = arith.addf %439, %444 : vector<2x16x16xf32>
    %c72 = arith.constant 72 : index
    %446 = memref.load %arg2[%c72] : memref<98xf32, #tpu.memory_space<smem>>
    %c1_308 = arith.constant 1 : index
    %c0_309 = arith.constant 0 : index
    %c3_310 = arith.constant 3 : index
    %c2_311 = arith.constant 2 : index
    %447 = vector.load %arg4[%c1_308, %c0_309, %c3_310, %c2_311] : memref<2x2x22x22xf32, #tpu.memory_space<vmem>>, vector<1x2x16x16xf32>
    %448 = vector.shape_cast %447 : vector<1x2x16x16xf32> to vector<2x16x16xf32>
    %449 = vector.broadcast %446 : f32 to vector<2x16x16xf32>
    %450 = arith.mulf %449, %448 : vector<2x16x16xf32>
    %451 = arith.addf %445, %450 : vector<2x16x16xf32>
    %c73 = arith.constant 73 : index
    %452 = memref.load %arg2[%c73] : memref<98xf32, #tpu.memory_space<smem>>
    %c1_312 = arith.constant 1 : index
    %c0_313 = arith.constant 0 : index
    %c3_314 = arith.constant 3 : index
    %c3_315 = arith.constant 3 : index
    %453 = vector.load %arg4[%c1_312, %c0_313, %c3_314, %c3_315] : memref<2x2x22x22xf32, #tpu.memory_space<vmem>>, vector<1x2x16x16xf32>
    %454 = vector.shape_cast %453 : vector<1x2x16x16xf32> to vector<2x16x16xf32>
    %455 = vector.broadcast %452 : f32 to vector<2x16x16xf32>
    %456 = arith.mulf %455, %454 : vector<2x16x16xf32>
    %457 = arith.addf %451, %456 : vector<2x16x16xf32>
    %c74 = arith.constant 74 : index
    %458 = memref.load %arg2[%c74] : memref<98xf32, #tpu.memory_space<smem>>
    %c1_316 = arith.constant 1 : index
    %c0_317 = arith.constant 0 : index
    %c3_318 = arith.constant 3 : index
    %c4_319 = arith.constant 4 : index
    %459 = vector.load %arg4[%c1_316, %c0_317, %c3_318, %c4_319] : memref<2x2x22x22xf32, #tpu.memory_space<vmem>>, vector<1x2x16x16xf32>
    %460 = vector.shape_cast %459 : vector<1x2x16x16xf32> to vector<2x16x16xf32>
    %461 = vector.broadcast %458 : f32 to vector<2x16x16xf32>
    %462 = arith.mulf %461, %460 : vector<2x16x16xf32>
    %463 = arith.addf %457, %462 : vector<2x16x16xf32>
    %c75 = arith.constant 75 : index
    %464 = memref.load %arg2[%c75] : memref<98xf32, #tpu.memory_space<smem>>
    %c1_320 = arith.constant 1 : index
    %c0_321 = arith.constant 0 : index
    %c3_322 = arith.constant 3 : index
    %c5_323 = arith.constant 5 : index
    %465 = vector.load %arg4[%c1_320, %c0_321, %c3_322, %c5_323] : memref<2x2x22x22xf32, #tpu.memory_space<vmem>>, vector<1x2x16x16xf32>
    %466 = vector.shape_cast %465 : vector<1x2x16x16xf32> to vector<2x16x16xf32>
    %467 = vector.broadcast %464 : f32 to vector<2x16x16xf32>
    %468 = arith.mulf %467, %466 : vector<2x16x16xf32>
    %469 = arith.addf %463, %468 : vector<2x16x16xf32>
    %c76 = arith.constant 76 : index
    %470 = memref.load %arg2[%c76] : memref<98xf32, #tpu.memory_space<smem>>
    %c1_324 = arith.constant 1 : index
    %c0_325 = arith.constant 0 : index
    %c3_326 = arith.constant 3 : index
    %c6_327 = arith.constant 6 : index
    %471 = vector.load %arg4[%c1_324, %c0_325, %c3_326, %c6_327] : memref<2x2x22x22xf32, #tpu.memory_space<vmem>>, vector<1x2x16x16xf32>
    %472 = vector.shape_cast %471 : vector<1x2x16x16xf32> to vector<2x16x16xf32>
    %473 = vector.broadcast %470 : f32 to vector<2x16x16xf32>
    %474 = arith.mulf %473, %472 : vector<2x16x16xf32>
    %475 = arith.addf %469, %474 : vector<2x16x16xf32>
    %c77 = arith.constant 77 : index
    %476 = memref.load %arg2[%c77] : memref<98xf32, #tpu.memory_space<smem>>
    %c1_328 = arith.constant 1 : index
    %c0_329 = arith.constant 0 : index
    %c4_330 = arith.constant 4 : index
    %c0_331 = arith.constant 0 : index
    %477 = vector.load %arg4[%c1_328, %c0_329, %c4_330, %c0_331] : memref<2x2x22x22xf32, #tpu.memory_space<vmem>>, vector<1x2x16x16xf32>
    %478 = vector.shape_cast %477 : vector<1x2x16x16xf32> to vector<2x16x16xf32>
    %479 = vector.broadcast %476 : f32 to vector<2x16x16xf32>
    %480 = arith.mulf %479, %478 : vector<2x16x16xf32>
    %481 = arith.addf %475, %480 : vector<2x16x16xf32>
    %c78 = arith.constant 78 : index
    %482 = memref.load %arg2[%c78] : memref<98xf32, #tpu.memory_space<smem>>
    %c1_332 = arith.constant 1 : index
    %c0_333 = arith.constant 0 : index
    %c4_334 = arith.constant 4 : index
    %c1_335 = arith.constant 1 : index
    %483 = vector.load %arg4[%c1_332, %c0_333, %c4_334, %c1_335] : memref<2x2x22x22xf32, #tpu.memory_space<vmem>>, vector<1x2x16x16xf32>
    %484 = vector.shape_cast %483 : vector<1x2x16x16xf32> to vector<2x16x16xf32>
    %485 = vector.broadcast %482 : f32 to vector<2x16x16xf32>
    %486 = arith.mulf %485, %484 : vector<2x16x16xf32>
    %487 = arith.addf %481, %486 : vector<2x16x16xf32>
    %c79 = arith.constant 79 : index
    %488 = memref.load %arg2[%c79] : memref<98xf32, #tpu.memory_space<smem>>
    %c1_336 = arith.constant 1 : index
    %c0_337 = arith.constant 0 : index
    %c4_338 = arith.constant 4 : index
    %c2_339 = arith.constant 2 : index
    %489 = vector.load %arg4[%c1_336, %c0_337, %c4_338, %c2_339] : memref<2x2x22x22xf32, #tpu.memory_space<vmem>>, vector<1x2x16x16xf32>
    %490 = vector.shape_cast %489 : vector<1x2x16x16xf32> to vector<2x16x16xf32>
    %491 = vector.broadcast %488 : f32 to vector<2x16x16xf32>
    %492 = arith.mulf %491, %490 : vector<2x16x16xf32>
    %493 = arith.addf %487, %492 : vector<2x16x16xf32>
    %c80 = arith.constant 80 : index
    %494 = memref.load %arg2[%c80] : memref<98xf32, #tpu.memory_space<smem>>
    %c1_340 = arith.constant 1 : index
    %c0_341 = arith.constant 0 : index
    %c4_342 = arith.constant 4 : index
    %c3_343 = arith.constant 3 : index
    %495 = vector.load %arg4[%c1_340, %c0_341, %c4_342, %c3_343] : memref<2x2x22x22xf32, #tpu.memory_space<vmem>>, vector<1x2x16x16xf32>
    %496 = vector.shape_cast %495 : vector<1x2x16x16xf32> to vector<2x16x16xf32>
    %497 = vector.broadcast %494 : f32 to vector<2x16x16xf32>
    %498 = arith.mulf %497, %496 : vector<2x16x16xf32>
    %499 = arith.addf %493, %498 : vector<2x16x16xf32>
    %c81 = arith.constant 81 : index
    %500 = memref.load %arg2[%c81] : memref<98xf32, #tpu.memory_space<smem>>
    %c1_344 = arith.constant 1 : index
    %c0_345 = arith.constant 0 : index
    %c4_346 = arith.constant 4 : index
    %c4_347 = arith.constant 4 : index
    %501 = vector.load %arg4[%c1_344, %c0_345, %c4_346, %c4_347] : memref<2x2x22x22xf32, #tpu.memory_space<vmem>>, vector<1x2x16x16xf32>
    %502 = vector.shape_cast %501 : vector<1x2x16x16xf32> to vector<2x16x16xf32>
    %503 = vector.broadcast %500 : f32 to vector<2x16x16xf32>
    %504 = arith.mulf %503, %502 : vector<2x16x16xf32>
    %505 = arith.addf %499, %504 : vector<2x16x16xf32>
    %c82 = arith.constant 82 : index
    %506 = memref.load %arg2[%c82] : memref<98xf32, #tpu.memory_space<smem>>
    %c1_348 = arith.constant 1 : index
    %c0_349 = arith.constant 0 : index
    %c4_350 = arith.constant 4 : index
    %c5_351 = arith.constant 5 : index
    %507 = vector.load %arg4[%c1_348, %c0_349, %c4_350, %c5_351] : memref<2x2x22x22xf32, #tpu.memory_space<vmem>>, vector<1x2x16x16xf32>
    %508 = vector.shape_cast %507 : vector<1x2x16x16xf32> to vector<2x16x16xf32>
    %509 = vector.broadcast %506 : f32 to vector<2x16x16xf32>
    %510 = arith.mulf %509, %508 : vector<2x16x16xf32>
    %511 = arith.addf %505, %510 : vector<2x16x16xf32>
    %c83 = arith.constant 83 : index
    %512 = memref.load %arg2[%c83] : memref<98xf32, #tpu.memory_space<smem>>
    %c1_352 = arith.constant 1 : index
    %c0_353 = arith.constant 0 : index
    %c4_354 = arith.constant 4 : index
    %c6_355 = arith.constant 6 : index
    %513 = vector.load %arg4[%c1_352, %c0_353, %c4_354, %c6_355] : memref<2x2x22x22xf32, #tpu.memory_space<vmem>>, vector<1x2x16x16xf32>
    %514 = vector.shape_cast %513 : vector<1x2x16x16xf32> to vector<2x16x16xf32>
    %515 = vector.broadcast %512 : f32 to vector<2x16x16xf32>
    %516 = arith.mulf %515, %514 : vector<2x16x16xf32>
    %517 = arith.addf %511, %516 : vector<2x16x16xf32>
    %c84 = arith.constant 84 : index
    %518 = memref.load %arg2[%c84] : memref<98xf32, #tpu.memory_space<smem>>
    %c1_356 = arith.constant 1 : index
    %c0_357 = arith.constant 0 : index
    %c5_358 = arith.constant 5 : index
    %c0_359 = arith.constant 0 : index
    %519 = vector.load %arg4[%c1_356, %c0_357, %c5_358, %c0_359] : memref<2x2x22x22xf32, #tpu.memory_space<vmem>>, vector<1x2x16x16xf32>
    %520 = vector.shape_cast %519 : vector<1x2x16x16xf32> to vector<2x16x16xf32>
    %521 = vector.broadcast %518 : f32 to vector<2x16x16xf32>
    %522 = arith.mulf %521, %520 : vector<2x16x16xf32>
    %523 = arith.addf %517, %522 : vector<2x16x16xf32>
    %c85 = arith.constant 85 : index
    %524 = memref.load %arg2[%c85] : memref<98xf32, #tpu.memory_space<smem>>
    %c1_360 = arith.constant 1 : index
    %c0_361 = arith.constant 0 : index
    %c5_362 = arith.constant 5 : index
    %c1_363 = arith.constant 1 : index
    %525 = vector.load %arg4[%c1_360, %c0_361, %c5_362, %c1_363] : memref<2x2x22x22xf32, #tpu.memory_space<vmem>>, vector<1x2x16x16xf32>
    %526 = vector.shape_cast %525 : vector<1x2x16x16xf32> to vector<2x16x16xf32>
    %527 = vector.broadcast %524 : f32 to vector<2x16x16xf32>
    %528 = arith.mulf %527, %526 : vector<2x16x16xf32>
    %529 = arith.addf %523, %528 : vector<2x16x16xf32>
    %c86 = arith.constant 86 : index
    %530 = memref.load %arg2[%c86] : memref<98xf32, #tpu.memory_space<smem>>
    %c1_364 = arith.constant 1 : index
    %c0_365 = arith.constant 0 : index
    %c5_366 = arith.constant 5 : index
    %c2_367 = arith.constant 2 : index
    %531 = vector.load %arg4[%c1_364, %c0_365, %c5_366, %c2_367] : memref<2x2x22x22xf32, #tpu.memory_space<vmem>>, vector<1x2x16x16xf32>
    %532 = vector.shape_cast %531 : vector<1x2x16x16xf32> to vector<2x16x16xf32>
    %533 = vector.broadcast %530 : f32 to vector<2x16x16xf32>
    %534 = arith.mulf %533, %532 : vector<2x16x16xf32>
    %535 = arith.addf %529, %534 : vector<2x16x16xf32>
    %c87 = arith.constant 87 : index
    %536 = memref.load %arg2[%c87] : memref<98xf32, #tpu.memory_space<smem>>
    %c1_368 = arith.constant 1 : index
    %c0_369 = arith.constant 0 : index
    %c5_370 = arith.constant 5 : index
    %c3_371 = arith.constant 3 : index
    %537 = vector.load %arg4[%c1_368, %c0_369, %c5_370, %c3_371] : memref<2x2x22x22xf32, #tpu.memory_space<vmem>>, vector<1x2x16x16xf32>
    %538 = vector.shape_cast %537 : vector<1x2x16x16xf32> to vector<2x16x16xf32>
    %539 = vector.broadcast %536 : f32 to vector<2x16x16xf32>
    %540 = arith.mulf %539, %538 : vector<2x16x16xf32>
    %541 = arith.addf %535, %540 : vector<2x16x16xf32>
    %c88 = arith.constant 88 : index
    %542 = memref.load %arg2[%c88] : memref<98xf32, #tpu.memory_space<smem>>
    %c1_372 = arith.constant 1 : index
    %c0_373 = arith.constant 0 : index
    %c5_374 = arith.constant 5 : index
    %c4_375 = arith.constant 4 : index
    %543 = vector.load %arg4[%c1_372, %c0_373, %c5_374, %c4_375] : memref<2x2x22x22xf32, #tpu.memory_space<vmem>>, vector<1x2x16x16xf32>
    %544 = vector.shape_cast %543 : vector<1x2x16x16xf32> to vector<2x16x16xf32>
    %545 = vector.broadcast %542 : f32 to vector<2x16x16xf32>
    %546 = arith.mulf %545, %544 : vector<2x16x16xf32>
    %547 = arith.addf %541, %546 : vector<2x16x16xf32>
    %c89 = arith.constant 89 : index
    %548 = memref.load %arg2[%c89] : memref<98xf32, #tpu.memory_space<smem>>
    %c1_376 = arith.constant 1 : index
    %c0_377 = arith.constant 0 : index
    %c5_378 = arith.constant 5 : index
    %c5_379 = arith.constant 5 : index
    %549 = vector.load %arg4[%c1_376, %c0_377, %c5_378, %c5_379] : memref<2x2x22x22xf32, #tpu.memory_space<vmem>>, vector<1x2x16x16xf32>
    %550 = vector.shape_cast %549 : vector<1x2x16x16xf32> to vector<2x16x16xf32>
    %551 = vector.broadcast %548 : f32 to vector<2x16x16xf32>
    %552 = arith.mulf %551, %550 : vector<2x16x16xf32>
    %553 = arith.addf %547, %552 : vector<2x16x16xf32>
    %c90 = arith.constant 90 : index
    %554 = memref.load %arg2[%c90] : memref<98xf32, #tpu.memory_space<smem>>
    %c1_380 = arith.constant 1 : index
    %c0_381 = arith.constant 0 : index
    %c5_382 = arith.constant 5 : index
    %c6_383 = arith.constant 6 : index
    %555 = vector.load %arg4[%c1_380, %c0_381, %c5_382, %c6_383] : memref<2x2x22x22xf32, #tpu.memory_space<vmem>>, vector<1x2x16x16xf32>
    %556 = vector.shape_cast %555 : vector<1x2x16x16xf32> to vector<2x16x16xf32>
    %557 = vector.broadcast %554 : f32 to vector<2x16x16xf32>
    %558 = arith.mulf %557, %556 : vector<2x16x16xf32>
    %559 = arith.addf %553, %558 : vector<2x16x16xf32>
    %c91 = arith.constant 91 : index
    %560 = memref.load %arg2[%c91] : memref<98xf32, #tpu.memory_space<smem>>
    %c1_384 = arith.constant 1 : index
    %c0_385 = arith.constant 0 : index
    %c6_386 = arith.constant 6 : index
    %c0_387 = arith.constant 0 : index
    %561 = vector.load %arg4[%c1_384, %c0_385, %c6_386, %c0_387] : memref<2x2x22x22xf32, #tpu.memory_space<vmem>>, vector<1x2x16x16xf32>
    %562 = vector.shape_cast %561 : vector<1x2x16x16xf32> to vector<2x16x16xf32>
    %563 = vector.broadcast %560 : f32 to vector<2x16x16xf32>
    %564 = arith.mulf %563, %562 : vector<2x16x16xf32>
    %565 = arith.addf %559, %564 : vector<2x16x16xf32>
    %c92 = arith.constant 92 : index
    %566 = memref.load %arg2[%c92] : memref<98xf32, #tpu.memory_space<smem>>
    %c1_388 = arith.constant 1 : index
    %c0_389 = arith.constant 0 : index
    %c6_390 = arith.constant 6 : index
    %c1_391 = arith.constant 1 : index
    %567 = vector.load %arg4[%c1_388, %c0_389, %c6_390, %c1_391] : memref<2x2x22x22xf32, #tpu.memory_space<vmem>>, vector<1x2x16x16xf32>
    %568 = vector.shape_cast %567 : vector<1x2x16x16xf32> to vector<2x16x16xf32>
    %569 = vector.broadcast %566 : f32 to vector<2x16x16xf32>
    %570 = arith.mulf %569, %568 : vector<2x16x16xf32>
    %571 = arith.addf %565, %570 : vector<2x16x16xf32>
    %c93 = arith.constant 93 : index
    %572 = memref.load %arg2[%c93] : memref<98xf32, #tpu.memory_space<smem>>
    %c1_392 = arith.constant 1 : index
    %c0_393 = arith.constant 0 : index
    %c6_394 = arith.constant 6 : index
    %c2_395 = arith.constant 2 : index
    %573 = vector.load %arg4[%c1_392, %c0_393, %c6_394, %c2_395] : memref<2x2x22x22xf32, #tpu.memory_space<vmem>>, vector<1x2x16x16xf32>
    %574 = vector.shape_cast %573 : vector<1x2x16x16xf32> to vector<2x16x16xf32>
    %575 = vector.broadcast %572 : f32 to vector<2x16x16xf32>
    %576 = arith.mulf %575, %574 : vector<2x16x16xf32>
    %577 = arith.addf %571, %576 : vector<2x16x16xf32>
    %c94 = arith.constant 94 : index
    %578 = memref.load %arg2[%c94] : memref<98xf32, #tpu.memory_space<smem>>
    %c1_396 = arith.constant 1 : index
    %c0_397 = arith.constant 0 : index
    %c6_398 = arith.constant 6 : index
    %c3_399 = arith.constant 3 : index
    %579 = vector.load %arg4[%c1_396, %c0_397, %c6_398, %c3_399] : memref<2x2x22x22xf32, #tpu.memory_space<vmem>>, vector<1x2x16x16xf32>
    %580 = vector.shape_cast %579 : vector<1x2x16x16xf32> to vector<2x16x16xf32>
    %581 = vector.broadcast %578 : f32 to vector<2x16x16xf32>
    %582 = arith.mulf %581, %580 : vector<2x16x16xf32>
    %583 = arith.addf %577, %582 : vector<2x16x16xf32>
    %c95 = arith.constant 95 : index
    %584 = memref.load %arg2[%c95] : memref<98xf32, #tpu.memory_space<smem>>
    %c1_400 = arith.constant 1 : index
    %c0_401 = arith.constant 0 : index
    %c6_402 = arith.constant 6 : index
    %c4_403 = arith.constant 4 : index
    %585 = vector.load %arg4[%c1_400, %c0_401, %c6_402, %c4_403] : memref<2x2x22x22xf32, #tpu.memory_space<vmem>>, vector<1x2x16x16xf32>
    %586 = vector.shape_cast %585 : vector<1x2x16x16xf32> to vector<2x16x16xf32>
    %587 = vector.broadcast %584 : f32 to vector<2x16x16xf32>
    %588 = arith.mulf %587, %586 : vector<2x16x16xf32>
    %589 = arith.addf %583, %588 : vector<2x16x16xf32>
    %c96 = arith.constant 96 : index
    %590 = memref.load %arg2[%c96] : memref<98xf32, #tpu.memory_space<smem>>
    %c1_404 = arith.constant 1 : index
    %c0_405 = arith.constant 0 : index
    %c6_406 = arith.constant 6 : index
    %c5_407 = arith.constant 5 : index
    %591 = vector.load %arg4[%c1_404, %c0_405, %c6_406, %c5_407] : memref<2x2x22x22xf32, #tpu.memory_space<vmem>>, vector<1x2x16x16xf32>
    %592 = vector.shape_cast %591 : vector<1x2x16x16xf32> to vector<2x16x16xf32>
    %593 = vector.broadcast %590 : f32 to vector<2x16x16xf32>
    %594 = arith.mulf %593, %592 : vector<2x16x16xf32>
    %595 = arith.addf %589, %594 : vector<2x16x16xf32>
    %c97 = arith.constant 97 : index
    %596 = memref.load %arg2[%c97] : memref<98xf32, #tpu.memory_space<smem>>
    %c1_408 = arith.constant 1 : index
    %c0_409 = arith.constant 0 : index
    %c6_410 = arith.constant 6 : index
    %c6_411 = arith.constant 6 : index
    %597 = vector.load %arg4[%c1_408, %c0_409, %c6_410, %c6_411] : memref<2x2x22x22xf32, #tpu.memory_space<vmem>>, vector<1x2x16x16xf32>
    %598 = vector.shape_cast %597 : vector<1x2x16x16xf32> to vector<2x16x16xf32>
    %599 = vector.broadcast %596 : f32 to vector<2x16x16xf32>
    %600 = arith.mulf %599, %598 : vector<2x16x16xf32>
    %601 = arith.addf %595, %600 : vector<2x16x16xf32>
    %602 = arith.negf %601 : vector<2x16x16xf32>
    %603 = math.exp %602 : vector<2x16x16xf32>
    %cst_412 = arith.constant 1.000000e+00 : f32
    %604 = vector.broadcast %cst_412 : f32 to vector<2x16x16xf32>
    %605 = arith.addf %604, %603 : vector<2x16x16xf32>
    %606 = arith.divf %604, %605 : vector<2x16x16xf32>
    %c0_413 = arith.constant 0 : index
    %c0_414 = arith.constant 0 : index
    %c0_415 = arith.constant 0 : index
    %607 = vector.load %arg3[%c0_413, %c0_414, %c0_415] : memref<2x16x16xf32, #tpu.memory_space<vmem>>, vector<2x16x16xf32>
    tpu.vector_store %arg3[%c0_413, %c0_414, %c0_415], %606 {strides = array<i32>} : memref<2x16x16xf32, #tpu.memory_space<vmem>>, vector<2x16x16xf32>,
    return
  }
  func.func @transform_0(%arg0: i32) -> (i32, i32, i32, i32) {
    %c0_i32 = arith.constant 0 : i32
    %c0_i32_0 = arith.constant 0 : i32
    %c0_i32_1 = arith.constant 0 : i32
    %c0_i32_2 = arith.constant 0 : i32
    %c0_i32_3 = arith.constant 0 : i32
    return %c0_i32, %c0_i32_0, %c0_i32_1, %c0_i32_2 : i32, i32, i32, i32
  }
  func.func @transform_1(%arg0: i32) -> i32 {
    %c0_i32 = arith.constant 0 : i32
    %c0_i32_0 = arith.constant 0 : i32
    return %c0_i32 : i32
  }
  func.func @transform_2(%arg0: i32) -> (i32, i32, i32) {
    %c0_i32 = arith.constant 0 : i32
    %c0_i32_0 = arith.constant 0 : i32
    %c0_i32_1 = arith.constant 0 : i32
    %c0_i32_2 = arith.constant 0 : i32
    return %c0_i32, %c0_i32_0, %c0_i32_1 : i32, i32, i32
  }
}

</mosaic_0001>

<bundles_post_ra>
// kernel: spatial_attention.1
= control target key start
LH: loop header
LB: loop body
LE: loop exit
PB: predicated region body
PF: predicated region fallthrough
CT: control target
= control target key end

     0   :  { %7 = vsyncpa [#allocation4], 0  ;;  %s4047_s0 = inlined_call_operand.hbm [shape: f32[2,4,16,16], index: 0, kind: input, shape index: {}]   ;;  %s4048_s1 = inlined_call_operand.vmem [shape: f32[98], index: 1, kind: input, shape index: {}]   ;;  %s4049_s2 = inlined_call_operand.hbm [shape: f32[2,16,16], index: 2, kind: output, shape index: {}]  }
   0x1   :  { %8 = vsyncpa [#allocation6], 0 }
   0x2   :  { %9 = vsyncpa [#allocation5], 0  ;;  %s2791_s9 = smov [#allocation3]   ;;  %s28_s13 = sshll.u32 %s4048_s1, 4  ;;  %s29_s13 = int_to_ptr.vmem [resolvable:$true] %s28_s13 }
   0x3   :  { %s15_s10 = sshll.u32 %s2791_s9, 4  ;;  %s2729_s16 = scalar_lea.hbm %s4047_s0, 2048  ;;  %s16_s10 = int_to_ptr.vmem [resolvable:$true] %s15_s10 }
   0x4   :  { %p2730_p0 = scmp.ne.s32.totalorder %s4047_s0, %s2729_s16  ;;  %p2733_p1 = scmp.lt.u32.totalorder %s2729_s16, %s4047_s0 }
   0x6   :  { %p2735_p2 = pnand %p2733_p1, %p2730_p0 }
   0x8   :  { %2738 = shalt.err (!%p2735_p2)
}
   0x9   :  { %s2739_s21 = scalar_lea.vmem %s16_s10, 2048  ;;  %p2744_p4 = scmp.lt.s32.totalorder %s16_s10, %s16_s10 }
   0xa   :  { %p2740_p3 = scmp.ne.s32.totalorder %s16_s10, %s2739_s21  ;;  %p2745_p5 = scmp.lt.s32.totalorder %s2739_s21, %s2739_s21 }
   0xc   :  { %p2746_p6 = por %p2745_p5, %p2744_p4 }
   0xe   :  { %p2747_p7 = pnand %p2746_p6, %p2740_p3 }
  0x10   :  { %2750 = shalt.err (!%p2747_p7)
}
  0x11   :  { %s2792_s1 = smov 128   ;;  %s2793_s22 = smov 8  }
  0x12   :  { %21 = dma.hbm_to_vmem [thread:$0]  %s4047_s0, 2048, %s16_s10, [#allocation4], %s2792_s1, %s2792_s1, %s2793_s22  }
  0x13   :  { %s2751_s25 = scalar_lea.vmem %s29_s13, 16  ;;  %p2756_p9 = scmp.lt.s32.totalorder %s29_s13, %s29_s13 }
  0x14   :  { %p2752_p8 = scmp.ne.s32.totalorder %s29_s13, %s2751_s25  ;;  %p2757_p10 = scmp.lt.s32.totalorder %s2751_s25, %s2751_s25 }
  0x16   :  { %p2758_p11 = por %p2757_p10, %p2756_p9 }
  0x18   :  { %p2759_p12 = pnand %p2758_p11, %p2752_p8 }
  0x1a   :  { %2762 = shalt.err (!%p2759_p12)
}
  0x1b   :  { %s2794_s26 = smov [#allocation7]  }
  0x1c   :  { %31 = dma.vmem_to_smem %s29_s13, 16, %s2794_s26, [#allocation6]  }
  0x1d   :  { %2785 = dma.done.wait [#allocation4], 2048  }
  0x1e   :  { %2786 = vsyncadd [#allocation4], 4294965248 }
  0x1f   :  { %2787 = dma.done.wait [#allocation6], 16  }
  0x20   :  { %2788 = vsyncadd [#allocation6], 4294967280 }
  0x21   :  { %38 = sfence }
  0x22   :  { %v40_v0 = vld [vmem:[#allocation3 + $0x8] sm:$0xff]  ;;  %v42_v1 = vld [vmem:[#allocation3 + $0x18] sm:$0xff]  ;;  %vm55_vm0 = vcmask 130048   ;;  %vm117_vm1 = vcmask 179200   ;;  %v39_v8 = vld [vmem:[#allocation3] sm:$0xff]  ;;  %s2795_s0 = smov 3  }
  0x23   :  { %v44_v2 = vld [vmem:[#allocation3 + $0x28] sm:$0xff]  ;;  %v46_v3 = vld [vmem:[#allocation3 + $0x38] sm:$0xff]  ;;  %v64_v4 = vsel %vm55_vm0, %v42_v1, 0.0  ;;  %v96_v6 = vsel %vm55_vm0, %v40_v0, -inf  ;;  %v97_v7 = vsel %vm55_vm0, %v42_v1, -inf  ;;  %v41_v13 = vld [vmem:[#allocation3 + $0x10] sm:$0xff] }
  0x24   :  { %v66_v5 = vsel %vm55_vm0, %v44_v2, 0.0  ;;  %v2842_v9 = vsel %vm55_vm0, %v46_v3, 0.0  ;;  %v98_v10 = vmax.f32 %v96_v6, %v97_v7  ;;  %v99_v11 = vsel %vm55_vm0, %v44_v2, -inf  ;;  %v43_v14 = vld [vmem:[#allocation3 + $0x20] sm:$0xff]  ;;  %v45_v16 = vld [vmem:[#allocation3 + $0x30] sm:$0xff]  ;;  %v48_v26 = vld [vmem:[#allocation3 + $0x48] sm:$0xff] }
  0x25   :  { %v101_v12 = vsel %vm55_vm0, %v46_v3, -inf  ;;  %v63_v15 = vsel %vm55_vm0, %v40_v0, 0.0  ;;  %v57_v17 = vsel %vm55_vm0, %v41_v13, 0.0  ;;  %v59_v18 = vsel %vm55_vm0, %v43_v14, 0.0  ;;  %v47_v19 = vld [vmem:[#allocation3 + $0x40] sm:$0xff]  ;;  %v49_v20 = vld [vmem:[#allocation3 + $0x50] sm:$0xff] }
  0x26   :  { %v100_v21 = vmax.f32 %v98_v10, %v99_v11  ;;  %v89_v22 = vsel %vm55_vm0, %v39_v8, -inf  ;;  %v90_v23 = vsel %vm55_vm0, %v41_v13, -inf  ;;  %v92_v24 = vsel %vm55_vm0, %v43_v14, -inf  ;;  %v51_v25 = vld [vmem:[#allocation3 + $0x60] sm:$0xff]  ;;  %v53_v30 = vld [vmem:[#allocation3 + $0x70] sm:$0xff]  ;;  %v50_v32 = vld [vmem:[#allocation3 + $0x58] sm:$0xff] }
  0x27   :  { %v61_v27 = vsel %vm55_vm0, %v45_v16, 0.0  ;;  %v91_v28 = vmax.f32 %v89_v22, %v90_v23  ;;  %v56_v29 = vsel %vm55_vm0, %v39_v8, 0.0  ;;  %v70_v31 = vsel %vm55_vm0, %v47_v19, 0.0  ;;  %v52_v33 = vld [vmem:[#allocation3 + $0x68] sm:$0xff]  ;;  %v54_v41 = vld [vmem:[#allocation3 + $0x78] sm:$0xff]  ;;  %s2599_s27 = sld [smem:[#allocation7 + $0x1]] }
  0x28   :  { %v102_v34 = vmax.f32 %v100_v21, %v101_v12  ;;  %v94_v35 = vsel %vm55_vm0, %v45_v16, -inf  ;;  %v71_v36 = vsel %vm55_vm0, %v49_v20, 0.0  ;;  %v73_v37 = vsel %vm55_vm0, %v51_v25, 0.0  ;;  %s2600_s28 = sld [smem:[#allocation7 + $0x2]]  ;;  %s2797_s29 = smov 127  }
  0x29   :  { %v93_v38 = vmax.f32 %v91_v28, %v92_v24  ;;  %v72_v39 = vadd.f32 %v71_v36, %v70_v31  ;;  %v58_v40 = vadd.f32 %v57_v17, %v56_v29  ;;  %v77_v42 = vsel %vm55_vm0, %v48_v26, 0.0  ;;  %s2601_s30 = sld [smem:[#allocation7 + $0x3]]  ;;  %s2798_s3 = smov 126  }
  0x2a   :  { %158 = vrot.lane.b32.xlu1 %v102_v34, %s2795_s0  ;;  %v75_v43 = vsel %vm55_vm0, %v53_v30, 0.0  ;;  %v78_v44 = vsel %vm55_vm0, %v50_v32, 0.0  ;;  %v80_v45 = vsel %vm55_vm0, %v52_v33, 0.0  ;;  %v65_v46 = vadd.f32 %v64_v4, %v63_v15  ;;  %s2602_s4 = sld [smem:[#allocation7 + $0x4]]  ;;  %s2799_s5 = smov 125  }
  0x2b   :  { %v95_v47 = vmax.f32 %v93_v38, %v94_v35  ;;  %v74_v48 = vadd.f32 %v73_v37, %v72_v39  ;;  %v60_v49 = vadd.f32 %v59_v18, %v58_v40  ;;  %v79_v50 = vadd.f32 %v78_v44, %v77_v42  ;;  %s2603_s6 = sld [smem:[#allocation7 + $0x5]]  ;;  %s2800_s7 = smov 124  }
  0x2c   :  { %v82_v51 = vsel %vm55_vm0, %v54_v41, 0.0  ;;  %v67_v52 = vadd.f32 %v66_v5, %v65_v46  ;;  %vm120_vm2 = vcmask 177152   ;;  %v2796_v56 = vmov 0.0   ;;  %s2604_s8 = sld [smem:[#allocation7 + $0x6]]  ;;  %s2801_s9 = smov 123  }
  0x2d   :  { %156 = vrot.lane.b32.xlu0 %v95_v47, %s2795_s0  ;;  %v76_v53 = vadd.f32 %v75_v43, %v74_v48  ;;  %v62_v54 = vadd.f32 %v61_v27, %v60_v49  ;;  %v81_v55 = vadd.f32 %v80_v45, %v79_v50  ;;  %126 = vst.msk [vmem:[#allocation2 + $0x38] sm:$0xff] %vm117_vm1, %v2796_v56  ;;  %118 = vst.msk [vmem:[#allocation2] sm:$0xff] %vm117_vm1, %v2796_v56  ;;  %vm147_vm3 = vcmask 154648   ;;  %s2606_s10 = sld [smem:[#allocation7 + $0x8]]  ;;  %s2802_s11 = smov 122  }
  0x2e   :  { %127 = vst.msk [vmem:[#allocation2 + $0x40] sm:$0x3f] %vm120_vm2, %v2796_v56  ;;  %121 = vst.msk [vmem:[#allocation2 + $0x10] sm:$0x3f] %vm120_vm2, %v2796_v56  ;;  %v103_v57 = vsel %vm55_vm0, %v47_v19, -inf  ;;  %v69_v58 = vadd.f32 %v2842_v9, %v67_v52  ;;  %v104_v59 = vsel %vm55_vm0, %v49_v20, -inf  ;;  %v188_v19 = vstv %s2599_s27 }
  0x2f   :  { %119 = vst.msk [vmem:[#allocation2 + $0x8] sm:$0xff] %vm117_vm1, %v2796_v56  ;;  %122 = vst.msk [vmem:[#allocation2 + $0x18] sm:$0xff] %vm117_vm1, %v2796_v56  ;;  %v87_v60 = vmul.f32 0.25, %v76_v53  ;;  %v85_v61 = vmul.f32 0.25, %v62_v54  ;;  %v83_v62 = vadd.f32 %v82_v51, %v81_v55  ;;  %v106_v63 = vsel %vm55_vm0, %v51_v25, -inf  ;;  %s2607_s12 = sld [smem:[#allocation7 + $0x9]] }
  0x30   :  { %123 = vst.msk [vmem:[#allocation2 + $0x20] sm:$0xff] %vm117_vm1, %v2796_v56  ;;  %125 = vst.msk [vmem:[#allocation2 + $0x30] sm:$0xff] %vm117_vm1, %v2796_v56  ;;  %v105_v0 = vmax.f32 %v103_v57, %v104_v59  ;;  %v86_v2 = vmul.f32 0.25, %v69_v58  ;;  %v108_v4 = vsel %vm55_vm0, %v53_v30, -inf  ;;  %v110_v5 = vsel %vm55_vm0, %v48_v26, -inf  ;;  %s2608_s13 = sld [smem:[#allocation7 + $0xa]] }
  0x31   :  { %124 = vst.msk [vmem:[#allocation2 + $0x28] sm:$0x3f] %vm120_vm2, %v2796_v56  ;;  %130 = vst.msk [vmem:[#allocation2 + $0x58] sm:$0x3f] %vm120_vm2, %v2796_v56  ;;  %139 = vrot.lane.b32.xlu1 %v87_v60, %s2795_s0  ;;  %135 = vrot.lane.b32.xlu0 %v85_v61, %s2795_s0  ;;  %v88_v1 = vmul.f32 0.25, %v83_v62  ;;  %v111_v6 = vsel %vm55_vm0, %v50_v32, -inf  ;;  %v214_v27 = vstv %s2600_s28  ;;  %v266_v38 = vstv %s2602_s4 }
  0x32   :  { %128 = vst.msk [vmem:[#allocation2 + $0x48] sm:$0xff] %vm117_vm1, %v2796_v56  ;;  %129 = vst.msk [vmem:[#allocation2 + $0x50] sm:$0xff] %vm117_vm1, %v2796_v56  ;;  %v107_v3 = vmax.f32 %v105_v0, %v106_v63  ;;  %v112_v7 = vmax.f32 %v110_v5, %v111_v6  ;;  %v113_v8 = vsel %vm55_vm0, %v52_v33, -inf  ;;  %v115_v9 = vsel %vm55_vm0, %v54_v41, -inf  ;;  %s2609_s14 = sld [smem:[#allocation7 + $0xb]]  ;;  %s2610_s15 = sld [smem:[#allocation7 + $0xc]] }
  0x33   :  { %v240_v33 = vstv %s2601_s30  ;;  %v292_v43 = vstv %s2603_s6  ;;  %v318_v48 = vstv %s2604_s8  ;;  %v358_v54 = vstv %s2606_s10  ;;  %s2611_s16 = sld [smem:[#allocation7 + $0xd]]  ;;  %s2613_s17 = sld [smem:[#allocation7 + $0xf]] }
  0x34   :  { %v109_v10 = vmax.f32 %v107_v3, %v108_v4  ;;  %v114_v11 = vmax.f32 %v112_v7, %v113_v8  ;;  %s2614_s18 = sld [smem:[#allocation7 + $0x10]]  ;;  %s2615_s19 = sld [smem:[#allocation7 + $0x11]] }
  0x35   :  { %141 = vrot.lane.b32.xlu1 %v88_v1, %s2795_s0  ;;  %137 = vrot.lane.b32.xlu0 %v86_v2, %s2795_s0  ;;  %v384_v61 = vstv %s2607_s12  ;;  %s2616_s20 = sld [smem:[#allocation7 + $0x12]]  ;;  %s2617_s21 = sld [smem:[#allocation7 + $0x13]] }
  0x36   :  { %v116_v12 = vmax.f32 %v114_v11, %v115_v9  ;;  %v410_v3 = vstv %s2608_s13  ;;  %s2618_s23 = sld [smem:[#allocation7 + $0x14]]  ;;  %s2620_s24 = sld [smem:[#allocation7 + $0x16]] }
  0x37   :  { %s173_s25 = sld [smem:[#allocation7]]  ;;  %s2621_s26 = sld [smem:[#allocation7 + $0x17]] }
  0x38   :  { %v436_v8 = vstv %s2609_s14  ;;  %s2622_s27 = sld [smem:[#allocation7 + $0x18]]  ;;  %s2623_s28 = sld [smem:[#allocation7 + $0x19]] }
  0x39   :  { %160 = vrot.lane.b32.xlu0 %v109_v10, %s2795_s0  ;;  %162 = vrot.lane.b32.xlu1 %v116_v12, %s2795_s0  ;;  %s2605_s0 = sld [smem:[#allocation7 + $0x7]]  ;;  %s2624_s30 = sld [smem:[#allocation7 + $0x1a]] }
  0x3a   :  { %s2625_s4 = sld [smem:[#allocation7 + $0x1b]]  ;;  %s2627_s6 = sld [smem:[#allocation7 + $0x1d]] }
  0x3b   :  { %s2628_s8 = sld [smem:[#allocation7 + $0x1e]]  ;;  %s2629_s12 = sld [smem:[#allocation7 + $0x1f]] }
  0x3c   :  { %s2612_s10 = sld [smem:[#allocation7 + $0xe]]  ;;  %s2630_s13 = sld [smem:[#allocation7 + $0x20]] }
  0x3d   :  { %s2631_s14 = sld [smem:[#allocation7 + $0x21]] }
  0x9c   :  { %v159_v13 = vpop.permute.xlu1 %158 }
  0x9d   :  { %170 = vst.msk [vmem:[#allocation2 + $0x3b] sm:$0xff] %vm147_vm3, %v159_v13  ;;  %v462_v13 = vstv %s2610_s15  ;;  %s2632_s15 = sld [smem:[#allocation7 + $0x22]] }
  0x9f   :  { %v157_v14 = vpop.permute.xlu0 %156 }
  0xa0   :  { %169 = vst.msk [vmem:[#allocation2 + $0x33] sm:$0xff] %vm147_vm3, %v157_v14 }
  0xa3   :  { %v140_v15 = vpop.permute.xlu1 %139  ;;  %v136_v16 = vpop.permute.xlu0 %135 }
  0xa4   :  { %150 = vst.msk [vmem:[#allocation2 + $0x1b] sm:$0xff] %vm147_vm3, %v140_v15  ;;  %148 = vst.msk [vmem:[#allocation2 + $0x3] sm:$0xff] %vm147_vm3, %v136_v16 }
  0xa7   :  { %v142_v17 = vpop.permute.xlu1 %141  ;;  %v138_v18 = vpop.permute.xlu0 %137 }
  0xa8   :  { %151 = vst.msk [vmem:[#allocation2 + $0x23] sm:$0xff] %vm147_vm3, %v142_v17  ;;  %149 = vst.msk [vmem:[#allocation2 + $0xb] sm:$0xff] %vm147_vm3, %v138_v18  ;;  %v488_v18 = vstv %s2611_s16  ;;  %s2634_s16 = sld [smem:[#allocation7 + $0x24]] }
  0xab   :  { %v161_v20 = vpop.permute.xlu0 %160  ;;  %v163_v21 = vpop.permute.xlu1 %162  ;;  %v2898_v22 = vld [vmem:[#allocation2 + $0x18] sm:$0xff]  ;;  %v2900_v23 = vld [vmem:[#allocation2] sm:$0xff] }
  0xac   :  { %171 = vst.msk [vmem:[#allocation2 + $0x4b] sm:$0xff] %vm147_vm3, %v161_v20  ;;  %172 = vst.msk [vmem:[#allocation2 + $0x53] sm:$0xff] %vm147_vm3, %v163_v21  ;;  %v189_v24 = vmul.f32 %v188_v19, %v2900_v23  ;;  %v191_v25 = vmul.f32 %v188_v19, %v2898_v22  ;;  %v215_v30 = vmul.f32 %v214_v27, %v2900_v23  ;;  %v2951_v53 = vld [vmem:[#allocation2 + $0x1] sm:$0xff]  ;;  %v2957_v57 = vld [vmem:[#allocation2 + $0x19] sm:$0xff] }
  0xad   :  { %v217_v32 = vmul.f32 %v214_v27, %v2898_v22  ;;  %v241_v35 = vmul.f32 %v240_v33, %v2900_v23  ;;  %v243_v37 = vmul.f32 %v240_v33, %v2898_v22  ;;  %v267_v40 = vmul.f32 %v266_v38, %v2900_v23 }
  0xae   :  { %197 = vrot.lane.b32.xlu0 %v189_v24, %s2797_s29  ;;  %v269_v42 = vmul.f32 %v266_v38, %v2898_v22  ;;  %v293_v45 = vmul.f32 %v292_v43, %v2900_v23  ;;  %v295_v47 = vmul.f32 %v292_v43, %v2898_v22  ;;  %v319_v50 = vmul.f32 %v318_v48, %v2900_v23 }
  0xaf   :  { %v2907_v26 = vld [vmem:[#allocation2 + $0x8] sm:$0xff]  ;;  %v2911_v29 = vld [vmem:[#allocation2 + $0x20] sm:$0xff]  ;;  %v321_v52 = vmul.f32 %v318_v48, %v2898_v22  ;;  %v359_v56 = vmul.f32 %v358_v54, %v2951_v53  ;;  %v361_v60 = vmul.f32 %v358_v54, %v2957_v57  ;;  %v385_v0 = vmul.f32 %v384_v61, %v2951_v53 }
  0xb0   :  { %v190_v28 = vmul.f32 %v188_v19, %v2907_v26  ;;  %v192_v31 = vmul.f32 %v188_v19, %v2911_v29  ;;  %v216_v34 = vmul.f32 %v214_v27, %v2907_v26  ;;  %v218_v36 = vmul.f32 %v214_v27, %v2911_v29  ;;  %v2961_v59 = vld [vmem:[#allocation2 + $0x9] sm:$0xff]  ;;  %v2967_v63 = vld [vmem:[#allocation2 + $0x21] sm:$0xff] }
  0xb1   :  { %v242_v39 = vmul.f32 %v240_v33, %v2907_v26  ;;  %v244_v41 = vmul.f32 %v240_v33, %v2911_v29  ;;  %v268_v44 = vmul.f32 %v266_v38, %v2907_v26  ;;  %v270_v46 = vmul.f32 %v266_v38, %v2911_v29  ;;  %v3017_v33 = vld [vmem:[#allocation2 + $0xa] sm:$0xff] }
  0xb2   :  { %201 = vrot.lane.b32.xlu0 %v191_v25, %s2797_s29  ;;  %199 = vrot.lane.b32.xlu1 %v190_v28, %s2797_s29  ;;  %v294_v49 = vmul.f32 %v292_v43, %v2907_v26  ;;  %v296_v51 = vmul.f32 %v292_v43, %v2911_v29  ;;  %v320_v55 = vmul.f32 %v318_v48, %v2907_v26  ;;  %v3007_v25 = vld [vmem:[#allocation2 + $0x2] sm:$0xff]  ;;  %v528_v27 = vstv %s2613_s17  ;;  %s2635_s17 = sld [smem:[#allocation7 + $0x25]] }
  0xb3   :  { %v322_v58 = vmul.f32 %v318_v48, %v2911_v29  ;;  %v360_v62 = vmul.f32 %v358_v54, %v2961_v59  ;;  %v362_v1 = vmul.f32 %v358_v54, %v2967_v63  ;;  %v387_v2 = vmul.f32 %v384_v61, %v2957_v57 }
  0xb4   :  { %v386_v4 = vmul.f32 %v384_v61, %v2961_v59  ;;  %v411_v5 = vmul.f32 %v410_v3, %v2951_v53  ;;  %v388_v6 = vmul.f32 %v384_v61, %v2967_v63  ;;  %v413_v7 = vmul.f32 %v410_v3, %v2957_v57 }
  0xb5   :  { %v412_v9 = vmul.f32 %v410_v3, %v2961_v59  ;;  %v437_v10 = vmul.f32 %v436_v8, %v2951_v53  ;;  %v414_v11 = vmul.f32 %v410_v3, %v2967_v63  ;;  %v439_v12 = vmul.f32 %v436_v8, %v2957_v57 }
  0xb6   :  { %223 = vrot.lane.b32.xlu0 %v215_v30, %s2798_s3  ;;  %203 = vrot.lane.b32.xlu1 %v192_v31, %s2797_s29  ;;  %v438_v14 = vmul.f32 %v436_v8, %v2961_v59  ;;  %v463_v15 = vmul.f32 %v462_v13, %v2951_v53  ;;  %v440_v16 = vmul.f32 %v436_v8, %v2967_v63  ;;  %v3013_v31 = vld [vmem:[#allocation2 + $0x1a] sm:$0xff] }
  0xb7   :  { %v465_v17 = vmul.f32 %v462_v13, %v2957_v57  ;;  %v464_v19 = vmul.f32 %v462_v13, %v2961_v59  ;;  %v489_v20 = vmul.f32 %v488_v18, %v2951_v53  ;;  %v466_v21 = vmul.f32 %v462_v13, %v2967_v63  ;;  %v3073_v13 = vld [vmem:[#allocation2 + $0x3] sm:$0xff] }
  0xb8   :  { %v491_v24 = vmul.f32 %v488_v18, %v2957_v57  ;;  %v490_v28 = vmul.f32 %v488_v18, %v2961_v59  ;;  %v529_v30 = vmul.f32 %v528_v27, %v3007_v25 }
  0xba   :  { %227 = vrot.lane.b32.xlu0 %v217_v32, %s2798_s3  ;;  %225 = vrot.lane.b32.xlu1 %v216_v34, %s2798_s3  ;;  %v492_v32 = vmul.f32 %v488_v18, %v2967_v63  ;;  %v531_v34 = vmul.f32 %v528_v27, %v3013_v31 }
  0xbe   :  { %249 = vrot.lane.b32.xlu0 %v241_v35, %s2799_s5  ;;  %229 = vrot.lane.b32.xlu1 %v218_v36, %s2798_s3  ;;  %v554_v35 = vstv %s2614_s18  ;;  %v530_v36 = vmul.f32 %v528_v27, %v3017_v33  ;;  %s2619_s18 = sld [smem:[#allocation7 + $0x15]] }
  0xbf   :  { %v555_v38 = vmul.f32 %v554_v35, %v3007_v25 }
  0xc2   :  { %253 = vrot.lane.b32.xlu0 %v243_v37, %s2799_s5  ;;  %251 = vrot.lane.b32.xlu1 %v242_v39, %s2799_s5  ;;  %v3023_v37 = vld [vmem:[#allocation2 + $0x22] sm:$0xff] }
  0xc3   :  { %v532_v39 = vmul.f32 %v528_v27, %v3023_v37 }
  0xc6   :  { %275 = vrot.lane.b32.xlu0 %v267_v40, %s2800_s7  ;;  %255 = vrot.lane.b32.xlu1 %v244_v41, %s2799_s5  ;;  %v557_v40 = vmul.f32 %v554_v35, %v3013_v31  ;;  %v580_v41 = vstv %s2615_s19  ;;  %s2636_s19 = sld [smem:[#allocation7 + $0x26]] }
  0xc7   :  { %v581_v43 = vmul.f32 %v580_v41, %v3007_v25  ;;  %v582_v48 = vmul.f32 %v580_v41, %v3017_v33 }
  0xca   :  { %279 = vrot.lane.b32.xlu0 %v269_v42, %s2800_s7  ;;  %277 = vrot.lane.b32.xlu1 %v268_v44, %s2800_s7  ;;  %v556_v42 = vmul.f32 %v554_v35, %v3017_v33  ;;  %v558_v44 = vmul.f32 %v554_v35, %v3023_v37 }
  0xce   :  { %301 = vrot.lane.b32.xlu0 %v293_v45, %s2801_s9  ;;  %281 = vrot.lane.b32.xlu1 %v270_v46, %s2800_s7  ;;  %v583_v46 = vmul.f32 %v580_v41, %v3013_v31 }
  0xd2   :  { %305 = vrot.lane.b32.xlu0 %v295_v47, %s2801_s9  ;;  %303 = vrot.lane.b32.xlu1 %v294_v49, %s2801_s9  ;;  %v606_v47 = vstv %s2616_s20  ;;  %s2637_s20 = sld [smem:[#allocation7 + $0x27]] }
  0xd6   :  { %327 = vrot.lane.b32.xlu0 %v319_v50, %s2802_s11  ;;  %307 = vrot.lane.b32.xlu1 %v296_v51, %s2801_s9  ;;  %v607_v50 = vmul.f32 %v606_v47, %v3007_v25 }
  0xda   :  { %331 = vrot.lane.b32.xlu0 %v321_v52, %s2802_s11  ;;  %329 = vrot.lane.b32.xlu1 %v320_v55, %s2802_s11  ;;  %v584_v52 = vmul.f32 %v580_v41, %v3023_v37  ;;  %v609_v55 = vmul.f32 %v606_v47, %v3013_v31 }
  0xde   :  { %367 = vrot.lane.b32.xlu0 %v359_v56, %s2797_s29  ;;  %333 = vrot.lane.b32.xlu1 %v322_v58, %s2802_s11  ;;  %v632_v56 = vstv %s2617_s21  ;;  %s2638_s21 = sld [smem:[#allocation7 + $0x28]] }
  0xdf   :  { %v635_v3 = vmul.f32 %v632_v56, %v3013_v31 }
  0xe2   :  { %371 = vrot.lane.b32.xlu0 %v361_v60, %s2797_s29  ;;  %369 = vrot.lane.b32.xlu1 %v360_v62, %s2797_s29  ;;  %v608_v60 = vmul.f32 %v606_v47, %v3017_v33  ;;  %v633_v62 = vmul.f32 %v632_v56, %v3007_v25 }
  0xe6   :  { %393 = vrot.lane.b32.xlu0 %v385_v0, %s2798_s3  ;;  %373 = vrot.lane.b32.xlu1 %v362_v1, %s2797_s29  ;;  %v610_v1 = vmul.f32 %v606_v47, %v3023_v37 }
  0xea   :  { %397 = vrot.lane.b32.xlu0 %v387_v2, %s2798_s3  ;;  %395 = vrot.lane.b32.xlu1 %v386_v4, %s2798_s3  ;;  %v658_v4 = vstv %s2618_s23  ;;  %s2639_s23 = sld [smem:[#allocation7 + $0x29]] }
  0xeb   :  { %v659_v8 = vmul.f32 %v658_v4, %v3007_v25  ;;  %v662_v27 = vmul.f32 %v658_v4, %v3023_v37 }
  0xee   :  { %419 = vrot.lane.b32.xlu0 %v411_v5, %s2799_s5  ;;  %399 = vrot.lane.b32.xlu1 %v388_v6, %s2798_s3  ;;  %v634_v6 = vmul.f32 %v632_v56, %v3017_v33 }
  0xf2   :  { %423 = vrot.lane.b32.xlu0 %v413_v7, %s2799_s5  ;;  %421 = vrot.lane.b32.xlu1 %v412_v9, %s2799_s5 }
  0xf6   :  { %445 = vrot.lane.b32.xlu0 %v437_v10, %s2800_s7  ;;  %425 = vrot.lane.b32.xlu1 %v414_v11, %s2799_s5  ;;  %v636_v10 = vmul.f32 %v632_v56, %v3023_v37 }
  0xfa   :  { %449 = vrot.lane.b32.xlu0 %v439_v12, %s2800_s7  ;;  %447 = vrot.lane.b32.xlu1 %v438_v14, %s2800_s7  ;;  %v661_v12 = vmul.f32 %v658_v4, %v3013_v31  ;;  %v698_v14 = vstv %s2620_s24  ;;  %s2641_s24 = sld [smem:[#allocation7 + $0x2b]] }
  0xfe   :  { %471 = vrot.lane.b32.xlu0 %v463_v15, %s2801_s9  ;;  %451 = vrot.lane.b32.xlu1 %v440_v16, %s2800_s7  ;;  %v178_v15 = vstv %s173_s25  ;;  %s2642_s25 = sld [smem:[#allocation7 + $0x2c]] }
  0xff   :  { %v181_v35 = vmul.f32 %v178_v15, %v2898_v22  ;;  %v180_v41 = vmul.f32 %v178_v15, %v2907_v26  ;;  %v348_v22 = vstv %s2605_s0  ;;  %v182_v26 = vmul.f32 %v178_v15, %v2911_v29  ;;  %s2643_s0 = sld [smem:[#allocation7 + $0x2d]] }
 0x100   :  { %v349_v56 = vmul.f32 %v348_v22, %v2951_v53 }
 0x102   :  { %475 = vrot.lane.b32.xlu0 %v465_v17, %s2801_s9  ;;  %473 = vrot.lane.b32.xlu1 %v464_v19, %s2801_s9  ;;  %v660_v17 = vmul.f32 %v658_v4, %v3017_v33  ;;  %v699_v19 = vmul.f32 %v698_v14, %v3073_v13 }
 0x106   :  { %497 = vrot.lane.b32.xlu0 %v489_v20, %s2802_s11  ;;  %477 = vrot.lane.b32.xlu1 %v466_v21, %s2801_s9  ;;  %v3081_v20 = vld [vmem:[#allocation2 + $0x1b] sm:$0xff]  ;;  %v179_v21 = vmul.f32 %v178_v15, %v2900_v23  ;;  %v350_v15 = vmul.f32 %v348_v22, %v2961_v59 }
 0x10a   :  { %501 = vrot.lane.b32.xlu0 %v491_v24, %s2802_s11  ;;  %499 = vrot.lane.b32.xlu1 %v490_v28, %s2802_s11  ;;  %v3086_v28 = vld [vmem:[#allocation2 + $0xb] sm:$0xff] }
 0x10b   :  { %v700_v23 = vmul.f32 %v698_v14, %v3086_v28 }
 0x10e   :  { %537 = vrot.lane.b32.xlu0 %v529_v30, %s2797_s29  ;;  %503 = vrot.lane.b32.xlu1 %v492_v32, %s2802_s11 }
 0x112   :  { %541 = vrot.lane.b32.xlu0 %v531_v34, %s2797_s29  ;;  %539 = vrot.lane.b32.xlu1 %v530_v36, %s2797_s29  ;;  %v701_v34 = vmul.f32 %v698_v14, %v3081_v20 }
 0x116   :  { %563 = vrot.lane.b32.xlu0 %v555_v38, %s2798_s3  ;;  %543 = vrot.lane.b32.xlu1 %v532_v39, %s2797_s29  ;;  %v724_v38 = vstv %s2621_s26  ;;  %s2626_s26 = sld [smem:[#allocation7 + $0x1c]] }
 0x117   :  { %v726_v29 = vmul.f32 %v724_v38, %v3086_v28 }
 0x11a   :  { %567 = vrot.lane.b32.xlu0 %v557_v40, %s2798_s3  ;;  %565 = vrot.lane.b32.xlu1 %v556_v42, %s2798_s3  ;;  %v3093_v40 = vld [vmem:[#allocation2 + $0x23] sm:$0xff] }
 0x11e   :  { %589 = vrot.lane.b32.xlu0 %v581_v43, %s2799_s5  ;;  %569 = vrot.lane.b32.xlu1 %v558_v44, %s2798_s3 }
 0x120   :  { %v198_v45 = vpop.permute.xlu0 %197 }
 0x121   :  { %v209_v30 = vadd.f32 %v198_v45, %v179_v21  ;;  %v725_v45 = vmul.f32 %v724_v38, %v3073_v13 }
 0x122   :  { %593 = vrot.lane.b32.xlu0 %v583_v46, %s2799_s5  ;;  %591 = vrot.lane.b32.xlu1 %v582_v48, %s2799_s5 }
 0x124   :  { %v3042_v49 = vpop.permute.xlu0 %201  ;;  %v3045_v51 = vpop.permute.xlu1 %199 }
 0x125   :  { %v211_v42 = vadd.f32 %v3042_v49, %v181_v35  ;;  %v210_v46 = vadd.f32 %v3045_v51, %v180_v41  ;;  %v727_v51 = vmul.f32 %v724_v38, %v3081_v20 }
 0x126   :  { %615 = vrot.lane.b32.xlu0 %v607_v50, %s2800_s7  ;;  %595 = vrot.lane.b32.xlu1 %v584_v52, %s2799_s5  ;;  %v702_v52 = vmul.f32 %v698_v14, %v3093_v40 }
 0x128   :  { %v224_v54 = vpop.permute.xlu0 %223  ;;  %v3051_v58 = vpop.permute.xlu1 %203 }
 0x129   :  { %v235_v36 = vadd.f32 %v224_v54, %v209_v30 }
 0x12a   :  { %619 = vrot.lane.b32.xlu0 %v609_v55, %s2800_s7  ;;  %617 = vrot.lane.b32.xlu1 %v608_v60, %s2800_s7 }
 0x12c   :  { %v228_v61 = vpop.permute.xlu0 %227  ;;  %v3057_v0 = vpop.permute.xlu1 %225 }
 0x12d   :  { %v237_v47 = vadd.f32 %v228_v61, %v211_v42  ;;  %v236_v49 = vadd.f32 %v3057_v0, %v210_v46  ;;  %v750_v61 = vstv %s2622_s27  ;;  %v802_v42 = vstv %s2624_s30  ;;  %s2644_s27 = sld [smem:[#allocation7 + $0x2e]]  ;;  %s2646_s30 = sld [smem:[#allocation7 + $0x30]] }
 0x12e   :  { %641 = vrot.lane.b32.xlu0 %v633_v62, %s2801_s9  ;;  %621 = vrot.lane.b32.xlu1 %v610_v1, %s2800_s7  ;;  %v212_v62 = vadd.f32 %v3051_v58, %v182_v26  ;;  %v751_v58 = vmul.f32 %v750_v61, %v3073_v13  ;;  %v752_v59 = vmul.f32 %v750_v61, %v3086_v28 }
 0x130   :  { %v250_v2 = vpop.permute.xlu0 %249  ;;  %v3063_v5 = vpop.permute.xlu1 %229 }
 0x131   :  { %v261_v43 = vadd.f32 %v250_v2, %v235_v36  ;;  %v238_v0 = vadd.f32 %v3063_v5, %v212_v62  ;;  %v728_v5 = vmul.f32 %v724_v38, %v3093_v40  ;;  %v3163_v62 = vld [vmem:[#allocation2 + $0x4] sm:$0xff] }
 0x132   :  { %645 = vrot.lane.b32.xlu0 %v635_v3, %s2801_s9  ;;  %643 = vrot.lane.b32.xlu1 %v634_v6, %s2801_s9 }
 0x134   :  { %v254_v7 = vpop.permute.xlu0 %253  ;;  %v252_v9 = vpop.permute.xlu1 %251 }
 0x135   :  { %v263_v54 = vadd.f32 %v254_v7, %v237_v47  ;;  %v262_v1 = vadd.f32 %v252_v9, %v236_v49  ;;  %v351_v9 = vmul.f32 %v348_v22, %v2957_v57  ;;  %v753_v57 = vmul.f32 %v750_v61, %v3081_v20 }
 0x136   :  { %667 = vrot.lane.b32.xlu0 %v659_v8, %s2802_s11  ;;  %647 = vrot.lane.b32.xlu1 %v636_v10, %s2801_s9  ;;  %v804_v49 = vmul.f32 %v802_v42, %v3086_v28 }
 0x138   :  { %v276_v11 = vpop.permute.xlu0 %275  ;;  %v3075_v16 = vpop.permute.xlu1 %255 }
 0x139   :  { %v287_v48 = vadd.f32 %v276_v11, %v261_v43  ;;  %v264_v10 = vadd.f32 %v3075_v16, %v238_v0  ;;  %v3169_v0 = vld [vmem:[#allocation2 + $0x1c] sm:$0xff] }
 0x13a   :  { %671 = vrot.lane.b32.xlu0 %v661_v12, %s2802_s11  ;;  %669 = vrot.lane.b32.xlu1 %v660_v17, %s2802_s11 }
 0x13c   :  { %v280_v18 = vpop.permute.xlu0 %279  ;;  %v278_v24 = vpop.permute.xlu1 %277 }
 0x13d   :  { %v289_v2 = vadd.f32 %v280_v18, %v263_v54  ;;  %v288_v53 = vadd.f32 %v278_v24, %v262_v1  ;;  %v868_v1 = vstv %s2627_s6  ;;  %s2649_s6 = sld [smem:[#allocation7 + $0x33]] }
 0x13e   :  { %707 = vrot.lane.b32.xlu0 %v699_v19, %s2797_s29  ;;  %673 = vrot.lane.b32.xlu1 %v662_v27, %s2802_s11  ;;  %v776_v27 = vstv %s2623_s28  ;;  %s2645_s28 = sld [smem:[#allocation7 + $0x2f]] }
 0x13f   :  { %v777_v36 = vmul.f32 %v776_v27, %v3073_v13  ;;  %v780_v47 = vmul.f32 %v776_v27, %v3093_v40 }
 0x140   :  { %v302_v32 = vpop.permute.xlu0 %301  ;;  %v282_v39 = vpop.permute.xlu1 %281 }
 0x141   :  { %v313_v55 = vadd.f32 %v302_v32, %v287_v48  ;;  %v290_v17 = vadd.f32 %v282_v39, %v264_v10  ;;  %v352_v32 = vmul.f32 %v348_v22, %v2967_v63  ;;  %v779_v63 = vmul.f32 %v776_v27, %v3081_v20 }
 0x142   :  { %711 = vrot.lane.b32.xlu0 %v701_v34, %s2797_s29  ;;  %709 = vrot.lane.b32.xlu1 %v700_v23, %s2797_s29  ;;  %v754_v23 = vmul.f32 %v750_v61, %v3093_v40  ;;  %v803_v22 = vmul.f32 %v802_v42, %v3073_v13  ;;  %v871_v10 = vmul.f32 %v868_v1, %v3169_v0 }
 0x144   :  { %v306_v44 = vpop.permute.xlu0 %305  ;;  %v304_v50 = vpop.permute.xlu1 %303 }
 0x145   :  { %v315_v6 = vadd.f32 %v306_v44, %v289_v2  ;;  %v314_v11 = vadd.f32 %v304_v50, %v288_v53  ;;  %v778_v44 = vmul.f32 %v776_v27, %v3086_v28  ;;  %v805_v50 = vmul.f32 %v802_v42, %v3081_v20 }
 0x146   :  { %733 = vrot.lane.b32.xlu0 %v725_v45, %s2798_s3  ;;  %713 = vrot.lane.b32.xlu1 %v702_v52, %s2797_s29  ;;  %v828_v52 = vstv %s2625_s4  ;;  %s2648_s4 = sld [smem:[#allocation7 + $0x32]] }
 0x147   :  { %v831_v61 = vmul.f32 %v828_v52, %v3081_v20 }
 0x148   :  { %v328_v60 = vpop.permute.xlu0 %327  ;;  %v308_v4 = vpop.permute.xlu1 %307 }
 0x149   :  { %v339_v3 = vadd.f32 %v328_v60, %v313_v55  ;;  %v316_v16 = vadd.f32 %v308_v4, %v290_v17  ;;  %v829_v55 = vmul.f32 %v828_v52, %v3073_v13  ;;  %v806_v60 = vmul.f32 %v802_v42, %v3093_v40 }
 0x14a   :  { %737 = vrot.lane.b32.xlu0 %v727_v51, %s2798_s3  ;;  %735 = vrot.lane.b32.xlu1 %v726_v29, %s2798_s3  ;;  %v869_v29 = vmul.f32 %v868_v1, %v3163_v62 }
 0x14b   :  { %v3111_v7 = vadd.f32 %v349_v56, %v339_v3  ;;  %v830_v3 = vmul.f32 %v828_v52, %v3086_v28 }
 0x14c   :  { %v332_v8 = vpop.permute.xlu0 %331  ;;  %v330_v14 = vpop.permute.xlu1 %329 }
 0x14d   :  { %v341_v12 = vadd.f32 %v332_v8, %v315_v6  ;;  %v340_v18 = vadd.f32 %v330_v14, %v314_v11  ;;  %v832_v6 = vmul.f32 %v828_v52, %v3093_v40  ;;  %v3173_v8 = vld [vmem:[#allocation2 + $0xc] sm:$0xff] }
 0x14e   :  { %759 = vrot.lane.b32.xlu0 %v751_v58, %s2799_s5  ;;  %739 = vrot.lane.b32.xlu1 %v728_v5, %s2798_s3  ;;  %v870_v5 = vmul.f32 %v868_v1, %v3173_v8 }
 0x14f   :  { %v3120_v19 = vadd.f32 %v351_v9, %v341_v12  ;;  %v3126_v24 = vadd.f32 %v350_v15, %v340_v18  ;;  %v894_v12 = vstv %s2628_s8  ;;  %v3181_v15 = vld [vmem:[#allocation2 + $0x24] sm:$0xff]  ;;  %s2633_s8 = sld [smem:[#allocation7 + $0x23]] }
 0x150   :  { %v3123_v21 = vpop.permute.xlu0 %367  ;;  %v334_v30 = vpop.permute.xlu1 %333 }
 0x151   :  { %v342_v34 = vadd.f32 %v334_v30, %v316_v16  ;;  %v379_v58 = vadd.f32 %v3123_v21, %v3111_v7  ;;  %v895_v21 = vmul.f32 %v894_v12, %v3163_v62 }
 0x152   :  { %763 = vrot.lane.b32.xlu0 %v753_v57, %s2799_s5  ;;  %761 = vrot.lane.b32.xlu1 %v752_v59, %s2799_s5  ;;  %v518_v57 = vstv %s2612_s10  ;;  %s2650_s10 = sld [smem:[#allocation7 + $0x34]] }
 0x153   :  { %v3135_v38 = vadd.f32 %v352_v32, %v342_v34  ;;  %v872_v32 = vmul.f32 %v868_v1, %v3181_v15 }
 0x154   :  { %v3132_v35 = vpop.permute.xlu0 %371  ;;  %v3137_v39 = vpop.permute.xlu1 %369 }
 0x155   :  { %v381_v17 = vadd.f32 %v3132_v35, %v3120_v19  ;;  %v380_v16 = vadd.f32 %v3137_v39, %v3126_v24  ;;  %v519_v35 = vmul.f32 %v518_v57, %v3007_v25 }
 0x156   :  { %785 = vrot.lane.b32.xlu0 %v777_v36, %s2800_s7  ;;  %765 = vrot.lane.b32.xlu1 %v754_v23, %s2799_s5 }
 0x158   :  { %v394_v41 = vpop.permute.xlu0 %393  ;;  %v3143_v43 = vpop.permute.xlu1 %373 }
 0x159   :  { %v405_v11 = vadd.f32 %v394_v41, %v379_v58  ;;  %v897_v41 = vmul.f32 %v894_v12, %v3169_v0  ;;  %v382_v24 = vadd.f32 %v3143_v43, %v3135_v38  ;;  %v521_v43 = vmul.f32 %v518_v57, %v3013_v31 }
 0x15a   :  { %789 = vrot.lane.b32.xlu0 %v779_v63, %s2800_s7  ;;  %787 = vrot.lane.b32.xlu1 %v778_v44, %s2800_s7  ;;  %v920_v63 = vstv %s2629_s12  ;;  %s2651_s12 = sld [smem:[#allocation7 + $0x35]] }
 0x15b   :  { %v921_v38 = vmul.f32 %v920_v63, %v3163_v62  ;;  %v923_v31 = vmul.f32 %v920_v63, %v3169_v0 }
 0x15c   :  { %v398_v45 = vpop.permute.xlu0 %397  ;;  %v396_v46 = vpop.permute.xlu1 %395 }
 0x15d   :  { %v407_v27 = vadd.f32 %v398_v45, %v381_v17  ;;  %v406_v34 = vadd.f32 %v396_v46, %v380_v16 }
 0x15e   :  { %811 = vrot.lane.b32.xlu0 %v803_v22, %s2801_s9  ;;  %791 = vrot.lane.b32.xlu1 %v780_v47, %s2800_s7  ;;  %v896_v22 = vmul.f32 %v894_v12, %v3173_v8 }
 0x160   :  { %v420_v48 = vpop.permute.xlu0 %419  ;;  %v3153_v26 = vpop.permute.xlu1 %399 }
 0x161   :  { %v431_v18 = vadd.f32 %v420_v48, %v405_v11  ;;  %v408_v25 = vadd.f32 %v3153_v26, %v382_v24  ;;  %v520_v26 = vmul.f32 %v518_v57, %v3017_v33  ;;  %v522_v33 = vmul.f32 %v518_v57, %v3023_v37  ;;  %v3250_v24 = vld [vmem:[#allocation2 + $0x5] sm:$0xff] }
 0x162   :  { %815 = vrot.lane.b32.xlu0 %v805_v50, %s2801_s9  ;;  %813 = vrot.lane.b32.xlu1 %v804_v49, %s2801_s9 }
 0x164   :  { %v424_v54 = vpop.permute.xlu0 %423  ;;  %v422_v56 = vpop.permute.xlu1 %421 }
 0x165   :  { %v433_v36 = vadd.f32 %v424_v54, %v407_v27  ;;  %v432_v39 = vadd.f32 %v422_v56, %v406_v34  ;;  %v898_v56 = vmul.f32 %v894_v12, %v3181_v15  ;;  %v924_v12 = vmul.f32 %v920_v63, %v3181_v15 }
 0x166   :  { %837 = vrot.lane.b32.xlu0 %v829_v55, %s2802_s11  ;;  %817 = vrot.lane.b32.xlu1 %v806_v60, %s2801_s9 }
 0x168   :  { %v446_v51 = vpop.permute.xlu0 %445  ;;  %v426_v2 = vpop.permute.xlu1 %425 }
 0x169   :  { %v457_v30 = vadd.f32 %v446_v51, %v431_v18  ;;  %v434_v52 = vadd.f32 %v426_v2, %v408_v25  ;;  %v3256_v25 = vld [vmem:[#allocation2 + $0x1d] sm:$0xff] }
 0x16a   :  { %841 = vrot.lane.b32.xlu0 %v831_v61, %s2802_s11  ;;  %839 = vrot.lane.b32.xlu1 %v830_v3, %s2802_s11 }
 0x16c   :  { %v450_v4 = vpop.permute.xlu0 %449  ;;  %v448_v53 = vpop.permute.xlu1 %447 }
 0x16d   :  { %v459_v42 = vadd.f32 %v450_v4, %v433_v36  ;;  %v458_v46 = vadd.f32 %v448_v53, %v432_v39  ;;  %v946_v4 = vstv %s2630_s13  ;;  %v922_v53 = vmul.f32 %v920_v63, %v3173_v8  ;;  %s2652_s13 = sld [smem:[#allocation7 + $0x36]] }
 0x16e   :  { %877 = vrot.lane.b32.xlu0 %v869_v29, %s2797_s29  ;;  %843 = vrot.lane.b32.xlu1 %v832_v6, %s2802_s11  ;;  %v949_v37 = vmul.f32 %v946_v4, %v3169_v0  ;;  %v948_v18 = vmul.f32 %v946_v4, %v3173_v8  ;;  %v950_v16 = vmul.f32 %v946_v4, %v3181_v15  ;;  %v1038_v39 = vstv %s2634_s16  ;;  %s2656_s16 = sld [smem:[#allocation7 + $0x3a]] }
 0x170   :  { %v472_v9 = vpop.permute.xlu0 %471  ;;  %v452_v14 = vpop.permute.xlu1 %451 }
 0x171   :  { %v483_v19 = vadd.f32 %v472_v9, %v457_v30  ;;  %v460_v60 = vadd.f32 %v452_v14, %v434_v52  ;;  %v947_v9 = vmul.f32 %v946_v4, %v3163_v62  ;;  %v1041_v52 = vmul.f32 %v1038_v39, %v3256_v25 }
 0x172   :  { %881 = vrot.lane.b32.xlu0 %v871_v10, %s2797_s29  ;;  %879 = vrot.lane.b32.xlu1 %v870_v5, %s2797_s29  ;;  %v972_v5 = vstv %s2631_s14  ;;  %s2653_s14 = sld [smem:[#allocation7 + $0x37]] }
 0x173   :  { %v975_v30 = vmul.f32 %v972_v5, %v3169_v0  ;;  %v974_v34 = vmul.f32 %v972_v5, %v3173_v8 }
 0x174   :  { %v476_v7 = vpop.permute.xlu0 %475  ;;  %v474_v59 = vpop.permute.xlu1 %473 }
 0x175   :  { %v485_v47 = vadd.f32 %v476_v7, %v459_v42  ;;  %v484_v49 = vadd.f32 %v474_v59, %v458_v46  ;;  %v998_v59 = vstv %s2632_s15  ;;  %s2655_s15 = sld [smem:[#allocation7 + $0x39]] }
 0x176   :  { %903 = vrot.lane.b32.xlu0 %v895_v21, %s2798_s3  ;;  %883 = vrot.lane.b32.xlu1 %v872_v32, %s2797_s29  ;;  %v973_v21 = vmul.f32 %v972_v5, %v3163_v62  ;;  %v1001_v63 = vmul.f32 %v998_v59, %v3169_v0 }
 0x178   :  { %v498_v23 = vpop.permute.xlu0 %497  ;;  %v478_v45 = vpop.permute.xlu1 %477 }
 0x179   :  { %v509_v44 = vadd.f32 %v498_v23, %v483_v19  ;;  %v486_v2 = vadd.f32 %v478_v45, %v460_v60  ;;  %v999_v19 = vmul.f32 %v998_v59, %v3163_v62  ;;  %v976_v23 = vmul.f32 %v972_v5, %v3181_v15 }
 0x17a   :  { %907 = vrot.lane.b32.xlu0 %v897_v41, %s2798_s3  ;;  %905 = vrot.lane.b32.xlu1 %v896_v22, %s2798_s3  ;;  %v1039_v22 = vmul.f32 %v1038_v39, %v3250_v24 }
 0x17b   :  { %v3199_v48 = vadd.f32 %v519_v35, %v509_v44  ;;  %v1000_v44 = vmul.f32 %v998_v59, %v3173_v8 }
 0x17c   :  { %v502_v50 = vpop.permute.xlu0 %501  ;;  %v500_v55 = vpop.permute.xlu1 %499 }
 0x17d   :  { %v511_v54 = vadd.f32 %v502_v50, %v485_v47  ;;  %v510_v51 = vadd.f32 %v500_v55, %v484_v49  ;;  %v1002_v47 = vmul.f32 %v998_v59, %v3181_v15  ;;  %v3260_v50 = vld [vmem:[#allocation2 + $0xd] sm:$0xff] }
 0x17e   :  { %929 = vrot.lane.b32.xlu0 %v921_v38, %s2799_s5  ;;  %909 = vrot.lane.b32.xlu1 %v898_v56, %s2798_s3  ;;  %v1040_v56 = vmul.f32 %v1038_v39, %v3260_v50 }
 0x17f   :  { %v3207_v61 = vadd.f32 %v521_v43, %v511_v54  ;;  %v3213_v3 = vadd.f32 %v520_v26, %v510_v51  ;;  %v1064_v54 = vstv %s2635_s17  ;;  %v3268_v26 = vld [vmem:[#allocation2 + $0x25] sm:$0xff]  ;;  %s2640_s17 = sld [smem:[#allocation7 + $0x2a]] }
 0x180   :  { %v3210_v1 = vpop.permute.xlu0 %537  ;;  %v504_v29 = vpop.permute.xlu1 %503 }
 0x181   :  { %v512_v6 = vadd.f32 %v504_v29, %v486_v2  ;;  %v549_v38 = vadd.f32 %v3210_v1, %v3199_v48  ;;  %v1065_v1 = vmul.f32 %v1064_v54, %v3250_v24 }
 0x182   :  { %933 = vrot.lane.b32.xlu0 %v923_v31, %s2799_s5  ;;  %931 = vrot.lane.b32.xlu1 %v922_v53, %s2799_s5  ;;  %v688_v31 = vstv %s2619_s18  ;;  %s2657_s18 = sld [smem:[#allocation7 + $0x3b]] }
 0x183   :  { %v3222_v10 = vadd.f32 %v522_v33, %v512_v6  ;;  %v1042_v33 = vmul.f32 %v1038_v39, %v3268_v26 }
 0x184   :  { %v3219_v58 = vpop.permute.xlu0 %541  ;;  %v3224_v11 = vpop.permute.xlu1 %539 }
 0x185   :  { %v551_v60 = vadd.f32 %v3219_v58, %v3207_v61  ;;  %v550_v2 = vadd.f32 %v3224_v11, %v3213_v3  ;;  %v689_v58 = vmul.f32 %v688_v31, %v3073_v13 }
 0x186   :  { %955 = vrot.lane.b32.xlu0 %v947_v9, %s2800_s7  ;;  %935 = vrot.lane.b32.xlu1 %v924_v12, %s2799_s5 }
 0x188   :  { %v564_v14 = vpop.permute.xlu0 %563  ;;  %v3230_v17 = vpop.permute.xlu1 %543 }
 0x189   :  { %v575_v49 = vadd.f32 %v564_v14, %v549_v38  ;;  %v1067_v14 = vmul.f32 %v1064_v54, %v3256_v25  ;;  %v552_v3 = vadd.f32 %v3230_v17, %v3222_v10  ;;  %v691_v17 = vmul.f32 %v688_v31, %v3081_v20 }
 0x18a   :  { %959 = vrot.lane.b32.xlu0 %v949_v37, %s2800_s7  ;;  %957 = vrot.lane.b32.xlu1 %v948_v18, %s2800_s7  ;;  %v1090_v37 = vstv %s2636_s19  ;;  %s2658_s19 = sld [smem:[#allocation7 + $0x3c]] }
 0x18b   :  { %v1091_v10 = vmul.f32 %v1090_v37, %v3250_v24  ;;  %v1093_v20 = vmul.f32 %v1090_v37, %v3256_v25 }
 0x18c   :  { %v568_v7 = vpop.permute.xlu0 %567  ;;  %v566_v57 = vpop.permute.xlu1 %565 }
 0x18d   :  { %v577_v4 = vadd.f32 %v568_v7, %v551_v60  ;;  %v576_v6 = vadd.f32 %v566_v57, %v550_v2 }
 0x18e   :  { %981 = vrot.lane.b32.xlu0 %v973_v21, %s2801_s9  ;;  %961 = vrot.lane.b32.xlu1 %v950_v16, %s2800_s7  ;;  %v1066_v21 = vmul.f32 %v1064_v54, %v3260_v50 }
 0x190   :  { %v590_v27 = vpop.permute.xlu0 %589  ;;  %v3240_v32 = vpop.permute.xlu1 %569 }
 0x191   :  { %v601_v51 = vadd.f32 %v590_v27, %v575_v49  ;;  %v578_v13 = vadd.f32 %v3240_v32, %v552_v3  ;;  %v690_v32 = vmul.f32 %v688_v31, %v3086_v28  ;;  %v692_v28 = vmul.f32 %v688_v31, %v3093_v40  ;;  %v3337_v3 = vld [vmem:[#allocation2 + $0x6] sm:$0xff] }
 0x192   :  { %985 = vrot.lane.b32.xlu0 %v975_v30, %s2801_s9  ;;  %983 = vrot.lane.b32.xlu1 %v974_v34, %s2801_s9 }
 0x194   :  { %v594_v36 = vpop.permute.xlu0 %593  ;;  %v592_v35 = vpop.permute.xlu1 %591 }
 0x195   :  { %v603_v9 = vadd.f32 %v594_v36, %v577_v4  ;;  %v602_v11 = vadd.f32 %v592_v35, %v576_v6  ;;  %v1068_v35 = vmul.f32 %v1064_v54, %v3268_v26  ;;  %v1094_v54 = vmul.f32 %v1090_v37, %v3268_v26 }
 0x196   :  { %1007 = vrot.lane.b32.xlu0 %v999_v19, %s2802_s11  ;;  %987 = vrot.lane.b32.xlu1 %v976_v23, %s2801_s9 }
 0x198   :  { %v616_v41 = vpop.permute.xlu0 %615  ;;  %v596_v42 = vpop.permute.xlu1 %595 }
 0x199   :  { %v627_v29 = vadd.f32 %v616_v41, %v601_v51  ;;  %v604_v59 = vadd.f32 %v596_v42, %v578_v13  ;;  %v3343_v13 = vld [vmem:[#allocation2 + $0x1e] sm:$0xff] }
 0x19a   :  { %1011 = vrot.lane.b32.xlu0 %v1001_v63, %s2802_s11  ;;  %1009 = vrot.lane.b32.xlu1 %v1000_v44, %s2802_s11 }
 0x19c   :  { %v620_v45 = vpop.permute.xlu0 %619  ;;  %v618_v46 = vpop.permute.xlu1 %617 }
 0x19d   :  { %v629_v5 = vadd.f32 %v620_v45, %v603_v9  ;;  %v628_v57 = vadd.f32 %v618_v46, %v602_v11  ;;  %v1116_v45 = vstv %s2637_s20  ;;  %v1092_v46 = vmul.f32 %v1090_v37, %v3260_v50  ;;  %s2659_s20 = sld [smem:[#allocation7 + $0x3d]] }
 0x19e   :  { %1047 = vrot.lane.b32.xlu0 %v1039_v22, %s2797_s29  ;;  %1013 = vrot.lane.b32.xlu1 %v1002_v47, %s2802_s11  ;;  %v1119_v40 = vmul.f32 %v1116_v45, %v3256_v25  ;;  %v1118_v51 = vmul.f32 %v1116_v45, %v3260_v50  ;;  %v1120_v2 = vmul.f32 %v1116_v45, %v3268_v26  ;;  %v1208_v11 = vstv %s2641_s24  ;;  %s2663_s24 = sld [smem:[#allocation7 + $0x41]] }
 0x1a0   :  { %v642_v43 = vpop.permute.xlu0 %641  ;;  %v622_v55 = vpop.permute.xlu1 %621 }
 0x1a1   :  { %v653_v61 = vadd.f32 %v642_v43, %v627_v29  ;;  %v630_v23 = vadd.f32 %v622_v55, %v604_v59  ;;  %v1117_v43 = vmul.f32 %v1116_v45, %v3250_v24  ;;  %v1211_v59 = vmul.f32 %v1208_v11, %v3343_v13 }
 0x1a2   :  { %1051 = vrot.lane.b32.xlu0 %v1041_v52, %s2797_s29  ;;  %1049 = vrot.lane.b32.xlu1 %v1040_v56, %s2797_s29  ;;  %v1142_v56 = vstv %s2638_s21  ;;  %s2660_s21 = sld [smem:[#allocation7 + $0x3e]] }
 0x1a3   :  { %v1145_v29 = vmul.f32 %v1142_v56, %v3256_v25  ;;  %v1144_v6 = vmul.f32 %v1142_v56, %v3260_v50 }
 0x1a4   :  { %v646_v48 = vpop.permute.xlu0 %645  ;;  %v644_v53 = vpop.permute.xlu1 %643 }
 0x1a5   :  { %v655_v16 = vadd.f32 %v646_v48, %v629_v5  ;;  %v654_v34 = vadd.f32 %v644_v53, %v628_v57  ;;  %v1168_v53 = vstv %s2639_s23  ;;  %s2662_s23 = sld [smem:[#allocation7 + $0x40]] }
 0x1a6   :  { %1073 = vrot.lane.b32.xlu0 %v1065_v1, %s2798_s3  ;;  %1053 = vrot.lane.b32.xlu1 %v1042_v33, %s2797_s29  ;;  %v1143_v1 = vmul.f32 %v1142_v56, %v3250_v24  ;;  %v1171_v37 = vmul.f32 %v1168_v53, %v3256_v25 }
 0x1a8   :  { %v668_v12 = vpop.permute.xlu0 %667  ;;  %v648_v7 = vpop.permute.xlu1 %647 }
 0x1a9   :  { %v679_v18 = vadd.f32 %v668_v12, %v653_v61  ;;  %v656_v42 = vadd.f32 %v648_v7, %v630_v23  ;;  %v1169_v61 = vmul.f32 %v1168_v53, %v3250_v24  ;;  %v1146_v12 = vmul.f32 %v1142_v56, %v3268_v26 }
 0x1aa   :  { %1077 = vrot.lane.b32.xlu0 %v1067_v14, %s2798_s3  ;;  %1075 = vrot.lane.b32.xlu1 %v1066_v21, %s2798_s3  ;;  %v1209_v21 = vmul.f32 %v1208_v11, %v3337_v3 }
 0x1ab   :  { %v3286_v27 = vadd.f32 %v689_v58, %v679_v18  ;;  %v1170_v18 = vmul.f32 %v1168_v53, %v3260_v50 }
 0x1ac   :  { %v672_v30 = vpop.permute.xlu0 %671  ;;  %v670_v19 = vpop.permute.xlu1 %669 }
 0x1ad   :  { %v681_v36 = vadd.f32 %v672_v30, %v655_v16  ;;  %v680_v41 = vadd.f32 %v670_v19, %v654_v34  ;;  %v1172_v16 = vmul.f32 %v1168_v53, %v3268_v26  ;;  %v3347_v30 = vld [vmem:[#allocation2 + $0xe] sm:$0xff] }
 0x1ae   :  { %1099 = vrot.lane.b32.xlu0 %v1091_v10, %s2799_s5  ;;  %1079 = vrot.lane.b32.xlu1 %v1068_v35, %s2798_s3  ;;  %v1210_v35 = vmul.f32 %v1208_v11, %v3347_v30 }
 0x1af   :  { %v3294_v63 = vadd.f32 %v691_v17, %v681_v36  ;;  %v3300_v44 = vadd.f32 %v690_v32, %v680_v41  ;;  %v1234_v36 = vstv %s2642_s25  ;;  %v3355_v32 = vld [vmem:[#allocation2 + $0x26] sm:$0xff]  ;;  %s2647_s25 = sld [smem:[#allocation7 + $0x31]] }
 0x1b0   :  { %v3297_v39 = vpop.permute.xlu0 %707  ;;  %v674_v22 = vpop.permute.xlu1 %673 }
 0x1b1   :  { %v682_v47 = vadd.f32 %v674_v22, %v656_v42  ;;  %v719_v10 = vadd.f32 %v3297_v39, %v3286_v27  ;;  %v1235_v39 = vmul.f32 %v1234_v36, %v3337_v3 }
 0x1b2   :  { %1103 = vrot.lane.b32.xlu0 %v1093_v20, %s2799_s5  ;;  %1101 = vrot.lane.b32.xlu1 %v1092_v46, %s2799_s5  ;;  %v858_v20 = vstv %s2626_s26  ;;  %s2664_s26 = sld [smem:[#allocation7 + $0x42]] }
 0x1b3   :  { %v3309_v52 = vadd.f32 %v692_v28, %v682_v47  ;;  %v1212_v28 = vmul.f32 %v1208_v11, %v3355_v32 }
 0x1b4   :  { %v3306_v38 = vpop.permute.xlu0 %711  ;;  %v3311_v49 = vpop.permute.xlu1 %709 }
 0x1b5   :  { %v721_v23 = vadd.f32 %v3306_v38, %v3294_v63  ;;  %v720_v42 = vadd.f32 %v3311_v49, %v3300_v44  ;;  %v859_v38 = vmul.f32 %v858_v20, %v3163_v62 }
 0x1b6   :  { %1125 = vrot.lane.b32.xlu0 %v1117_v43, %s2800_s7  ;;  %1105 = vrot.lane.b32.xlu1 %v1094_v54, %s2799_s5 }
 0x1b8   :  { %v734_v55 = vpop.permute.xlu0 %733  ;;  %v3317_v60 = vpop.permute.xlu1 %713 }
 0x1b9   :  { %v745_v34 = vadd.f32 %v734_v55, %v719_v10  ;;  %v1237_v55 = vmul.f32 %v1234_v36, %v3343_v13  ;;  %v722_v44 = vadd.f32 %v3317_v60, %v3309_v52  ;;  %v861_v60 = vmul.f32 %v858_v20, %v3169_v0 }
 0x1ba   :  { %1129 = vrot.lane.b32.xlu0 %v1119_v40, %s2800_s7  ;;  %1127 = vrot.lane.b32.xlu1 %v1118_v51, %s2800_s7  ;;  %v1260_v40 = vstv %s2643_s0  ;;  %s2665_s0 = sld [smem:[#allocation7 + $0x43]] }
 0x1bb   :  { %v1261_v52 = vmul.f32 %v1260_v40, %v3337_v3  ;;  %v1263_v0 = vmul.f32 %v1260_v40, %v3343_v13 }
 0x1bc   :  { %v738_v48 = vpop.permute.xlu0 %737  ;;  %v736_v31 = vpop.permute.xlu1 %735 }
 0x1bd   :  { %v747_v45 = vadd.f32 %v738_v48, %v721_v23  ;;  %v746_v47 = vadd.f32 %v736_v31, %v720_v42 }
 0x1be   :  { %1151 = vrot.lane.b32.xlu0 %v1143_v1, %s2801_s9  ;;  %1131 = vrot.lane.b32.xlu1 %v1120_v2, %s2800_s7  ;;  %v1236_v1 = vmul.f32 %v1234_v36, %v3347_v30 }
 0x1c0   :  { %v760_v4 = vpop.permute.xlu0 %759  ;;  %v3327_v33 = vpop.permute.xlu1 %739 }
 0x1c1   :  { %v771_v41 = vadd.f32 %v760_v4, %v745_v34  ;;  %v748_v62 = vadd.f32 %v3327_v33, %v722_v44  ;;  %v860_v33 = vmul.f32 %v858_v20, %v3173_v8  ;;  %v862_v8 = vmul.f32 %v858_v20, %v3181_v15  ;;  %v3422_v44 = vld [vmem:[#allocation2 + $0x30] sm:$0xff] }
 0x1c2   :  { %1155 = vrot.lane.b32.xlu0 %v1145_v29, %s2801_s9  ;;  %1153 = vrot.lane.b32.xlu1 %v1144_v6, %s2801_s9  ;;  %v1312_v15 = vstv %s2645_s28  ;;  %s2667_s28 = sld [smem:[#allocation7 + $0x45]] }
 0x1c4   :  { %v764_v9 = vpop.permute.xlu0 %763  ;;  %v762_v58 = vpop.permute.xlu1 %761 }
 0x1c5   :  { %v773_v43 = vadd.f32 %v764_v9, %v747_v45  ;;  %v772_v49 = vadd.f32 %v762_v58, %v746_v47  ;;  %v1238_v58 = vmul.f32 %v1234_v36, %v3355_v32  ;;  %v1264_v36 = vmul.f32 %v1260_v40, %v3355_v32 }
 0x1c6   :  { %1177 = vrot.lane.b32.xlu0 %v1169_v61, %s2802_s11  ;;  %1157 = vrot.lane.b32.xlu1 %v1146_v12, %s2801_s9  ;;  %v1314_v47 = vmul.f32 %v1312_v15, %v3347_v30 }
 0x1c8   :  { %v786_v14 = vpop.permute.xlu0 %785  ;;  %v766_v5 = vpop.permute.xlu1 %765 }
 0x1c9   :  { %v797_v22 = vadd.f32 %v786_v14, %v771_v41  ;;  %v774_v53 = vadd.f32 %v766_v5, %v748_v62  ;;  %v3428_v62 = vld [vmem:[#allocation2 + $0x48] sm:$0xff] }
 0x1ca   :  { %1181 = vrot.lane.b32.xlu0 %v1171_v37, %s2802_s11  ;;  %1179 = vrot.lane.b32.xlu1 %v1170_v18, %s2802_s11 }
 0x1cc   :  { %v790_v7 = vpop.permute.xlu0 %789  ;;  %v788_v57 = vpop.permute.xlu1 %787 }
 0x1cd   :  { %v799_v56 = vadd.f32 %v790_v7, %v773_v43  ;;  %v798_v31 = vadd.f32 %v788_v57, %v772_v49  ;;  %v1286_v7 = vstv %s2644_s27  ;;  %v1262_v57 = vmul.f32 %v1260_v40, %v3347_v30  ;;  %s2666_s27 = sld [smem:[#allocation7 + $0x44]] }
 0x1ce   :  { %1217 = vrot.lane.b32.xlu0 %v1209_v21, %s2797_s29  ;;  %1183 = vrot.lane.b32.xlu1 %v1172_v16, %s2802_s11  ;;  %v1288_v41 = vmul.f32 %v1286_v7, %v3347_v30  ;;  %v1290_v42 = vmul.f32 %v1286_v7, %v3355_v32  ;;  %v1378_v49 = vstv %s2648_s4  ;;  %s2670_s4 = sld [smem:[#allocation7 + $0x48]] }
 0x1d0   :  { %v812_v17 = vpop.permute.xlu0 %811  ;;  %v792_v19 = vpop.permute.xlu1 %791 }
 0x1d1   :  { %v823_v63 = vadd.f32 %v812_v17, %v797_v22  ;;  %v800_v12 = vadd.f32 %v792_v19, %v774_v53  ;;  %v1287_v17 = vmul.f32 %v1286_v7, %v3337_v3  ;;  %v1315_v22 = vmul.f32 %v1312_v15, %v3343_v13 }
 0x1d2   :  { %1221 = vrot.lane.b32.xlu0 %v1211_v59, %s2797_s29  ;;  %1219 = vrot.lane.b32.xlu1 %v1210_v35, %s2797_s29  ;;  %v1289_v35 = vmul.f32 %v1286_v7, %v3343_v13  ;;  %v1381_v53 = vmul.f32 %v1378_v49, %v3428_v62 }
 0x1d4   :  { %v816_v27 = vpop.permute.xlu0 %815  ;;  %v814_v46 = vpop.permute.xlu1 %813 }
 0x1d5   :  { %v825_v2 = vadd.f32 %v816_v27, %v799_v56  ;;  %v824_v6 = vadd.f32 %v814_v46, %v798_v31  ;;  %v1338_v46 = vstv %s2646_s30  ;;  %s2669_s30 = sld [smem:[#allocation7 + $0x47]] }
 0x1d6   :  { %1243 = vrot.lane.b32.xlu0 %v1235_v39, %s2798_s3  ;;  %1223 = vrot.lane.b32.xlu1 %v1212_v28, %s2797_s29  ;;  %v1313_v39 = vmul.f32 %v1312_v15, %v3337_v3  ;;  %v1341_v40 = vmul.f32 %v1338_v46, %v3343_v13 }
 0x1d8   :  { %v838_v54 = vpop.permute.xlu0 %837  ;;  %v818_v48 = vpop.permute.xlu1 %817 }
 0x1d9   :  { %v849_v51 = vadd.f32 %v838_v54, %v823_v63  ;;  %v826_v5 = vadd.f32 %v818_v48, %v800_v12  ;;  %v1339_v63 = vmul.f32 %v1338_v46, %v3337_v3  ;;  %v1316_v54 = vmul.f32 %v1312_v15, %v3355_v32 }
 0x1da   :  { %1247 = vrot.lane.b32.xlu0 %v1237_v55, %s2798_s3  ;;  %1245 = vrot.lane.b32.xlu1 %v1236_v1, %s2798_s3  ;;  %v1379_v1 = vmul.f32 %v1378_v49, %v3422_v44 }
 0x1db   :  { %v3373_v4 = vadd.f32 %v859_v38, %v849_v51  ;;  %v1340_v51 = vmul.f32 %v1338_v46, %v3347_v30 }
 0x1dc   :  { %v842_v29 = vpop.permute.xlu0 %841  ;;  %v840_v61 = vpop.permute.xlu1 %839 }
 0x1dd   :  { %v851_v9 = vadd.f32 %v842_v29, %v825_v2  ;;  %v850_v14 = vadd.f32 %v840_v61, %v824_v6  ;;  %v1342_v2 = vmul.f32 %v1338_v46, %v3355_v32 }
 0x1de   :  { %1269 = vrot.lane.b32.xlu0 %v1261_v52, %s2799_s5  ;;  %1249 = vrot.lane.b32.xlu1 %v1238_v58, %s2798_s3  ;;  %v3434_v52 = vld [vmem:[#allocation2 + $0x38] sm:$0xff] }
 0x1df   :  { %v3381_v37 = vadd.f32 %v861_v60, %v851_v9  ;;  %v3387_v18 = vadd.f32 %v860_v33, %v850_v14  ;;  %v1404_v9 = vstv %s2649_s6  ;;  %v1380_v58 = vmul.f32 %v1378_v49, %v3434_v52  ;;  %v3441_v14 = vld [vmem:[#allocation2 + $0x50] sm:$0xff]  ;;  %s2671_s6 = sld [smem:[#allocation7 + $0x49]] }
 0x1e0   :  { %v3384_v11 = vpop.permute.xlu0 %877  ;;  %v844_v21 = vpop.permute.xlu1 %843 }
 0x1e1   :  { %v852_v16 = vadd.f32 %v844_v21, %v826_v5  ;;  %v889_v29 = vadd.f32 %v3384_v11, %v3373_v4  ;;  %v1405_v11 = vmul.f32 %v1404_v9, %v3422_v44 }
 0x1e2   :  { %1273 = vrot.lane.b32.xlu0 %v1263_v0, %s2799_s5  ;;  %1271 = vrot.lane.b32.xlu1 %v1262_v57, %s2799_s5  ;;  %v1028_v0 = vstv %s2633_s8  ;;  %s2654_s8 = sld [smem:[#allocation7 + $0x38]] }
 0x1e3   :  { %v3394_v59 = vadd.f32 %v862_v8, %v852_v16  ;;  %v1382_v8 = vmul.f32 %v1378_v49, %v3441_v14 }
 0x1e4   :  { %v882_v10 = vpop.permute.xlu0 %881  ;;  %v3396_v34 = vpop.permute.xlu1 %879 }
 0x1e5   :  { %v891_v33 = vadd.f32 %v882_v10, %v3381_v37  ;;  %v890_v5 = vadd.f32 %v3396_v34, %v3387_v18 }
 0x1e6   :  { %1295 = vrot.lane.b32.xlu0 %v1287_v17, %s2800_s7  ;;  %1275 = vrot.lane.b32.xlu1 %v1264_v36, %s2799_s5  ;;  %v1029_v17 = vmul.f32 %v1028_v0, %v3250_v24 }
 0x1e8   :  { %v904_v19 = vpop.permute.xlu0 %903  ;;  %v3402_v23 = vpop.permute.xlu1 %883 }
 0x1e9   :  { %v915_v6 = vadd.f32 %v904_v19, %v889_v29  ;;  %v1407_v19 = vmul.f32 %v1404_v9, %v3428_v62  ;;  %v892_v18 = vadd.f32 %v3402_v23, %v3394_v59  ;;  %v1031_v23 = vmul.f32 %v1028_v0, %v3256_v25 }
 0x1ea   :  { %1299 = vrot.lane.b32.xlu0 %v1289_v35, %s2800_s7  ;;  %1297 = vrot.lane.b32.xlu1 %v1288_v41, %s2800_s7  ;;  %v1430_v35 = vstv %s2650_s10  ;;  %s2672_s10 = sld [smem:[#allocation7 + $0x4a]] }
 0x1eb   :  { %v1431_v59 = vmul.f32 %v1430_v35, %v3422_v44  ;;  %v1433_v25 = vmul.f32 %v1430_v35, %v3428_v62 }
 0x1ec   :  { %v908_v27 = vpop.permute.xlu0 %907  ;;  %v906_v20 = vpop.permute.xlu1 %905 }
 0x1ed   :  { %v917_v7 = vadd.f32 %v908_v27, %v891_v33  ;;  %v916_v37 = vadd.f32 %v906_v20, %v890_v5 }
 0x1ee   :  { %1321 = vrot.lane.b32.xlu0 %v1313_v39, %s2801_s9  ;;  %1301 = vrot.lane.b32.xlu1 %v1290_v42, %s2800_s7  ;;  %v1406_v39 = vmul.f32 %v1404_v9, %v3434_v52 }
 0x1f0   :  { %v930_v45 = vpop.permute.xlu0 %929  ;;  %v3412_v28 = vpop.permute.xlu1 %909 }
 0x1f1   :  { %v941_v12 = vadd.f32 %v930_v45, %v915_v6  ;;  %v918_v24 = vadd.f32 %v3412_v28, %v892_v18  ;;  %v1030_v28 = vmul.f32 %v1028_v0, %v3260_v50  ;;  %v1032_v50 = vmul.f32 %v1028_v0, %v3268_v26  ;;  %v3506_v18 = vld [vmem:[#allocation2 + $0x31] sm:$0xff] }
 0x1f2   :  { %1325 = vrot.lane.b32.xlu0 %v1315_v22, %s2801_s9  ;;  %1323 = vrot.lane.b32.xlu1 %v1314_v47, %s2801_s9  ;;  %v1482_v26 = vstv %s2652_s13  ;;  %s2674_s13 = sld [smem:[#allocation7 + $0x4c]] }
 0x1f4   :  { %v934_v43 = vpop.permute.xlu0 %933  ;;  %v932_v38 = vpop.permute.xlu1 %931 }
 0x1f5   :  { %v943_v16 = vadd.f32 %v934_v43, %v917_v7  ;;  %v942_v34 = vadd.f32 %v932_v38, %v916_v37  ;;  %v1408_v38 = vmul.f32 %v1404_v9, %v3441_v14  ;;  %v1434_v9 = vmul.f32 %v1430_v35, %v3441_v14 }
 0x1f6   :  { %1347 = vrot.lane.b32.xlu0 %v1339_v63, %s2802_s11  ;;  %1327 = vrot.lane.b32.xlu1 %v1316_v54, %s2801_s9  ;;  %v1484_v37 = vmul.f32 %v1482_v26, %v3434_v52 }
 0x1f8   :  { %v956_v55 = vpop.permute.xlu0 %955  ;;  %v936_v56 = vpop.permute.xlu1 %935 }
 0x1f9   :  { %v967_v21 = vadd.f32 %v956_v55, %v941_v12  ;;  %v944_v46 = vadd.f32 %v936_v56, %v918_v24  ;;  %v3512_v24 = vld [vmem:[#allocation2 + $0x49] sm:$0xff] }
 0x1fa   :  { %1351 = vrot.lane.b32.xlu0 %v1341_v40, %s2802_s11  ;;  %1349 = vrot.lane.b32.xlu1 %v1340_v51, %s2802_s11 }
 0x1fc   :  { %v960_v48 = vpop.permute.xlu0 %959  ;;  %v958_v31 = vpop.permute.xlu1 %957 }
 0x1fd   :  { %v969_v15 = vadd.f32 %v960_v48, %v943_v16  ;;  %v968_v20 = vadd.f32 %v958_v31, %v942_v34  ;;  %v1456_v48 = vstv %s2651_s12  ;;  %v1432_v31 = vmul.f32 %v1430_v35, %v3434_v52  ;;  %s2673_s12 = sld [smem:[#allocation7 + $0x4b]] }
 0x1fe   :  { %1387 = vrot.lane.b32.xlu0 %v1379_v1, %s2797_s29  ;;  %1353 = vrot.lane.b32.xlu1 %v1342_v2, %s2802_s11  ;;  %v1458_v12 = vmul.f32 %v1456_v48, %v3434_v52  ;;  %v1460_v5 = vmul.f32 %v1456_v48, %v3441_v14  ;;  %v1548_v34 = vstv %s2655_s15  ;;  %s2677_s15 = sld [smem:[#allocation7 + $0x4f]] }
 0x200   :  { %v982_v60 = vpop.permute.xlu0 %981  ;;  %v962_v61 = vpop.permute.xlu1 %961 }
 0x201   :  { %v993_v10 = vadd.f32 %v982_v60, %v967_v21  ;;  %v970_v54 = vadd.f32 %v962_v61, %v944_v46  ;;  %v1457_v60 = vmul.f32 %v1456_v48, %v3422_v44  ;;  %v1485_v21 = vmul.f32 %v1482_v26, %v3428_v62 }
 0x202   :  { %1391 = vrot.lane.b32.xlu0 %v1381_v53, %s2797_s29  ;;  %1389 = vrot.lane.b32.xlu1 %v1380_v58, %s2797_s29  ;;  %v1459_v58 = vmul.f32 %v1456_v48, %v3428_v62  ;;  %v1551_v46 = vmul.f32 %v1548_v34, %v3512_v24 }
 0x204   :  { %v986_v4 = vpop.permute.xlu0 %985  ;;  %v984_v57 = vpop.permute.xlu1 %983 }
 0x205   :  { %v995_v42 = vadd.f32 %v986_v4, %v969_v15  ;;  %v994_v47 = vadd.f32 %v984_v57, %v968_v20  ;;  %v1508_v57 = vstv %s2653_s14  ;;  %s2676_s14 = sld [smem:[#allocation7 + $0x4e]] }
 0x206   :  { %1413 = vrot.lane.b32.xlu0 %v1405_v11, %s2798_s3  ;;  %1393 = vrot.lane.b32.xlu1 %v1382_v8, %s2797_s29  ;;  %v1483_v11 = vmul.f32 %v1482_v26, %v3422_v44  ;;  %v1511_v35 = vmul.f32 %v1508_v57, %v3428_v62 }
 0x208   :  { %v1008_v36 = vpop.permute.xlu0 %1007  ;;  %v988_v27 = vpop.permute.xlu1 %987 }
 0x209   :  { %v1019_v41 = vadd.f32 %v1008_v36, %v993_v10  ;;  %v996_v56 = vadd.f32 %v988_v27, %v970_v54  ;;  %v1509_v10 = vmul.f32 %v1508_v57, %v3422_v44  ;;  %v1486_v36 = vmul.f32 %v1482_v26, %v3441_v14 }
 0x20a   :  { %1417 = vrot.lane.b32.xlu0 %v1407_v19, %s2798_s3  ;;  %1415 = vrot.lane.b32.xlu1 %v1406_v39, %s2798_s3  ;;  %v1549_v39 = vmul.f32 %v1548_v34, %v3506_v18 }
 0x20b   :  { %v3457_v45 = vadd.f32 %v1029_v17, %v1019_v41  ;;  %v1510_v41 = vmul.f32 %v1508_v57, %v3434_v52 }
 0x20c   :  { %v1012_v22 = vpop.permute.xlu0 %1011  ;;  %v1010_v63 = vpop.permute.xlu1 %1009 }
 0x20d   :  { %v1021_v43 = vadd.f32 %v1012_v22, %v995_v42  ;;  %v1020_v55 = vadd.f32 %v1010_v63, %v994_v47  ;;  %v1512_v42 = vmul.f32 %v1508_v57, %v3441_v14 }
 0x20e   :  { %1439 = vrot.lane.b32.xlu0 %v1431_v59, %s2799_s5  ;;  %1419 = vrot.lane.b32.xlu1 %v1408_v38, %s2798_s3  ;;  %v3518_v59 = vld [vmem:[#allocation2 + $0x39] sm:$0xff] }
 0x20f   :  { %v3465_v40 = vadd.f32 %v1031_v23, %v1021_v43  ;;  %v3471_v51 = vadd.f32 %v1030_v28, %v1020_v55  ;;  %v1574_v43 = vstv %s2656_s16  ;;  %v1550_v38 = vmul.f32 %v1548_v34, %v3518_v59  ;;  %v3525_v55 = vld [vmem:[#allocation2 + $0x51] sm:$0xff]  ;;  %s2661_s16 = sld [smem:[#allocation7 + $0x3f]] }
 0x210   :  { %v3468_v49 = vpop.permute.xlu0 %1047  ;;  %v1014_v1 = vpop.permute.xlu1 %1013 }
 0x211   :  { %v1022_v2 = vadd.f32 %v1014_v1, %v996_v56  ;;  %v1059_v22 = vadd.f32 %v3468_v49, %v3457_v45  ;;  %v1575_v49 = vmul.f32 %v1574_v43, %v3506_v18 }
 0x212   :  { %1443 = vrot.lane.b32.xlu0 %v1433_v25, %s2799_s5  ;;  %1441 = vrot.lane.b32.xlu1 %v1432_v31, %s2799_s5  ;;  %v1198_v25 = vstv %s2640_s17  ;;  %s2678_s17 = sld [smem:[#allocation7 + $0x50]] }
 0x213   :  { %v3478_v53 = vadd.f32 %v1032_v50, %v1022_v2  ;;  %v1552_v50 = vmul.f32 %v1548_v34, %v3525_v55 }
 0x214   :  { %v1052_v29 = vpop.permute.xlu0 %1051  ;;  %v3480_v6 = vpop.permute.xlu1 %1049 }
 0x215   :  { %v1061_v28 = vadd.f32 %v1052_v29, %v3465_v40  ;;  %v1060_v56 = vadd.f32 %v3480_v6, %v3471_v51 }
 0x216   :  { %1465 = vrot.lane.b32.xlu0 %v1457_v60, %s2800_s7  ;;  %1445 = vrot.lane.b32.xlu1 %v1434_v9, %s2799_s5  ;;  %v1199_v60 = vmul.f32 %v1198_v25, %v3337_v3 }
 0x218   :  { %v1074_v61 = vpop.permute.xlu0 %1073  ;;  %v3486_v33 = vpop.permute.xlu1 %1053 }
 0x219   :  { %v1085_v47 = vadd.f32 %v1074_v61, %v1059_v22  ;;  %v1577_v61 = vmul.f32 %v1574_v43, %v3512_v24  ;;  %v1062_v51 = vadd.f32 %v3486_v33, %v3478_v53  ;;  %v1201_v33 = vmul.f32 %v1198_v25, %v3343_v13 }
 0x21a   :  { %1469 = vrot.lane.b32.xlu0 %v1459_v58, %s2800_s7  ;;  %1467 = vrot.lane.b32.xlu1 %v1458_v12, %s2800_s7  ;;  %v1600_v58 = vstv %s2657_s18  ;;  %s2679_s18 = sld [smem:[#allocation7 + $0x51]] }
 0x21b   :  { %v1601_v53 = vmul.f32 %v1600_v58, %v3506_v18  ;;  %v1603_v13 = vmul.f32 %v1600_v58, %v3512_v24 }
 0x21c   :  { %v1078_v4 = vpop.permute.xlu0 %1077  ;;  %v1076_v0 = vpop.permute.xlu1 %1075 }
 0x21d   :  { %v1087_v48 = vadd.f32 %v1078_v4, %v1061_v28  ;;  %v1086_v40 = vadd.f32 %v1076_v0, %v1060_v56 }
 0x21e   :  { %1491 = vrot.lane.b32.xlu0 %v1483_v11, %s2801_s9  ;;  %1471 = vrot.lane.b32.xlu1 %v1460_v5, %s2800_s7  ;;  %v1576_v11 = vmul.f32 %v1574_v43, %v3518_v59 }
 0x220   :  { %v1100_v7 = vpop.permute.xlu0 %1099  ;;  %v3496_v8 = vpop.permute.xlu1 %1079 }
 0x221   :  { %v1111_v54 = vadd.f32 %v1100_v7, %v1085_v47  ;;  %v1088_v3 = vadd.f32 %v3496_v8, %v1062_v51  ;;  %v1200_v8 = vmul.f32 %v1198_v25, %v3347_v30  ;;  %v1202_v30 = vmul.f32 %v1198_v25, %v3355_v32  ;;  %v3590_v51 = vld [vmem:[#allocation2 + $0x32] sm:$0xff] }
 0x222   :  { %1495 = vrot.lane.b32.xlu0 %v1485_v21, %s2801_s9  ;;  %1493 = vrot.lane.b32.xlu1 %v1484_v37, %s2801_s9  ;;  %v1652_v32 = vstv %s2659_s20  ;;  %s2681_s20 = sld [smem:[#allocation7 + $0x53]] }
 0x224   :  { %v1104_v16 = vpop.permute.xlu0 %1103  ;;  %v1102_v17 = vpop.permute.xlu1 %1101 }
 0x225   :  { %v1113_v2 = vadd.f32 %v1104_v16, %v1087_v48  ;;  %v1112_v6 = vadd.f32 %v1102_v17, %v1086_v40  ;;  %v1578_v17 = vmul.f32 %v1574_v43, %v3525_v55  ;;  %v1604_v43 = vmul.f32 %v1600_v58, %v3525_v55 }
 0x226   :  { %1517 = vrot.lane.b32.xlu0 %v1509_v10, %s2802_s11  ;;  %1497 = vrot.lane.b32.xlu1 %v1486_v36, %s2801_s9  ;;  %v1654_v40 = vmul.f32 %v1652_v32, %v3518_v59 }
 0x228   :  { %v1126_v19 = vpop.permute.xlu0 %1125  ;;  %v1106_v15 = vpop.permute.xlu1 %1105 }
 0x229   :  { %v1137_v1 = vadd.f32 %v1126_v19, %v1111_v54  ;;  %v1114_v57 = vadd.f32 %v1106_v15, %v1088_v3  ;;  %v3596_v3 = vld [vmem:[#allocation2 + $0x4a] sm:$0xff] }
 0x22a   :  { %1521 = vrot.lane.b32.xlu0 %v1511_v35, %s2802_s11  ;;  %1519 = vrot.lane.b32.xlu1 %v1510_v41, %s2802_s11 }
 0x22c   :  { %v1130_v27 = vpop.permute.xlu0 %1129  ;;  %v1128_v20 = vpop.permute.xlu1 %1127 }
 0x22d   :  { %v1139_v26 = vadd.f32 %v1130_v27, %v1113_v2  ;;  %v1138_v0 = vadd.f32 %v1128_v20, %v1112_v6  ;;  %v1626_v27 = vstv %s2658_s19  ;;  %v1602_v20 = vmul.f32 %v1600_v58, %v3518_v59  ;;  %s2680_s19 = sld [smem:[#allocation7 + $0x52]] }
 0x22e   :  { %1557 = vrot.lane.b32.xlu0 %v1549_v39, %s2797_s29  ;;  %1523 = vrot.lane.b32.xlu1 %v1512_v42, %s2802_s11  ;;  %v1628_v54 = vmul.f32 %v1626_v27, %v3518_v59  ;;  %v1630_v56 = vmul.f32 %v1626_v27, %v3525_v55  ;;  %v1718_v6 = vstv %s2662_s23  ;;  %s2684_s23 = sld [smem:[#allocation7 + $0x56]] }
 0x230   :  { %v1152_v23 = vpop.permute.xlu0 %1151  ;;  %v1132_v63 = vpop.permute.xlu1 %1131 }
 0x231   :  { %v1163_v29 = vadd.f32 %v1152_v23, %v1137_v1  ;;  %v1140_v36 = vadd.f32 %v1132_v63, %v1114_v57  ;;  %v1627_v23 = vmul.f32 %v1626_v27, %v3506_v18  ;;  %v1655_v1 = vmul.f32 %v1652_v32, %v3512_v24 }
 0x232   :  { %1561 = vrot.lane.b32.xlu0 %v1551_v46, %s2797_s29  ;;  %1559 = vrot.lane.b32.xlu1 %v1550_v38, %s2797_s29  ;;  %v1629_v38 = vmul.f32 %v1626_v27, %v3512_v24  ;;  %v1721_v57 = vmul.f32 %v1718_v6, %v3596_v3 }
 0x234   :  { %v1156_v45 = vpop.permute.xlu0 %1155  ;;  %v1154_v31 = vpop.permute.xlu1 %1153 }
 0x235   :  { %v1165_v5 = vadd.f32 %v1156_v45, %v1139_v26  ;;  %v1164_v37 = vadd.f32 %v1154_v31, %v1138_v0  ;;  %v1678_v31 = vstv %s2660_s21  ;;  %s2683_s21 = sld [smem:[#allocation7 + $0x55]] }
 0x236   :  { %1583 = vrot.lane.b32.xlu0 %v1575_v49, %s2798_s3  ;;  %1563 = vrot.lane.b32.xlu1 %v1552_v50, %s2797_s29  ;;  %v1653_v49 = vmul.f32 %v1652_v32, %v3506_v18  ;;  %v1681_v58 = vmul.f32 %v1678_v31, %v3512_v24 }
 0x238   :  { %v1178_v9 = vpop.permute.xlu0 %1177  ;;  %v1158_v4 = vpop.permute.xlu1 %1157 }
 0x239   :  { %v1189_v12 = vadd.f32 %v1178_v9, %v1163_v29  ;;  %v1166_v15 = vadd.f32 %v1158_v4, %v1140_v36  ;;  %v1679_v29 = vmul.f32 %v1678_v31, %v3506_v18  ;;  %v1656_v9 = vmul.f32 %v1652_v32, %v3525_v55 }
 0x23a   :  { %1587 = vrot.lane.b32.xlu0 %v1577_v61, %s2798_s3  ;;  %1585 = vrot.lane.b32.xlu1 %v1576_v11, %s2798_s3  ;;  %v1719_v11 = vmul.f32 %v1718_v6, %v3590_v51 }
 0x23b   :  { %v3541_v7 = vadd.f32 %v1199_v60, %v1189_v12  ;;  %v1680_v12 = vmul.f32 %v1678_v31, %v3518_v59 }
 0x23c   :  { %v1182_v21 = vpop.permute.xlu0 %1181  ;;  %v1180_v10 = vpop.permute.xlu1 %1179 }
 0x23d   :  { %v1191_v16 = vadd.f32 %v1182_v21, %v1165_v5  ;;  %v1190_v19 = vadd.f32 %v1180_v10, %v1164_v37  ;;  %v1682_v5 = vmul.f32 %v1678_v31, %v3525_v55 }
 0x23e   :  { %1609 = vrot.lane.b32.xlu0 %v1601_v53, %s2799_s5  ;;  %1589 = vrot.lane.b32.xlu1 %v1578_v17, %s2798_s3  ;;  %v3602_v53 = vld [vmem:[#allocation2 + $0x3a] sm:$0xff] }
 0x23f   :  { %v3549_v35 = vadd.f32 %v1201_v33, %v1191_v16  ;;  %v3555_v41 = vadd.f32 %v1200_v8, %v1190_v19  ;;  %v1744_v16 = vstv %s2663_s24  ;;  %v1720_v17 = vmul.f32 %v1718_v6, %v3602_v53  ;;  %v3609_v19 = vld [vmem:[#allocation2 + $0x52] sm:$0xff]  ;;  %s2668_s24 = sld [smem:[#allocation7 + $0x46]] }
 0x240   :  { %v3552_v34 = vpop.permute.xlu0 %1217  ;;  %v1184_v39 = vpop.permute.xlu1 %1183 }
 0x241   :  { %v1192_v42 = vadd.f32 %v1184_v39, %v1166_v15  ;;  %v1229_v21 = vadd.f32 %v3552_v34, %v3541_v7  ;;  %v1745_v34 = vmul.f32 %v1744_v16, %v3590_v51  ;;  %v1368_v39 = vstv %s2647_s25  ;;  %s2685_s25 = sld [smem:[#allocation7 + $0x57]] }
 0x242   :  { %1613 = vrot.lane.b32.xlu0 %v1603_v13, %s2799_s5  ;;  %1611 = vrot.lane.b32.xlu1 %v1602_v20, %s2799_s5 }
 0x243   :  { %v3562_v46 = vadd.f32 %v1202_v30, %v1192_v42  ;;  %v1722_v30 = vmul.f32 %v1718_v6, %v3609_v19 }
 0x244   :  { %v1222_v22 = vpop.permute.xlu0 %1221  ;;  %v3564_v47 = vpop.permute.xlu1 %1219 }
 0x245   :  { %v1231_v8 = vadd.f32 %v1222_v22, %v3549_v35  ;;  %v1230_v13 = vadd.f32 %v3564_v47, %v3555_v41 }
 0x246   :  { %1635 = vrot.lane.b32.xlu0 %v1627_v23, %s2800_s7  ;;  %1615 = vrot.lane.b32.xlu1 %v1604_v43, %s2799_s5  ;;  %v1369_v23 = vmul.f32 %v1368_v39, %v3422_v44 }
 0x248   :  { %v1244_v63 = vpop.permute.xlu0 %1243  ;;  %v3570_v28 = vpop.permute.xlu1 %1223 }
 0x249   :  { %v1255_v37 = vadd.f32 %v1244_v63, %v1229_v21  ;;  %v1747_v63 = vmul.f32 %v1744_v16, %v3596_v3  ;;  %v1232_v41 = vadd.f32 %v3570_v28, %v3562_v46 }
 0x24a   :  { %1639 = vrot.lane.b32.xlu0 %v1629_v38, %s2800_s7  ;;  %1637 = vrot.lane.b32.xlu1 %v1628_v54, %s2800_s7  ;;  %v1770_v38 = vstv %s2664_s26  ;;  %s2686_s26 = sld [smem:[#allocation7 + $0x58]] }
 0x24b   :  { %v1771_v46 = vmul.f32 %v1770_v38, %v3590_v51 }
 0x24c   :  { %v1248_v45 = vpop.permute.xlu0 %1247  ;;  %v1246_v25 = vpop.permute.xlu1 %1245 }
 0x24d   :  { %v1257_v15 = vadd.f32 %v1248_v45, %v1231_v8  ;;  %v1256_v35 = vadd.f32 %v1246_v25, %v1230_v13 }
 0x24e   :  { %1661 = vrot.lane.b32.xlu0 %v1653_v49, %s2801_s9  ;;  %1641 = vrot.lane.b32.xlu1 %v1630_v56, %s2800_s7  ;;  %v1746_v49 = vmul.f32 %v1744_v16, %v3602_v53 }
 0x250   :  { %v1270_v48 = vpop.permute.xlu0 %1269  ;;  %v3580_v50 = vpop.permute.xlu1 %1249 }
 0x251   :  { %v1281_v36 = vadd.f32 %v1270_v48, %v1255_v37  ;;  %v1258_v25 = vadd.f32 %v3580_v50, %v1232_v41  ;;  %v3680_v41 = vld [vmem:[#allocation2 + $0x33] sm:$0xff] }
 0x252   :  { %1665 = vrot.lane.b32.xlu0 %v1655_v1, %s2801_s9  ;;  %1663 = vrot.lane.b32.xlu1 %v1654_v40, %s2801_s9  ;;  %v1371_v40 = vmul.f32 %v1368_v39, %v3428_v62 }
 0x254   :  { %v1274_v2 = vpop.permute.xlu0 %1273  ;;  %v1272_v60 = vpop.permute.xlu1 %1271 }
 0x255   :  { %v1283_v42 = vadd.f32 %v1274_v2, %v1257_v15  ;;  %v1282_v47 = vadd.f32 %v1272_v60, %v1256_v35  ;;  %v1748_v60 = vmul.f32 %v1744_v16, %v3609_v19  ;;  %v1774_v16 = vmul.f32 %v1770_v38, %v3609_v19 }
 0x256   :  { %1687 = vrot.lane.b32.xlu0 %v1679_v29, %s2802_s11  ;;  %1667 = vrot.lane.b32.xlu1 %v1656_v9, %s2801_s9  ;;  %v1370_v9 = vmul.f32 %v1368_v39, %v3434_v52 }
 0x258   :  { %v1296_v61 = vpop.permute.xlu0 %1295  ;;  %v1276_v26 = vpop.permute.xlu1 %1275 }
 0x259   :  { %v1307_v27 = vadd.f32 %v1296_v61, %v1281_v36  ;;  %v1284_v28 = vadd.f32 %v1276_v26, %v1258_v25  ;;  %v1773_v26 = vmul.f32 %v1770_v38, %v3596_v3  ;;  %v3686_v25 = vld [vmem:[#allocation2 + $0x4b] sm:$0xff] }
 0x25a   :  { %1691 = vrot.lane.b32.xlu0 %v1681_v58, %s2802_s11  ;;  %1689 = vrot.lane.b32.xlu1 %v1680_v12, %s2802_s11 }
 0x25c   :  { %v1300_v4 = vpop.permute.xlu0 %1299  ;;  %v1298_v0 = vpop.permute.xlu1 %1297 }
 0x25d   :  { %v1309_v32 = vadd.f32 %v1300_v4, %v1283_v42  ;;  %v1308_v56 = vadd.f32 %v1298_v0, %v1282_v47  ;;  %v1796_v4 = vstv %s2665_s0  ;;  %v1772_v0 = vmul.f32 %v1770_v38, %v3602_v53  ;;  %s2687_s0 = sld [smem:[#allocation7 + $0x59]] }
 0x25e   :  { %1727 = vrot.lane.b32.xlu0 %v1719_v11, %s2797_s29  ;;  %1693 = vrot.lane.b32.xlu1 %v1682_v5, %s2802_s11  ;;  %v1372_v5 = vmul.f32 %v1368_v39, %v3441_v14  ;;  %v1822_v14 = vstv %s2666_s27  ;;  %v1798_v36 = vmul.f32 %v1796_v4, %v3602_v53  ;;  %v1800_v15 = vmul.f32 %v1796_v4, %v3609_v19  ;;  %s2688_s27 = sld [smem:[#allocation7 + $0x5a]] }
 0x25f   :  { %v1825_v39 = vmul.f32 %v1822_v14, %v3596_v3  ;;  %v1824_v35 = vmul.f32 %v1822_v14, %v3602_v53  ;;  %v1888_v47 = vstv %s2669_s30  ;;  %s2691_s30 = sld [smem:[#allocation7 + $0x5d]] }
 0x260   :  { %v1322_v33 = vpop.permute.xlu0 %1321  ;;  %v1302_v10 = vpop.permute.xlu1 %1301 }
 0x261   :  { %v1333_v22 = vadd.f32 %v1322_v33, %v1307_v27  ;;  %v1310_v50 = vadd.f32 %v1302_v10, %v1284_v28  ;;  %v1797_v33 = vmul.f32 %v1796_v4, %v3590_v51  ;;  %v1891_v28 = vmul.f32 %v1888_v47, %v3686_v25 }
 0x262   :  { %1731 = vrot.lane.b32.xlu0 %v1721_v57, %s2797_s29  ;;  %1729 = vrot.lane.b32.xlu1 %v1720_v17, %s2797_s29  ;;  %v1799_v17 = vmul.f32 %v1796_v4, %v3596_v3 }
 0x264   :  { %v1326_v7 = vpop.permute.xlu0 %1325  ;;  %v1324_v20 = vpop.permute.xlu1 %1323 }
 0x265   :  { %v1335_v44 = vadd.f32 %v1326_v7, %v1309_v32  ;;  %v1334_v31 = vadd.f32 %v1324_v20, %v1308_v56  ;;  %v1848_v20 = vstv %s2667_s28  ;;  %s2690_s28 = sld [smem:[#allocation7 + $0x5c]] }
 0x266   :  { %1753 = vrot.lane.b32.xlu0 %v1745_v34, %s2798_s3  ;;  %1733 = vrot.lane.b32.xlu1 %v1722_v30, %s2797_s29  ;;  %v1823_v34 = vmul.f32 %v1822_v14, %v3590_v51  ;;  %v1851_v38 = vmul.f32 %v1848_v20, %v3596_v3 }
 0x268   :  { %v1348_v43 = vpop.permute.xlu0 %1347  ;;  %v1328_v45 = vpop.permute.xlu1 %1327 }
 0x269   :  { %v1359_v54 = vadd.f32 %v1348_v43, %v1333_v22  ;;  %v1336_v12 = vadd.f32 %v1328_v45, %v1310_v50  ;;  %v1849_v22 = vmul.f32 %v1848_v20, %v3590_v51  ;;  %v1826_v43 = vmul.f32 %v1822_v14, %v3609_v19 }
 0x26a   :  { %1757 = vrot.lane.b32.xlu0 %v1747_v63, %s2798_s3  ;;  %1755 = vrot.lane.b32.xlu1 %v1746_v49, %s2798_s3  ;;  %v1889_v49 = vmul.f32 %v1888_v47, %v3680_v41  ;;  %v3716_v14 = vstv %s2654_s8  ;;  %s2693_s8 = sld [smem:[#allocation7 + $0x5f]] }
 0x26b   :  { %v3625_v48 = vadd.f32 %v1369_v23, %v1359_v54  ;;  %v1850_v54 = vmul.f32 %v1848_v20, %v3602_v53 }
 0x26c   :  { %v1352_v1 = vpop.permute.xlu0 %1351  ;;  %v1350_v29 = vpop.permute.xlu1 %1349 }
 0x26d   :  { %v1361_v2 = vadd.f32 %v1352_v1, %v1335_v44  ;;  %v1360_v61 = vadd.f32 %v1350_v29, %v1334_v31  ;;  %v1852_v44 = vmul.f32 %v1848_v20, %v3609_v19  ;;  %v3692_v1 = vld [vmem:[#allocation2 + $0x3b] sm:$0xff]  ;;  %v1914_v31 = vstv %s2670_s4  ;;  %s2675_s4 = sld [smem:[#allocation7 + $0x4d]] }
 0x26e   :  { %1779 = vrot.lane.b32.xlu0 %v1771_v46, %s2799_s5  ;;  %1759 = vrot.lane.b32.xlu1 %v1748_v60, %s2798_s3  ;;  %v3701_v60 = vld [vmem:[#allocation2 + $0x53] sm:$0xff] }
 0x26f   :  { %v3633_v58 = vadd.f32 %v1371_v40, %v1361_v2  ;;  %v3639_v62 = vadd.f32 %v1370_v9, %v1360_v61  ;;  %v1890_v2 = vmul.f32 %v1888_v47, %v3692_v1  ;;  %v1915_v9 = vmul.f32 %v1914_v31, %v3680_v41 }
 0x270   :  { %v3636_v6 = vpop.permute.xlu0 %1387  ;;  %v1354_v11 = vpop.permute.xlu1 %1353 }
 0x271   :  { %v1362_v52 = vadd.f32 %v1354_v11, %v1336_v12  ;;  %v1892_v12 = vmul.f32 %v1888_v47, %v3701_v60  ;;  %v1542_v47 = vmul.f32 %v3716_v14, %v3525_v55 }
 0x272   :  { %1783 = vrot.lane.b32.xlu0 %v1773_v26, %s2799_s5  ;;  %1781 = vrot.lane.b32.xlu1 %v1772_v0, %s2799_s5 }
 0x273   :  { %v3646_v57 = vadd.f32 %v1372_v5, %v1362_v52  ;;  %v1940_v5 = vstv %s2671_s6  ;;  %s2692_s6 = sld [smem:[#allocation7 + $0x5e]] }
 0x274   :  { %v1392_v21 = vpop.permute.xlu0 %1391  ;;  %v3648_v37 = vpop.permute.xlu1 %1389 }
 0x275   :  { %v1401_v29 = vadd.f32 %v1392_v21, %v3633_v58  ;;  %v1917_v58 = vmul.f32 %v1914_v31, %v3686_v25 }
 0x276   :  { %1805 = vrot.lane.b32.xlu0 %v1797_v33, %s2800_s7  ;;  %1785 = vrot.lane.b32.xlu1 %v1774_v16, %s2799_s5  ;;  %v1916_v33 = vmul.f32 %v1914_v31, %v3692_v1 }
 0x278   :  { %v3653_v10 = vpop.permute.xlu0 %1413  ;;  %v1394_v8 = vpop.permute.xlu1 %1393 }
 0x279   :  { %v1402_v0 = vadd.f32 %v1394_v8, %v3646_v57  ;;  %v1541_v57 = vmul.f32 %v3716_v14, %v3512_v24 }
 0x27a   :  { %1809 = vrot.lane.b32.xlu0 %v1799_v17, %s2800_s7  ;;  %1807 = vrot.lane.b32.xlu1 %v1798_v36, %s2800_s7 }
 0x27c   :  { %v1418_v7 = vpop.permute.xlu0 %1417  ;;  %v3660_v13 = vpop.permute.xlu1 %1415 }
 0x27d   :  { %v1427_v61 = vadd.f32 %v1418_v7, %v1401_v29  ;;  %v1941_v7 = vmul.f32 %v1940_v5, %v3680_v41 }
 0x27e   :  { %1831 = vrot.lane.b32.xlu0 %v1823_v34, %s2801_s9  ;;  %1811 = vrot.lane.b32.xlu1 %v1800_v15, %s2800_s7 }
 0x280   :  { %v3665_v27 = vpop.permute.xlu0 %1439  ;;  %v1420_v30 = vpop.permute.xlu1 %1419 }
 0x281   :  { %v1428_v16 = vadd.f32 %v1420_v30, %v1402_v0 }
 0x282   :  { %1835 = vrot.lane.b32.xlu0 %v1825_v39, %s2801_s9  ;;  %1833 = vrot.lane.b32.xlu1 %v1824_v35, %s2801_s9  ;;  %v1918_v39 = vmul.f32 %v1914_v31, %v3701_v60 }
 0x284   :  { %v1444_v42 = vpop.permute.xlu0 %1443  ;;  %v3672_v23 = vpop.permute.xlu1 %1441 }
 0x285   :  { %v1453_v4 = vadd.f32 %v1444_v42, %v1427_v61  ;;  %v1943_v42 = vmul.f32 %v1940_v5, %v3686_v25 }
 0x286   :  { %1857 = vrot.lane.b32.xlu0 %v1849_v22, %s2802_s11  ;;  %1837 = vrot.lane.b32.xlu1 %v1826_v43, %s2801_s9  ;;  %v1966_v43 = vstv %s2672_s10 }
 0x287   :  { %v1969_v55 = vmul.f32 %v1966_v43, %v3686_v25  ;;  %v1968_v29 = vmul.f32 %v1966_v43, %v3692_v1 }
 0x288   :  { %v3677_v63 = vpop.permute.xlu0 %1465  ;;  %v1446_v32 = vpop.permute.xlu1 %1445 }
 0x289   :  { %v1454_v34 = vadd.f32 %v1446_v32, %v1428_v16 }
 0x28a   :  { %1861 = vrot.lane.b32.xlu0 %v1851_v38, %s2802_s11  ;;  %1859 = vrot.lane.b32.xlu1 %v1850_v54, %s2802_s11  ;;  %v1942_v38 = vmul.f32 %v1940_v5, %v3692_v1 }
 0x28c   :  { %v1470_v45 = vpop.permute.xlu0 %1469  ;;  %v3688_v56 = vpop.permute.xlu1 %1467 }
 0x28d   :  { %v1479_v52 = vadd.f32 %v1470_v45, %v1453_v4  ;;  %v1967_v45 = vmul.f32 %v1966_v43, %v3680_v41  ;;  %v1399_v4 = vadd.f32 %v3636_v6, %v3625_v48 }
 0x28e   :  { %1897 = vrot.lane.b32.xlu0 %v1889_v49, %s2797_s29  ;;  %1863 = vrot.lane.b32.xlu1 %v1852_v44, %s2802_s11 }
 0x290   :  { %v3695_v46 = vpop.permute.xlu0 %1491  ;;  %v1472_v40 = vpop.permute.xlu1 %1471 }
 0x291   :  { %v1480_v20 = vadd.f32 %v1472_v40, %v1454_v34  ;;  %v1992_v40 = vstv %s2673_s12 }
 0x292   :  { %1901 = vrot.lane.b32.xlu0 %v1891_v28, %s2797_s29  ;;  %1899 = vrot.lane.b32.xlu1 %v1890_v2, %s2797_s29  ;;  %v1944_v28 = vmul.f32 %v1940_v5, %v3701_v60  ;;  %v1995_v0 = vmul.f32 %v1992_v40, %v3686_v25  ;;  %v2018_v5 = vstv %s2674_s13 }
 0x293   :  { %v2019_v6 = vmul.f32 %v2018_v5, %v3680_v41 }
 0x294   :  { %v1496_v50 = vpop.permute.xlu0 %1495  ;;  %v3705_v26 = vpop.permute.xlu1 %1493 }
 0x295   :  { %v1505_v17 = vadd.f32 %v1496_v50, %v1479_v52  ;;  %v1425_v52 = vadd.f32 %v3653_v10, %v1399_v4  ;;  %v3816_v4 = vld [vmem:[#allocation2 + $0x54] sm:$0xff] }
 0x296   :  { %1923 = vrot.lane.b32.xlu0 %v1915_v9, %s2798_s3  ;;  %1903 = vrot.lane.b32.xlu1 %v1892_v12, %s2797_s29  ;;  %v1993_v9 = vmul.f32 %v1992_v40, %v3680_v41  ;;  %v1970_v12 = vmul.f32 %v1966_v43, %v3701_v60 }
 0x297   :  { %v1451_v16 = vadd.f32 %v3665_v27, %v1425_v52 }
 0x298   :  { %v3710_v11 = vpop.permute.xlu0 %1517  ;;  %v1498_v21 = vpop.permute.xlu1 %1497 }
 0x299   :  { %v1506_v22 = vadd.f32 %v1498_v21, %v1480_v20  ;;  %v1477_v10 = vadd.f32 %v3677_v63, %v1451_v16  ;;  %v2058_v63 = vstv %s2676_s14 }
 0x29a   :  { %1927 = vrot.lane.b32.xlu0 %v1917_v58, %s2798_s3  ;;  %1925 = vrot.lane.b32.xlu1 %v1916_v33, %s2798_s3  ;;  %v1994_v33 = vmul.f32 %v1992_v40, %v3692_v1  ;;  %v2062_v16 = vmul.f32 %v2058_v63, %v3816_v4 }
 0x29b   :  { %v1503_v27 = vadd.f32 %v3695_v46, %v1477_v10  ;;  %v1539_v46 = vmul.f32 %v3716_v14, %v3506_v18  ;;  %v2110_v10 = vstv %s2678_s17 }
 0x29c   :  { %v1522_v36 = vpop.permute.xlu0 %1521  ;;  %v3722_v15 = vpop.permute.xlu1 %1519 }
 0x29d   :  { %v1531_v8 = vadd.f32 %v1522_v36, %v1505_v17  ;;  %v1400_v17 = vadd.f32 %v3648_v37, %v3639_v62  ;;  %v1529_v62 = vadd.f32 %v3710_v11, %v1503_v27  ;;  %v3787_v37 = vld [vmem:[#allocation2 + $0x34] sm:$0xff] }
 0x29e   :  { %1949 = vrot.lane.b32.xlu0 %v1941_v7, %s2799_s5  ;;  %1929 = vrot.lane.b32.xlu1 %v1918_v39, %s2798_s3  ;;  %v1996_v7 = vmul.f32 %v1992_v40, %v3701_v60  ;;  %v2059_v11 = vmul.f32 %v2058_v63, %v3787_v37  ;;  %v2084_v40 = vstv %s2677_s15 }
 0x29f   :  { %v3726_v30 = vadd.f32 %v1541_v57, %v1531_v8  ;;  %v1426_v34 = vadd.f32 %v3660_v13, %v1400_v17  ;;  %v2021_v8 = vmul.f32 %v2018_v5, %v3686_v25  ;;  %v1543_v43 = vadd.f32 %v1539_v46, %v1529_v62 }
 0x2a0   :  { %v3729_v35 = vpop.permute.xlu0 %1557  ;;  %v1524_v24 = vpop.permute.xlu1 %1523  ;;  %v2088_v46 = vmul.f32 %v2084_v40, %v3816_v4 }
 0x2a1   :  { %v1532_v32 = vadd.f32 %v1524_v24, %v1506_v22  ;;  %v1452_v39 = vadd.f32 %v3672_v23, %v1426_v34  ;;  %v3799_v24 = vld [vmem:[#allocation2 + $0x4c] sm:$0xff]  ;;  %v1569_v18 = vadd.f32 %v3729_v35, %v1543_v43 }
 0x2a2   :  { %1953 = vrot.lane.b32.xlu0 %v1943_v42, %s2799_s5  ;;  %1951 = vrot.lane.b32.xlu1 %v1942_v38, %s2799_s5  ;;  %v2020_v42 = vmul.f32 %v2018_v5, %v3692_v1 }
 0x2a3   :  { %v3740_v49 = vadd.f32 %v1542_v47, %v1532_v32  ;;  %v1478_v13 = vadd.f32 %v3688_v56, %v1452_v39  ;;  %v2022_v47 = vmul.f32 %v2018_v5, %v3701_v60  ;;  %v3805_v32 = vld [vmem:[#allocation2 + $0x3c] sm:$0xff]  ;;  %v1708_v5 = vstv %s2661_s16 }
 0x2a4   :  { %v3737_v54 = vpop.permute.xlu0 %1561  ;;  %v3742_v44 = vpop.permute.xlu1 %1559 }
 0x2a5   :  { %v1504_v22 = vadd.f32 %v3705_v26, %v1478_v13  ;;  %v2061_v26 = vmul.f32 %v2058_v63, %v3799_v24  ;;  %v1571_v35 = vadd.f32 %v3737_v54, %v3726_v30 }
 0x2a6   :  { %1975 = vrot.lane.b32.xlu0 %v1967_v45, %s2800_s7  ;;  %1955 = vrot.lane.b32.xlu1 %v1944_v28, %s2799_s5  ;;  %v1540_v28 = vmul.f32 %v3716_v14, %v3518_v59  ;;  %v2085_v59 = vmul.f32 %v2084_v40, %v3787_v37 }
 0x2a7   :  { %v1530_v56 = vadd.f32 %v3722_v15, %v1504_v22 }
 0x2a8   :  { %v3747_v31 = vpop.permute.xlu0 %1583  ;;  %v3750_v2 = vpop.permute.xlu1 %1563 }
 0x2a9   :  { %v1544_v15 = vadd.f32 %v1540_v28, %v1530_v56 }
 0x2aa   :  { %1979 = vrot.lane.b32.xlu0 %v1969_v55, %s2800_s7  ;;  %1977 = vrot.lane.b32.xlu1 %v1968_v29, %s2800_s7  ;;  %v1595_v55 = vadd.f32 %v3747_v31, %v1569_v18  ;;  %v2112_v18 = vmul.f32 %v2110_v10, %v3805_v32 }
 0x2ab   :  { %v1570_v14 = vadd.f32 %v3742_v44, %v1544_v15  ;;  %v2087_v44 = vmul.f32 %v2084_v40, %v3799_v24 }
 0x2ac   :  { %v3755_v50 = vpop.permute.xlu0 %1587  ;;  %v3758_v61 = vpop.permute.xlu1 %1585 }
 0x2ad   :  { %v1597_v31 = vadd.f32 %v3755_v50, %v1571_v35  ;;  %v1596_v30 = vadd.f32 %v3758_v61, %v1570_v14  ;;  %v1572_v50 = vadd.f32 %v3750_v2, %v3740_v49  ;;  %v2086_v61 = vmul.f32 %v2084_v40, %v3805_v32 }
 0x2ae   :  { %2001 = vrot.lane.b32.xlu0 %v1993_v9, %s2801_s9  ;;  %1981 = vrot.lane.b32.xlu1 %v1970_v12, %s2800_s7  ;;  %v2060_v9 = vmul.f32 %v2058_v63, %v3805_v32  ;;  %v2111_v49 = vmul.f32 %v2110_v10, %v3787_v37  ;;  %v1711_v63 = vmul.f32 %v1708_v5, %v3596_v3 }
 0x2b0   :  { %v1610_v58 = vpop.permute.xlu0 %1609  ;;  %v3767_v21 = vpop.permute.xlu1 %1589 }
 0x2b1   :  { %v1621_v12 = vadd.f32 %v1610_v58, %v1595_v55 }
 0x2b2   :  { %2005 = vrot.lane.b32.xlu0 %v1995_v0, %s2801_s9  ;;  %2003 = vrot.lane.b32.xlu1 %v1994_v33, %s2801_s9 }
 0x2b4   :  { %v1614_v48 = vpop.permute.xlu0 %1613  ;;  %v3777_v36 = vpop.permute.xlu1 %1611 }
 0x2b5   :  { %v1623_v54 = vadd.f32 %v1614_v48, %v1597_v31  ;;  %v1598_v48 = vadd.f32 %v3767_v21, %v1572_v50  ;;  %v3886_v50 = vld [vmem:[#allocation2 + $0x35] sm:$0xff] }
 0x2b6   :  { %2027 = vrot.lane.b32.xlu0 %v2019_v6, %s2802_s11  ;;  %2007 = vrot.lane.b32.xlu1 %v1996_v7, %s2801_s9  ;;  %v1709_v6 = vmul.f32 %v1708_v5, %v3590_v51  ;;  %v1622_v7 = vadd.f32 %v3777_v36, %v1596_v30 }
 0x2b8   :  { %v1636_v57 = vpop.permute.xlu0 %1635  ;;  %v3789_v20 = vpop.permute.xlu1 %1615 }
 0x2b9   :  { %v1647_v52 = vadd.f32 %v1636_v57, %v1621_v12  ;;  %v1624_v2 = vadd.f32 %v3789_v20, %v1598_v48  ;;  %v2113_v20 = vmul.f32 %v2110_v10, %v3799_v24  ;;  %v3892_v48 = vld [vmem:[#allocation2 + $0x4d] sm:$0xff] }
 0x2ba   :  { %2031 = vrot.lane.b32.xlu0 %v2021_v8, %s2802_s11  ;;  %2029 = vrot.lane.b32.xlu1 %v2020_v42, %s2802_s11 }
 0x2bc   :  { %v1640_v23 = vpop.permute.xlu0 %1639  ;;  %v1638_v38 = vpop.permute.xlu1 %1637 }
 0x2bd   :  { %v1649_v34 = vadd.f32 %v1640_v23, %v1623_v54  ;;  %v1648_v51 = vadd.f32 %v1638_v38, %v1622_v7  ;;  %v1710_v23 = vmul.f32 %v1708_v5, %v3602_v53  ;;  %v1712_v53 = vmul.f32 %v1708_v5, %v3609_v19 }
 0x2be   :  { %2067 = vrot.lane.b32.xlu0 %v2059_v11, %s2797_s29  ;;  %2033 = vrot.lane.b32.xlu1 %v2022_v47, %s2802_s11  ;;  %v2136_v47 = vstv %s2679_s18  ;;  %v2162_v19 = vstv %s2680_s19 }
 0x2bf   :  { %v2137_v28 = vmul.f32 %v2136_v47, %v3787_v37  ;;  %v2139_v15 = vmul.f32 %v2136_v47, %v3799_v24  ;;  %v2138_v12 = vmul.f32 %v2136_v47, %v3805_v32  ;;  %v2140_v31 = vmul.f32 %v2136_v47, %v3816_v4 }
 0x2c0   :  { %v1662_v45 = vpop.permute.xlu0 %1661  ;;  %v1642_v29 = vpop.permute.xlu1 %1641  ;;  %v2165_v5 = vmul.f32 %v2162_v19, %v3799_v24  ;;  %v2164_v30 = vmul.f32 %v2162_v19, %v3805_v32  ;;  %v2228_v7 = vstv %s2683_s21  ;;  %v1878_v47 = vstv %s2668_s24 }
 0x2c1   :  { %v1673_v58 = vadd.f32 %v1662_v45, %v1647_v52  ;;  %v1650_v21 = vadd.f32 %v1642_v29, %v1624_v2  ;;  %v2114_v29 = vmul.f32 %v2110_v10, %v3816_v4 }
 0x2c2   :  { %2071 = vrot.lane.b32.xlu0 %v2061_v26, %s2797_s29  ;;  %2069 = vrot.lane.b32.xlu1 %v2060_v9, %s2797_s29 }
 0x2c4   :  { %v1666_v0 = vpop.permute.xlu0 %1665  ;;  %v1664_v33 = vpop.permute.xlu1 %1663 }
 0x2c5   :  { %v1675_v8 = vadd.f32 %v1666_v0, %v1649_v34  ;;  %v1674_v36 = vadd.f32 %v1664_v33, %v1648_v51  ;;  %v2188_v33 = vstv %s2681_s20 }
 0x2c6   :  { %2093 = vrot.lane.b32.xlu0 %v2085_v59, %s2798_s3  ;;  %2073 = vrot.lane.b32.xlu1 %v2062_v16, %s2797_s29  ;;  %v2163_v59 = vmul.f32 %v2162_v19, %v3787_v37  ;;  %v2191_v10 = vmul.f32 %v2188_v33, %v3799_v24 }
 0x2c8   :  { %v1688_v17 = vpop.permute.xlu0 %1687  ;;  %v1668_v57 = vpop.permute.xlu1 %1667 }
 0x2c9   :  { %v1699_v27 = vadd.f32 %v1688_v17, %v1673_v58  ;;  %v1676_v38 = vadd.f32 %v1668_v57, %v1650_v21  ;;  %v2189_v58 = vmul.f32 %v2188_v33, %v3787_v37  ;;  %v2166_v17 = vmul.f32 %v2162_v19, %v3816_v4 }
 0x2ca   :  { %2097 = vrot.lane.b32.xlu0 %v2087_v44, %s2798_s3  ;;  %2095 = vrot.lane.b32.xlu1 %v2086_v61, %s2798_s3  ;;  %v2229_v61 = vmul.f32 %v2228_v7, %v3886_v50 }
 0x2cb   :  { %v3834_v39 = vadd.f32 %v1709_v6, %v1699_v27  ;;  %v2190_v27 = vmul.f32 %v2188_v33, %v3805_v32 }
 0x2cc   :  { %v1692_v62 = vpop.permute.xlu0 %1691  ;;  %v1690_v13 = vpop.permute.xlu1 %1689 }
 0x2cd   :  { %v1701_v42 = vadd.f32 %v1692_v62, %v1675_v8  ;;  %v1700_v11 = vadd.f32 %v1690_v13, %v1674_v36  ;;  %v2192_v8 = vmul.f32 %v2188_v33, %v3816_v4  ;;  %v2231_v36 = vmul.f32 %v2228_v7, %v3892_v48 }
 0x2ce   :  { %2119 = vrot.lane.b32.xlu0 %v2111_v49, %s2799_s5  ;;  %2099 = vrot.lane.b32.xlu1 %v2088_v46, %s2798_s3  ;;  %v3898_v49 = vld [vmem:[#allocation2 + $0x3d] sm:$0xff] }
 0x2cf   :  { %v3843_v22 = vadd.f32 %v1711_v63, %v1701_v42  ;;  %v3849_v3 = vadd.f32 %v1710_v23, %v1700_v11  ;;  %v2254_v42 = vstv %s2684_s23  ;;  %v2230_v46 = vmul.f32 %v2228_v7, %v3898_v49  ;;  %v3905_v11 = vld [vmem:[#allocation2 + $0x55] sm:$0xff] }
 0x2d0   :  { %v3846_v43 = vpop.permute.xlu0 %1727  ;;  %v1694_v56 = vpop.permute.xlu1 %1693 }
 0x2d1   :  { %v1702_v45 = vadd.f32 %v1694_v56, %v1676_v38  ;;  %v1739_v62 = vadd.f32 %v3846_v43, %v3834_v39  ;;  %v2255_v43 = vmul.f32 %v2254_v42, %v3886_v50 }
 0x2d2   :  { %2123 = vrot.lane.b32.xlu0 %v2113_v20, %s2799_s5  ;;  %2121 = vrot.lane.b32.xlu1 %v2112_v18, %s2799_s5  ;;  %v2232_v18 = vmul.f32 %v2228_v7, %v3905_v11 }
 0x2d3   :  { %v3856_v55 = vadd.f32 %v1712_v53, %v1702_v45 }
 0x2d4   :  { %v1732_v26 = vpop.permute.xlu0 %1731  ;;  %v3858_v40 = vpop.permute.xlu1 %1729 }
 0x2d5   :  { %v1741_v21 = vadd.f32 %v1732_v26, %v3843_v22  ;;  %v1740_v53 = vadd.f32 %v3858_v40, %v3849_v3  ;;  %v2256_v3 = vmul.f32 %v2254_v42, %v3898_v49 }
 0x2d6   :  { %2145 = vrot.lane.b32.xlu0 %v2137_v28, %s2800_s7  ;;  %2125 = vrot.lane.b32.xlu1 %v2114_v29, %s2799_s5  ;;  %v2257_v28 = vmul.f32 %v2254_v42, %v3892_v48  ;;  %v2280_v29 = vstv %s2685_s25 }
 0x2d8   :  { %v1754_v9 = vpop.permute.xlu0 %1753  ;;  %v3864_v35 = vpop.permute.xlu1 %1733 }
 0x2d9   :  { %v1765_v63 = vadd.f32 %v1754_v9, %v1739_v62  ;;  %v1879_v9 = vmul.f32 %v1878_v47, %v3680_v41  ;;  %v1882_v62 = vmul.f32 %v1878_v47, %v3701_v60 }
 0x2da   :  { %2149 = vrot.lane.b32.xlu0 %v2139_v15, %s2800_s7  ;;  %2147 = vrot.lane.b32.xlu1 %v2138_v12, %s2800_s7  ;;  %v1742_v15 = vadd.f32 %v3864_v35, %v3856_v55  ;;  %v2281_v55 = vmul.f32 %v2280_v29, %v3886_v50 }
 0x2dc   :  { %v1758_v0 = vpop.permute.xlu0 %1757  ;;  %v3870_v14 = vpop.permute.xlu1 %1755 }
 0x2dd   :  { %v1767_v20 = vadd.f32 %v1758_v0, %v1741_v21  ;;  %v1766_v19 = vadd.f32 %v3870_v14, %v1740_v53  ;;  %v2284_v21 = vmul.f32 %v2280_v29, %v3905_v11 }
 0x2de   :  { %2171 = vrot.lane.b32.xlu0 %v2163_v59, %s2801_s9  ;;  %2151 = vrot.lane.b32.xlu1 %v2140_v31, %s2800_s7 }
 0x2e0   :  { %v1780_v52 = vpop.permute.xlu0 %1779  ;;  %v3876_v16 = vpop.permute.xlu1 %1759 }
 0x2e1   :  { %v1791_v23 = vadd.f32 %v1780_v52, %v1765_v63  ;;  %v1768_v40 = vadd.f32 %v3876_v16, %v1742_v15  ;;  %v2358_v15 = vstv %s2688_s27 }
 0x2e2   :  { %2175 = vrot.lane.b32.xlu0 %v2165_v5, %s2801_s9  ;;  %2173 = vrot.lane.b32.xlu1 %v2164_v30, %s2801_s9  ;;  %v1881_v30 = vmul.f32 %v1878_v47, %v3686_v25  ;;  %v2282_v25 = vmul.f32 %v2280_v29, %v3898_v49 }
 0x2e4   :  { %v1784_v54 = vpop.permute.xlu0 %1783  ;;  %v1782_v6 = vpop.permute.xlu1 %1781 }
 0x2e5   :  { %v1793_v22 = vadd.f32 %v1784_v54, %v1767_v20  ;;  %v1792_v31 = vadd.f32 %v1782_v6, %v1766_v19 }
 0x2e6   :  { %2197 = vrot.lane.b32.xlu0 %v2189_v58, %s2802_s11  ;;  %2177 = vrot.lane.b32.xlu1 %v2166_v17, %s2801_s9  ;;  %v2258_v58 = vmul.f32 %v2254_v42, %v3905_v11 }
 0x2e8   :  { %v1806_v44 = vpop.permute.xlu0 %1805  ;;  %v1786_v34 = vpop.permute.xlu1 %1785 }
 0x2e9   :  { %v1817_v38 = vadd.f32 %v1806_v44, %v1791_v23  ;;  %v1794_v35 = vadd.f32 %v1786_v34, %v1768_v40 }
 0x2ea   :  { %2201 = vrot.lane.b32.xlu0 %v2191_v10, %s2802_s11  ;;  %2199 = vrot.lane.b32.xlu1 %v2190_v27, %s2802_s11  ;;  %v2283_v10 = vmul.f32 %v2280_v29, %v3892_v48 }
 0x2ec   :  { %v1810_v57 = vpop.permute.xlu0 %1809  ;;  %v1808_v51 = vpop.permute.xlu1 %1807 }
 0x2ed   :  { %v1819_v12 = vadd.f32 %v1810_v57, %v1793_v22  ;;  %v1818_v14 = vadd.f32 %v1808_v51, %v1792_v31  ;;  %v2306_v57 = vstv %s2686_s26 }
 0x2ee   :  { %2237 = vrot.lane.b32.xlu0 %v2229_v61, %s2797_s29  ;;  %2203 = vrot.lane.b32.xlu1 %v2192_v8, %s2802_s11  ;;  %v1880_v8 = vmul.f32 %v1878_v47, %v3692_v1  ;;  %v2309_v1 = vmul.f32 %v2306_v57, %v3892_v48 }
 0x2f0   :  { %v1832_v2 = vpop.permute.xlu0 %1831  ;;  %v1812_v13 = vpop.permute.xlu1 %1811 }
 0x2f1   :  { %v1843_v45 = vadd.f32 %v1832_v2, %v1817_v38  ;;  %v1820_v17 = vadd.f32 %v1812_v13, %v1794_v35  ;;  %v2308_v38 = vmul.f32 %v2306_v57, %v3898_v49 }
 0x2f2   :  { %2241 = vrot.lane.b32.xlu0 %v2231_v36, %s2797_s29  ;;  %2239 = vrot.lane.b32.xlu1 %v2230_v46, %s2797_s29  ;;  %v2307_v36 = vmul.f32 %v2306_v57, %v3886_v50 }
 0x2f4   :  { %v1836_v39 = vpop.permute.xlu0 %1835  ;;  %v1834_v56 = vpop.permute.xlu1 %1833 }
 0x2f5   :  { %v1845_v52 = vadd.f32 %v1836_v39, %v1819_v12  ;;  %v1844_v16 = vadd.f32 %v1834_v56, %v1818_v14  ;;  %v3955_v14 = vld [vmem:[#allocation2 + $0x36] sm:$0xff] }
 0x2f6   :  { %2263 = vrot.lane.b32.xlu0 %v2255_v43, %s2798_s3  ;;  %2243 = vrot.lane.b32.xlu1 %v2232_v18, %s2797_s29  ;;  %v2332_v43 = vstv %s2687_s0 }
 0x2f7   :  { %v2333_v18 = vmul.f32 %v2332_v43, %v3886_v50  ;;  %v2335_v29 = vmul.f32 %v2332_v43, %v3892_v48  ;;  %v2334_v12 = vmul.f32 %v2332_v43, %v3898_v49 }
 0x2f8   :  { %v1858_v26 = vpop.permute.xlu0 %1857  ;;  %v1838_v59 = vpop.permute.xlu1 %1837 }
 0x2f9   :  { %v1869_v0 = vadd.f32 %v1858_v26, %v1843_v45  ;;  %v1846_v7 = vadd.f32 %v1838_v59, %v1820_v17  ;;  %v2310_v45 = vmul.f32 %v2306_v57, %v3905_v11 }
 0x2fa   :  { %2267 = vrot.lane.b32.xlu0 %v2257_v28, %s2798_s3  ;;  %2265 = vrot.lane.b32.xlu1 %v2256_v3, %s2798_s3  ;;  %v2359_v3 = vmul.f32 %v2358_v15, %v3886_v50 }
 0x2fb   :  { %v1883_v5 = vadd.f32 %v1879_v9, %v1869_v0 }
 0x2fc   :  { %v1862_v41 = vpop.permute.xlu0 %1861  ;;  %v1860_v54 = vpop.permute.xlu1 %1859 }
 0x2fd   :  { %v1871_v33 = vadd.f32 %v1862_v41, %v1845_v52  ;;  %v1870_v27 = vadd.f32 %v1860_v54, %v1844_v16  ;;  %v2336_v52 = vmul.f32 %v2332_v43, %v3905_v11  ;;  %v2360_v54 = vmul.f32 %v2358_v15, %v3898_v49 }
 0x2fe   :  { %2289 = vrot.lane.b32.xlu0 %v2281_v55, %s2799_s5  ;;  %2269 = vrot.lane.b32.xlu1 %v2258_v58, %s2798_s3  ;;  %v2361_v55 = vmul.f32 %v2358_v15, %v3892_v48 }
 0x2ff   :  { %v1885_v6 = vadd.f32 %v1881_v30, %v1871_v33  ;;  %v1884_v63 = vadd.f32 %v1880_v8, %v1870_v27  ;;  %v2398_v33 = vstv %s2690_s28 }
 0x300   :  { %v1898_v44 = vpop.permute.xlu0 %1897  ;;  %v1864_v61 = vpop.permute.xlu1 %1863  ;;  %v2399_v16 = vmul.f32 %v2398_v33, %v3955_v14 }
 0x301   :  { %v1909_v34 = vadd.f32 %v1898_v44, %v1883_v5  ;;  %v1872_v51 = vadd.f32 %v1864_v61, %v1846_v7  ;;  %v3961_v44 = vld [vmem:[#allocation2 + $0x4e] sm:$0xff]  ;;  %v2362_v7 = vmul.f32 %v2358_v15, %v3905_v11 }
 0x302   :  { %2293 = vrot.lane.b32.xlu0 %v2283_v10, %s2799_s5  ;;  %2291 = vrot.lane.b32.xlu1 %v2282_v25, %s2799_s5  ;;  %v2401_v61 = vmul.f32 %v2398_v33, %v3961_v44 }
 0x303   :  { %v1886_v13 = vadd.f32 %v1882_v62, %v1872_v51  ;;  %v2424_v51 = vstv %s2691_s30 }
 0x304   :  { %v1902_v2 = vpop.permute.xlu0 %1901  ;;  %v1900_v46 = vpop.permute.xlu1 %1899 }
 0x305   :  { %v1911_v42 = vadd.f32 %v1902_v2, %v1885_v6  ;;  %v1910_v23 = vadd.f32 %v1900_v46, %v1884_v63 }
 0x306   :  { %2315 = vrot.lane.b32.xlu0 %v2307_v36, %s2800_s7  ;;  %2295 = vrot.lane.b32.xlu1 %v2284_v21, %s2799_s5  ;;  %v3971_v36 = vld [vmem:[#allocation2 + $0x56] sm:$0xff] }
 0x307   :  { %v2402_v21 = vmul.f32 %v2398_v33, %v3971_v36 }
 0x308   :  { %v1924_v39 = vpop.permute.xlu0 %1923  ;;  %v1904_v20 = vpop.permute.xlu1 %1903 }
 0x309   :  { %v1935_v60 = vadd.f32 %v1924_v39, %v1909_v34  ;;  %v1912_v47 = vadd.f32 %v1904_v20, %v1886_v13  ;;  %v3965_v34 = vld [vmem:[#allocation2 + $0x3e] sm:$0xff]  ;;  %v2450_v20 = vstv %s2692_s6 }
 0x30a   :  { %2319 = vrot.lane.b32.xlu0 %v2309_v1, %s2800_s7  ;;  %2317 = vrot.lane.b32.xlu1 %v2308_v38, %s2800_s7  ;;  %v2400_v62 = vmul.f32 %v2398_v33, %v3965_v34 }
 0x30c   :  { %v1928_v56 = vpop.permute.xlu0 %1927  ;;  %v1926_v22 = vpop.permute.xlu1 %1925 }
 0x30d   :  { %v1937_v53 = vadd.f32 %v1928_v56, %v1911_v42  ;;  %v1936_v26 = vadd.f32 %v1926_v22, %v1910_v23  ;;  %v2425_v42 = vmul.f32 %v2424_v51, %v3955_v14  ;;  %v2048_v23 = vstv %s2675_s4 }
 0x30e   :  { %2341 = vrot.lane.b32.xlu0 %v2333_v18, %s2801_s9  ;;  %2321 = vrot.lane.b32.xlu1 %v2310_v45, %s2800_s7  ;;  %v2049_v38 = vmul.f32 %v2048_v23, %v3787_v37  ;;  %v2426_v56 = vmul.f32 %v2424_v51, %v3965_v34  ;;  %v2451_v45 = vmul.f32 %v2450_v20, %v3955_v14 }
 0x310   :  { %v1950_v28 = vpop.permute.xlu0 %1949  ;;  %v1930_v19 = vpop.permute.xlu1 %1929 }
 0x311   :  { %v1961_v9 = vadd.f32 %v1950_v28, %v1935_v60  ;;  %v1938_v0 = vadd.f32 %v1930_v19, %v1912_v47  ;;  %v2427_v60 = vmul.f32 %v2424_v51, %v3961_v44  ;;  %v2051_v28 = vmul.f32 %v2048_v23, %v3799_v24 }
 0x312   :  { %2345 = vrot.lane.b32.xlu0 %v2335_v29, %s2801_s9  ;;  %2343 = vrot.lane.b32.xlu1 %v2334_v12, %s2801_s9  ;;  %v2453_v12 = vmul.f32 %v2450_v20, %v3961_v44 }
 0x314   :  { %v1954_v59 = vpop.permute.xlu0 %1953  ;;  %v1952_v31 = vpop.permute.xlu1 %1951 }
 0x315   :  { %v1963_v40 = vadd.f32 %v1954_v59, %v1937_v53  ;;  %v1962_v5 = vadd.f32 %v1952_v31, %v1936_v26  ;;  %v2476_v59 = vstv %s2693_s8  ;;  %v2050_v31 = vmul.f32 %v2048_v23, %v3805_v32 }
 0x316   :  { %2367 = vrot.lane.b32.xlu0 %v2359_v3, %s2802_s11  ;;  %2347 = vrot.lane.b32.xlu1 %v2336_v52, %s2801_s9  ;;  %v2052_v52 = vmul.f32 %v2048_v23, %v3816_v4  ;;  %v2479_v32 = vmul.f32 %v2476_v59, %v3961_v44 }
 0x318   :  { %v1976_v41 = vpop.permute.xlu0 %1975  ;;  %v1956_v30 = vpop.permute.xlu1 %1955 }
 0x319   :  { %v1987_v35 = vadd.f32 %v1976_v41, %v1961_v9  ;;  %v1964_v58 = vadd.f32 %v1956_v30, %v1938_v0  ;;  %v2428_v9 = vmul.f32 %v2424_v51, %v3971_v36  ;;  %v2477_v41 = vmul.f32 %v2476_v59, %v3955_v14 }
 0x31a   :  { %2371 = vrot.lane.b32.xlu0 %v2361_v55, %s2802_s11  ;;  %2369 = vrot.lane.b32.xlu1 %v2360_v54, %s2802_s11  ;;  %v2454_v54 = vmul.f32 %v2450_v20, %v3971_v36  ;;  %v2480_v51 = vmul.f32 %v2476_v59, %v3971_v36 }
 0x31c   :  { %v1980_v17 = vpop.permute.xlu0 %1979  ;;  %v1978_v10 = vpop.permute.xlu1 %1977 }
 0x31d   :  { %v1989_v6 = vadd.f32 %v1980_v17, %v1963_v40  ;;  %v1988_v27 = vadd.f32 %v1978_v10, %v1962_v5  ;;  %v2452_v40 = vmul.f32 %v2450_v20, %v3965_v34  ;;  %v2478_v10 = vmul.f32 %v2476_v59, %v3965_v34 }
 0x31e   :  { %2407 = vrot.lane.b32.xlu0 %v2399_v16, %s2797_s29  ;;  %2373 = vrot.lane.b32.xlu1 %v2362_v7, %s2802_s11 }
 0x320   :  { %v2002_v57 = vpop.permute.xlu0 %2001  ;;  %v1982_v8 = vpop.permute.xlu1 %1981 }
 0x321   :  { %v2013_v25 = vadd.f32 %v2002_v57, %v1987_v35  ;;  %v1990_v2 = vadd.f32 %v1982_v8, %v1964_v58 }
 0x322   :  { %2411 = vrot.lane.b32.xlu0 %v2401_v61, %s2797_s29  ;;  %2409 = vrot.lane.b32.xlu1 %v2400_v62, %s2797_s29 }
 0x324   :  { %v2006_v63 = vpop.permute.xlu0 %2005  ;;  %v2004_v46 = vpop.permute.xlu1 %2003 }
 0x325   :  { %v2015_v13 = vadd.f32 %v2006_v63, %v1989_v6  ;;  %v2014_v39 = vadd.f32 %v2004_v46, %v1988_v27 }
 0x326   :  { %2433 = vrot.lane.b32.xlu0 %v2425_v42, %s2798_s3  ;;  %2413 = vrot.lane.b32.xlu1 %v2402_v21, %s2797_s29  ;;  %s2694_s29 = sld [smem:[#allocation7 + $0x60]] }
 0x328   :  { %v2028_v1 = vpop.permute.xlu0 %2027  ;;  %v2008_v47 = vpop.permute.xlu1 %2007 }
 0x329   :  { %v2039_v43 = vadd.f32 %v2028_v1, %v2013_v25  ;;  %v2016_v18 = vadd.f32 %v2008_v47, %v1990_v2 }
 0x32a   :  { %2437 = vrot.lane.b32.xlu0 %v2427_v60, %s2798_s3  ;;  %2435 = vrot.lane.b32.xlu1 %v2426_v56, %s2798_s3 }
 0x32b   :  { %v2053_v53 = vadd.f32 %v2049_v38, %v2039_v43 }
 0x32c   :  { %v2032_v22 = vpop.permute.xlu0 %2031  ;;  %v2030_v29 = vpop.permute.xlu1 %2029  ;;  %v2502_v16 = vstv %s2694_s29 }
 0x32d   :  { %v2041_v26 = vadd.f32 %v2032_v22, %v2015_v13  ;;  %v2040_v37 = vadd.f32 %v2030_v29, %v2014_v39  ;;  %v2503_v57 = vmul.f32 %v2502_v16, %v3955_v14  ;;  %v2505_v2 = vmul.f32 %v2502_v16, %v3961_v44 }
 0x32e   :  { %2459 = vrot.lane.b32.xlu0 %v2451_v45, %s2799_s5  ;;  %2439 = vrot.lane.b32.xlu1 %v2428_v9, %s2798_s3  ;;  %s2695_s3 = sld [smem:[#allocation7 + $0x61]]  ;;  %v2504_v46 = vmul.f32 %v2502_v16, %v3965_v34  ;;  %v2506_v43 = vmul.f32 %v2502_v16, %v3971_v36 }
 0x32f   :  { %v2055_v15 = vadd.f32 %v2051_v28, %v2041_v26  ;;  %v2054_v55 = vadd.f32 %v2050_v31, %v2040_v37 }
 0x330   :  { %v2068_v19 = vpop.permute.xlu0 %2067  ;;  %v2034_v3 = vpop.permute.xlu1 %2033 }
 0x331   :  { %v2079_v0 = vadd.f32 %v2068_v19, %v2053_v53  ;;  %v2042_v24 = vadd.f32 %v2034_v3, %v2016_v18 }
 0x332   :  { %2463 = vrot.lane.b32.xlu0 %v2453_v12, %s2799_s5  ;;  %2461 = vrot.lane.b32.xlu1 %v2452_v40, %s2799_s5 }
 0x333   :  { %v2056_v33 = vadd.f32 %v2052_v52, %v2042_v24 }
 0x334   :  { %v2072_v5 = vpop.permute.xlu0 %2071  ;;  %v2070_v30 = vpop.permute.xlu1 %2069  ;;  %v2528_v42 = vstv %s2695_s3 }
 0x335   :  { %v2081_v35 = vadd.f32 %v2072_v5, %v2055_v15  ;;  %v2080_v58 = vadd.f32 %v2070_v30, %v2054_v55  ;;  %v2529_v39 = vmul.f32 %v2528_v42, %v3955_v14  ;;  %v2531_v47 = vmul.f32 %v2528_v42, %v3961_v44 }
 0x336   :  { %2485 = vrot.lane.b32.xlu0 %v2477_v41, %s2800_s7  ;;  %2465 = vrot.lane.b32.xlu1 %v2454_v54, %s2799_s5  ;;  %v2530_v53 = vmul.f32 %v2528_v42, %v3965_v34  ;;  %v2532_v29 = vmul.f32 %v2528_v42, %v3971_v36  ;;  %s2682_s5 = sld [smem:[#allocation7 + $0x54]] }
 0x338   :  { %v2094_v17 = vpop.permute.xlu0 %2093  ;;  %v2074_v6 = vpop.permute.xlu1 %2073 }
 0x339   :  { %v2105_v4 = vadd.f32 %v2094_v17, %v2079_v0  ;;  %v2082_v7 = vadd.f32 %v2074_v6, %v2056_v33 }
 0x33a   :  { %2489 = vrot.lane.b32.xlu0 %v2479_v32, %s2800_s7  ;;  %2487 = vrot.lane.b32.xlu1 %v2478_v10, %s2800_s7 }
 0x33c   :  { %v2098_v27 = vpop.permute.xlu0 %2097  ;;  %v2096_v25 = vpop.permute.xlu1 %2095  ;;  %v2218_v40 = vstv %s2682_s5 }
 0x33d   :  { %v2107_v61 = vadd.f32 %v2098_v27, %v2081_v35  ;;  %v2106_v8 = vadd.f32 %v2096_v25, %v2080_v58  ;;  %v2219_v5 = vmul.f32 %v2218_v40, %v3886_v50  ;;  %v2221_v54 = vmul.f32 %v2218_v40, %v3892_v48 }
 0x33e   :  { %2511 = vrot.lane.b32.xlu0 %v2503_v57, %s2801_s9  ;;  %2491 = vrot.lane.b32.xlu1 %v2480_v51, %s2800_s7  ;;  %v2220_v32 = vmul.f32 %v2218_v40, %v3898_v49  ;;  %v2222_v57 = vmul.f32 %v2218_v40, %v3905_v11  ;;  %s2689_s7 = sld [smem:[#allocation7 + $0x5b]] }
 0x340   :  { %v2120_v62 = vpop.permute.xlu0 %2119  ;;  %v2100_v13 = vpop.permute.xlu1 %2099 }
 0x341   :  { %v2131_v63 = vadd.f32 %v2120_v62, %v2105_v4  ;;  %v2108_v21 = vadd.f32 %v2100_v13, %v2082_v7 }
 0x342   :  { %2515 = vrot.lane.b32.xlu0 %v2505_v2, %s2801_s9  ;;  %2513 = vrot.lane.b32.xlu1 %v2504_v46, %s2801_s9 }
 0x344   :  { %v2124_v23 = vpop.permute.xlu0 %2123  ;;  %v2122_v60 = vpop.permute.xlu1 %2121 }
 0x345   :  { %v2133_v1 = vadd.f32 %v2124_v23, %v2107_v61  ;;  %v2132_v20 = vadd.f32 %v2122_v60, %v2106_v8 }
 0x346   :  { %2537 = vrot.lane.b32.xlu0 %v2529_v39, %s2802_s11  ;;  %2517 = vrot.lane.b32.xlu1 %v2506_v43, %s2801_s9  ;;  %s2803_s9 = smov [#allocation8]  }
 0x348   :  { %v2146_v38 = vpop.permute.xlu0 %2145  ;;  %v2126_v18 = vpop.permute.xlu1 %2125 }
 0x349   :  { %v2157_v56 = vadd.f32 %v2146_v38, %v2131_v63  ;;  %v2134_v22 = vadd.f32 %v2126_v18, %v2108_v21 }
 0x34a   :  { %2541 = vrot.lane.b32.xlu0 %v2531_v47, %s2802_s11  ;;  %2539 = vrot.lane.b32.xlu1 %v2530_v53, %s2802_s11 }
 0x34c   :  { %v2150_v45 = vpop.permute.xlu0 %2149  ;;  %v2148_v28 = vpop.permute.xlu1 %2147 }
 0x34d   :  { %v2159_v26 = vadd.f32 %v2150_v45, %v2133_v1  ;;  %v2158_v9 = vadd.f32 %v2148_v28, %v2132_v20 }
 0x34e   :  { %2543 = vrot.lane.b32.xlu1 %v2532_v29, %s2802_s11  ;;  %s2586_s11 = sshll.u32 %s2803_s9, 4  ;;  %s2587_s11 = int_to_ptr.vmem [resolvable:$true] %s2586_s11 }
 0x34f   :  { %s2763_s10 = scalar_lea.vmem %s2587_s11, 512  ;;  %p2768_p0 = scmp.lt.s32.totalorder %s2587_s11, %s2587_s11 }
 0x350   :  { %v2172_v37 = vpop.permute.xlu0 %2171  ;;  %v2152_v19 = vpop.permute.xlu1 %2151  ;;  %p2764_p13 = scmp.ne.s32.totalorder %s2587_s11, %s2763_s10  ;;  %p2769_p1 = scmp.lt.s32.totalorder %s2763_s10, %s2763_s10 }
 0x351   :  { %v2183_v15 = vadd.f32 %v2172_v37, %v2157_v56  ;;  %v2160_v12 = vadd.f32 %v2152_v19, %v2134_v22  ;;  %v2388_v22 = vstv %s2689_s7 }
 0x352   :  { %v2389_v19 = vmul.f32 %v2388_v22, %v3955_v14  ;;  %p2770_p2 = por %p2769_p1, %p2768_p0 }
 0x354   :  { %v2176_v0 = vpop.permute.xlu0 %2175  ;;  %v2174_v3 = vpop.permute.xlu1 %2173  ;;  %p2771_p3 = pnand %p2770_p2, %p2764_p13 }
 0x355   :  { %v2185_v59 = vadd.f32 %v2176_v0, %v2159_v26  ;;  %v2184_v24 = vadd.f32 %v2174_v3, %v2158_v9 }
 0x358   :  { %v2198_v31 = vpop.permute.xlu0 %2197  ;;  %v2178_v41 = vpop.permute.xlu1 %2177 }
 0x359   :  { %v2209_v52 = vadd.f32 %v2198_v31, %v2183_v15  ;;  %v2186_v55 = vadd.f32 %v2178_v41, %v2160_v12  ;;  %v2391_v41 = vmul.f32 %v2388_v22, %v3961_v44 }
 0x35b   :  { %v2223_v35 = vadd.f32 %v2219_v5, %v2209_v52 }
 0x35c   :  { %v2202_v33 = vpop.permute.xlu0 %2201  ;;  %v2200_v58 = vpop.permute.xlu1 %2199 }
 0x35d   :  { %v2211_v30 = vadd.f32 %v2202_v33, %v2185_v59  ;;  %v2210_v17 = vadd.f32 %v2200_v58, %v2184_v24 }
 0x35f   :  { %v2225_v4 = vadd.f32 %v2221_v54, %v2211_v30  ;;  %v2224_v10 = vadd.f32 %v2220_v32, %v2210_v17  ;;  %v2390_v30 = vmul.f32 %v2388_v22, %v3965_v34 }
 0x360   :  { %v2238_v16 = vpop.permute.xlu0 %2237  ;;  %v2204_v7 = vpop.permute.xlu1 %2203 }
 0x361   :  { %v2249_v6 = vadd.f32 %v2238_v16, %v2223_v35  ;;  %v2212_v27 = vadd.f32 %v2204_v7, %v2186_v55  ;;  %v2392_v16 = vmul.f32 %v2388_v22, %v3971_v36 }
 0x363   :  { %v2226_v25 = vadd.f32 %v2222_v57, %v2212_v27 }
 0x364   :  { %v2242_v50 = vpop.permute.xlu0 %2241  ;;  %v2240_v51 = vpop.permute.xlu1 %2239 }
 0x365   :  { %v2251_v61 = vadd.f32 %v2242_v50, %v2225_v4  ;;  %v2250_v8 = vadd.f32 %v2240_v51, %v2224_v10 }
 0x368   :  { %v2264_v62 = vpop.permute.xlu0 %2263  ;;  %v2244_v2 = vpop.permute.xlu1 %2243 }
 0x369   :  { %v2252_v48 = vadd.f32 %v2244_v2, %v2226_v25  ;;  %v2275_v43 = vadd.f32 %v2264_v62, %v2249_v6 }
 0x36c   :  { %v2268_v63 = vpop.permute.xlu0 %2267  ;;  %v2266_v42 = vpop.permute.xlu1 %2265 }
 0x36d   :  { %v2277_v56 = vadd.f32 %v2268_v63, %v2251_v61  ;;  %v2276_v45 = vadd.f32 %v2266_v42, %v2250_v8 }
 0x370   :  { %v2290_v13 = vpop.permute.xlu0 %2289  ;;  %v2270_v49 = vpop.permute.xlu1 %2269 }
 0x371   :  { %v2301_v38 = vadd.f32 %v2290_v13, %v2275_v43  ;;  %v2278_v0 = vadd.f32 %v2270_v49, %v2252_v48 }
 0x374   :  { %v2294_v46 = vpop.permute.xlu0 %2293  ;;  %v2292_v21 = vpop.permute.xlu1 %2291 }
 0x375   :  { %v2303_v26 = vadd.f32 %v2294_v46, %v2277_v56  ;;  %v2302_v9 = vadd.f32 %v2292_v21, %v2276_v45 }
 0x378   :  { %v2316_v23 = vpop.permute.xlu0 %2315  ;;  %v2296_v39 = vpop.permute.xlu1 %2295 }
 0x379   :  { %v2327_v18 = vadd.f32 %v2316_v23, %v2301_v38  ;;  %v2304_v31 = vadd.f32 %v2296_v39, %v2278_v0 }
 0x37c   :  { %v2320_v1 = vpop.permute.xlu0 %2319  ;;  %v2318_v60 = vpop.permute.xlu1 %2317 }
 0x37d   :  { %v2329_v37 = vadd.f32 %v2320_v1, %v2303_v26  ;;  %v2328_v59 = vadd.f32 %v2318_v60, %v2302_v9 }
 0x380   :  { %v2342_v11 = vpop.permute.xlu0 %2341  ;;  %v2322_v20 = vpop.permute.xlu1 %2321 }
 0x381   :  { %v2353_v28 = vadd.f32 %v2342_v11, %v2327_v18  ;;  %v2330_v35 = vadd.f32 %v2322_v20, %v2304_v31 }
 0x384   :  { %v2346_v47 = vpop.permute.xlu0 %2345  ;;  %v2344_v53 = vpop.permute.xlu1 %2343 }
 0x385   :  { %v2355_v3 = vadd.f32 %v2346_v47, %v2329_v37  ;;  %v2354_v52 = vadd.f32 %v2344_v53, %v2328_v59 }
 0x388   :  { %v2368_v29 = vpop.permute.xlu0 %2367  ;;  %v2348_v12 = vpop.permute.xlu1 %2347 }
 0x389   :  { %v2379_v15 = vadd.f32 %v2368_v29, %v2353_v28  ;;  %v2356_v17 = vadd.f32 %v2348_v12, %v2330_v35 }
 0x38b   :  { %v2393_v40 = vadd.f32 %v2389_v19, %v2379_v15 }
 0x38c   :  { %v2372_v24 = vpop.permute.xlu0 %2371  ;;  %v2370_v55 = vpop.permute.xlu1 %2369 }
 0x38d   :  { %v2381_v5 = vadd.f32 %v2372_v24, %v2355_v3  ;;  %v2380_v33 = vadd.f32 %v2370_v55, %v2354_v52 }
 0x38f   :  { %v2395_v54 = vadd.f32 %v2391_v41, %v2381_v5  ;;  %v2394_v14 = vadd.f32 %v2390_v30, %v2380_v33 }
 0x390   :  { %v2408_v58 = vpop.permute.xlu0 %2407  ;;  %v2374_v32 = vpop.permute.xlu1 %2373 }
 0x391   :  { %v2382_v4 = vadd.f32 %v2374_v32, %v2356_v17  ;;  %v2419_v63 = vadd.f32 %v2408_v58, %v2393_v40 }
 0x393   :  { %v2396_v10 = vadd.f32 %v2392_v16, %v2382_v4 }
 0x394   :  { %v2412_v6 = vpop.permute.xlu0 %2411  ;;  %v2410_v7 = vpop.permute.xlu1 %2409 }
 0x395   :  { %v2421_v36 = vadd.f32 %v2412_v6, %v2395_v54  ;;  %v2420_v23 = vadd.f32 %v2410_v7, %v2394_v14 }
 0x398   :  { %v2434_v27 = vpop.permute.xlu0 %2433  ;;  %v2414_v57 = vpop.permute.xlu1 %2413 }
 0x399   :  { %v2445_v13 = vadd.f32 %v2434_v27, %v2419_v63  ;;  %v2422_v47 = vadd.f32 %v2414_v57, %v2396_v10 }
 0x39c   :  { %v2438_v50 = vpop.permute.xlu0 %2437  ;;  %v2436_v44 = vpop.permute.xlu1 %2435 }
 0x39d   :  { %v2447_v39 = vadd.f32 %v2438_v50, %v2421_v36  ;;  %v2446_v11 = vadd.f32 %v2436_v44, %v2420_v23 }
 0x3a0   :  { %v2460_v61 = vpop.permute.xlu0 %2459  ;;  %v2440_v25 = vpop.permute.xlu1 %2439 }
 0x3a1   :  { %v2471_v46 = vadd.f32 %v2460_v61, %v2445_v13  ;;  %v2448_v45 = vadd.f32 %v2440_v25, %v2422_v47 }
 0x3a4   :  { %v2464_v51 = vpop.permute.xlu0 %2463  ;;  %v2462_v8 = vpop.permute.xlu1 %2461 }
 0x3a5   :  { %v2473_v43 = vadd.f32 %v2464_v51, %v2447_v39  ;;  %v2472_v56 = vadd.f32 %v2462_v8, %v2446_v11 }
 0x3a8   :  { %v2486_v34 = vpop.permute.xlu0 %2485  ;;  %v2466_v62 = vpop.permute.xlu1 %2465 }
 0x3a9   :  { %v2497_v1 = vadd.f32 %v2486_v34, %v2471_v46  ;;  %v2474_v37 = vadd.f32 %v2466_v62, %v2448_v45 }
 0x3ac   :  { %v2490_v2 = vpop.permute.xlu0 %2489  ;;  %v2488_v48 = vpop.permute.xlu1 %2487 }
 0x3ad   :  { %v2499_v18 = vadd.f32 %v2490_v2, %v2473_v43  ;;  %v2498_v26 = vadd.f32 %v2488_v48, %v2472_v56 }
 0x3b0   :  { %v2512_v42 = vpop.permute.xlu0 %2511  ;;  %v2492_v49 = vpop.permute.xlu1 %2491 }
 0x3b1   :  { %v2523_v20 = vadd.f32 %v2512_v42, %v2497_v1  ;;  %v2500_v0 = vadd.f32 %v2492_v49, %v2474_v37 }
 0x3b4   :  { %v2516_v21 = vpop.permute.xlu0 %2515  ;;  %v2514_v60 = vpop.permute.xlu1 %2513 }
 0x3b5   :  { %v2525_v28 = vadd.f32 %v2516_v21, %v2499_v18  ;;  %v2524_v15 = vadd.f32 %v2514_v60, %v2498_v26 }
 0x3b8   :  { %v2538_v38 = vpop.permute.xlu0 %2537  ;;  %v2518_v22 = vpop.permute.xlu1 %2517 }
 0x3b9   :  { %v2549_v53 = vadd.f32 %v2538_v38, %v2523_v20  ;;  %v2526_v40 = vadd.f32 %v2518_v22, %v2500_v0 }
 0x3bb   :  { %v2696_v29 = vmul.f32 -1.442695, %v2549_v53 }
 0x3bc   :  { %v2542_v9 = vpop.permute.xlu0 %2541  ;;  %v2540_v12 = vpop.permute.xlu1 %2539 }
 0x3bd   :  { %2713 = vpow2.f32 %v2696_v29  ;;  %v2551_v19 = vadd.f32 %v2542_v9, %v2525_v28  ;;  %v2550_v59 = vadd.f32 %v2540_v12, %v2524_v15 }
 0x3bf   :  { %v2698_v3 = vmul.f32 -1.442695, %v2551_v19  ;;  %v2697_v24 = vmul.f32 -1.442695, %v2550_v59 }
 0x3c0   :  { %v2544_v31 = vpop.permute.xlu1 %2543 }
 0x3c1   :  { %2715 = vpow2.f32 %v2698_v3  ;;  %v2552_v52 = vadd.f32 %v2544_v31, %v2526_v40 }
 0x3c2   :  { %2717 = vpow2.f32 %v2697_v24 }
 0x3c3   :  { %v2699_v5 = vmul.f32 -1.442695, %v2552_v52 }
 0x3c5   :  { %2719 = vpow2.f32 %v2699_v5 }
 0x3c7   :  { %v2714_v41 = vpop.eup %2713 }
 0x3c8   :  { %v2565_v55 = vadd.f32 1.0, %v2714_v41 }
 0x3ca   :  { %2721 = vrcp.f32 %v2565_v55 }
 0x3cb   :  { %v2716_v35 = vpop.eup %2715 }
 0x3cc   :  { %v2567_v33 = vadd.f32 1.0, %v2716_v35  ;;  %v2718_v30 = vpop.eup %2717 }
 0x3cd   :  { %v2566_v54 = vadd.f32 1.0, %v2718_v30 }
 0x3ce   :  { %2723 = vrcp.f32 %v2567_v33 }
 0x3cf   :  { %2725 = vrcp.f32 %v2566_v54  ;;  %v2720_v58 = vpop.eup %2719 }
 0x3d0   :  { %v2568_v17 = vadd.f32 1.0, %v2720_v58 }
 0x3d2   :  { %2727 = vrcp.f32 %v2568_v17 }
 0x3d4   :  { %v2722_v14 = vpop.eup %2721 }
 0x3d5   :  { %2577 = vst.msk [vmem:[#allocation8] sm:$0xff] %vm55_vm0, %v2722_v14 }
 0x3d8   :  { %v2724_v32 = vpop.eup %2723 }
 0x3d9   :  { %2579 = vst.msk [vmem:[#allocation8 + $0x10] sm:$0xff] %vm55_vm0, %v2724_v32  ;;  %v2726_v4 = vpop.eup %2725 }
 0x3da   :  { %2578 = vst.msk [vmem:[#allocation8 + $0x8] sm:$0xff] %vm55_vm0, %v2726_v4 }
 0x3dc   :  { %v2728_v16 = vpop.eup %2727 }
 0x3dd   :  { %2580 = vst.msk [vmem:[#allocation8 + $0x18] sm:$0xff] %vm55_vm0, %v2728_v16 }
 0x3de   :  { %2774 = shalt.err (!%p2771_p3)
}
 0x3df   :  { %s2775_s14 = scalar_lea.hbm %s4049_s2, 512 }
 0x3e0   :  { %p2776_p4 = scmp.ne.s32.totalorder %s4049_s2, %s2775_s14  ;;  %p2779_p5 = scmp.lt.u32.totalorder %s2775_s14, %s4049_s2 }
 0x3e2   :  { %p2781_p6 = pnand %p2779_p5, %p2776_p4 }
 0x3e4   :  { %2784 = shalt.err (!%p2781_p6)
}
 0x3e5   :  { %2592 = dma.vmem_to_hbm [thread:$0]  %s2587_s11, 512, %s4049_s2, [#allocation5], %s2792_s1, %s2792_s1, %s2793_s22  }
 0x3e6   :  { %2789 = dma.done.wait [#allocation5], 512  }
 0x3e7   :  { %2790 = vsyncadd [#allocation5], 4294966784 }
 0x3e8   :  { %2596 = vsyncpa [#allocation4], 1 }
 0x3e9   :  { %2597 = vsyncpa [#allocation5], 1 }
 0x3ea   :  { %2598 = vsyncpa [#allocation6], 1 }

</bundles_post_ra>
